<compile_context>
chip_gen: v7x
topology: tpu7x:2x2x1
jax: 0.10.0
libtpu: 0.0.40
codegen_flags: <defaults>
</compile_context>

<pallas_src>
import jax
import jax.numpy as jnp
from jax.experimental import pallas as pl
from jax.experimental.pallas import tpu as pltpu

HIDDEN = 64            # nn.Linear(256, hidden=64)
N_CLASSES = 10
OUT_PAD = 128          # class axis padded to one full lane width
K_RAW = 49 * 64        # 3136 flattened (k, p) im2col features per sample
K_PAD = 3200           # padded to a multiple of 128
BLOCK_B = 128          # samples per grid step


def mnist_cnn_kernel(p_ref, wc_ref, bc_ref, w1_ref, b1_ref, w2_ref, b2_ref, o_ref):
    # p_ref : (BLOCK_B, K_PAD)   flattened + padded im2col patches
    # wc_ref: (K_PAD, 256)       conv expanded to a dense linear map
    # bc_ref: (1, 256)           conv bias, channel-major over the 256 features
    # w1_ref: (256, HIDDEN)      fc1 weight^T, b1_ref: (1, HIDDEN)
    # w2_ref: (HIDDEN, OUT_PAD)  fc2 weight^T zero-padded, b2_ref: (1, OUT_PAD)
    h = jnp.dot(p_ref[...], wc_ref[...], preferred_element_type=jnp.float32)
    h = h + bc_ref[...]
    h = h * h                                                   # x = x * x (post-conv)
    z = jnp.dot(h, w1_ref[...], preferred_element_type=jnp.float32) + b1_ref[...]
    z = z * z                                                   # x = x * x (post-fc1)
    o = jnp.dot(z, w2_ref[...], preferred_element_type=jnp.float32) + b2_ref[...]
    o_ref[...] = o.astype(o_ref.dtype)


def im2col_nchw(x):
    # x: (N, 1, 28, 28) -> (N, 49, 64);
    # patches[n, kh*7+kw, oh*8+ow] = x[n, 0, oh*3+kh, ow*3+kw]
    n = x.shape[0]
    x2 = x[:, 0]                                                # (N, 28, 28)
    oh = jnp.arange(8)
    kh = jnp.arange(7)
    rows = oh[:, None] * 3 + kh[None, :]                        # (8, 7)
    cols = rows                                                 # same for width axis
    p = x2[:, rows[:, None, :, None], cols[None, :, None, :]]   # (N, 8, 8, 7, 7)
    p = jnp.transpose(p, (0, 3, 4, 1, 2)).reshape(n, 49, 64)    # (N, kh*kw, oh*ow)
    return p


def expand_conv_weight(wc):
    # wc: (4, 49) -> (K_PAD, 256) dense linear map on the flattened patches.
    # Input feature index f_in = k*64 + p, output feature f_out = c*64 + p
    # (matching PyTorch's NCHW conv output flatten).
    eye = jnp.eye(64, dtype=wc.dtype)                           # (p, p')
    wbig = jnp.einsum("ck,pq->kpcq", wc, eye)                   # (49, 64, 4, 64)
    wbig = wbig.reshape(K_RAW, 4 * 64)                          # (3136, 256)
    return jnp.pad(wbig, ((0, K_PAD - K_RAW), (0, 0)))          # (3200, 256)


def mnist_cnn_forward(x, params):
    wc, bc, w1, b1, w2, b2 = params
    n = x.shape[0]
    n_pad = pl.cdiv(n, BLOCK_B) * BLOCK_B

    patches = im2col_nchw(x.astype(jnp.float32)).reshape(n, K_RAW)
    patches = jnp.pad(patches, ((0, n_pad - n), (0, K_PAD - K_RAW)))

    wc_big = expand_conv_weight(wc)                              # (K_PAD, 256)
    bc_row = jnp.repeat(bc.reshape(4), 64).reshape(1, 256)       # channel-major bias
    w2_pad = jnp.pad(w2, ((0, 0), (0, OUT_PAD - N_CLASSES)))     # (64, 128)
    b2_pad = jnp.pad(b2, ((0, 0), (0, OUT_PAD - N_CLASSES)))     # (1, 128)

    grid = (n_pad // BLOCK_B,)
    flops = 2 * n_pad * (K_PAD * 256 + 256 * HIDDEN + HIDDEN * OUT_PAD)
    bytes_accessed = 4 * (n_pad * K_PAD + K_PAD * 256 + 256 * HIDDEN
                          + HIDDEN * OUT_PAD + n_pad * OUT_PAD
                          + 256 + HIDDEN + OUT_PAD)

    out = pl.pallas_call(
        mnist_cnn_kernel,
        out_shape=jax.ShapeDtypeStruct((n_pad, OUT_PAD), jnp.float32),
        grid=grid,
        in_specs=[
            pl.BlockSpec((BLOCK_B, K_PAD), lambda i: (i, 0)),        # patches block
            pl.BlockSpec((K_PAD, 256), lambda i: (0, 0)),            # expanded conv W
            pl.BlockSpec((1, 256), lambda i: (0, 0)),                # conv bias row
            pl.BlockSpec((256, HIDDEN), lambda i: (0, 0)),           # fc1 weight^T
            pl.BlockSpec((1, HIDDEN), lambda i: (0, 0)),             # fc1 bias
            pl.BlockSpec((HIDDEN, OUT_PAD), lambda i: (0, 0)),       # fc2 weight^T (padded)
            pl.BlockSpec((1, OUT_PAD), lambda i: (0, 0)),            # fc2 bias (padded)
        ],
        out_specs=pl.BlockSpec((BLOCK_B, OUT_PAD), lambda i: (i, 0)),
        compiler_params=pltpu.CompilerParams(
            dimension_semantics=("parallel",),
            vmem_limit_bytes=32 * 1024 * 1024),
        cost_estimate=pl.CostEstimate(
            flops=flops, transcendentals=0, bytes_accessed=bytes_accessed),
    )(patches, wc_big, bc_row, w1, b1, w2_pad, b2_pad)
    return out[:n, :N_CLASSES]                                   # (N, 10)


def reference_forward(x, params):
    # Pure-JAX reference mirroring the PyTorch forward exactly.
    wc, bc, w1, b1, w2, b2 = params
    patches = im2col_nchw(x.astype(jnp.float32))                 # (N, 49, 64)
    y = jnp.einsum("ck,nkp->ncp", wc, patches,
                   precision=jax.lax.Precision.HIGHEST) + bc[None]  # (N, 4, 64)
    y = y * y
    h = y.reshape(x.shape[0], 256)                               # == x.view(-1, 256)
    z = jnp.dot(h, w1, precision=jax.lax.Precision.HIGHEST) + b1
    z = z * z
    return jnp.dot(z, w2, precision=jax.lax.Precision.HIGHEST) + b2


def init_params(key):
    # Deterministic init mimicking PyTorch defaults: U(-1/sqrt(fan_in), 1/sqrt(fan_in)).
    ks = jax.random.split(key, 6)
    kc = 1.0 / jnp.sqrt(49.0)
    wc = jax.random.uniform(ks[0], (4, 49), jnp.float32, -kc, kc)        # conv1.weight flat
    bc = jax.random.uniform(ks[1], (4, 1), jnp.float32, -kc, kc)         # conv1.bias
    k1 = 1.0 / jnp.sqrt(256.0)
    w1 = jax.random.uniform(ks[2], (256, HIDDEN), jnp.float32, -k1, k1)  # fc1.weight^T
    b1 = jax.random.uniform(ks[3], (1, HIDDEN), jnp.float32, -k1, k1)    # fc1.bias
    k2 = 1.0 / jnp.sqrt(float(HIDDEN))
    w2 = jax.random.uniform(ks[4], (HIDDEN, N_CLASSES), jnp.float32, -k2, k2)  # fc2.weight^T
    b2 = jax.random.uniform(ks[5], (1, N_CLASSES), jnp.float32, -k2, k2)       # fc2.bias
    return (wc, bc, w1, b1, w2, b2)


if __name__ == "__main__":
    key = jax.random.PRNGKey(0)
    kx, kp = jax.random.split(key)
    # MNIST-shaped input (spatial 28 is required by view(-1, 256)); batch=256
    # exercises two 128-sample grid steps (both v7x TensorCores).
    x = jax.random.normal(kx, (256, 1, 28, 28), jnp.float32)
    params = init_params(kp)

    out = mnist_cnn_forward(x, params)
    out = jax.block_until_ready(out)

    ref = reference_forward(x, params)
    assert out.shape == (256, 10)
    assert jnp.allclose(out, ref, rtol=1e-4, atol=1e-4), "Pallas output mismatch vs reference"
    print("KERNEL_OK")
</pallas_src>

<mosaic_0001>
module attributes {stable_mosaic.version = 11 : i64} {
  func.func @mnist_cnn_kernel(%arg0: i32, %arg1: memref<128x3200xf32, #tpu.memory_space<vmem>>, %arg2: memref<3200x256xf32, #tpu.memory_space<vmem>>, %arg3: memref<1x256xf32, #tpu.memory_space<vmem>>, %arg4: memref<256x64xf32, #tpu.memory_space<vmem>>, %arg5: memref<1x64xf32, #tpu.memory_space<vmem>>, %arg6: memref<64x128xf32, #tpu.memory_space<vmem>>, %arg7: memref<1x128xf32, #tpu.memory_space<vmem>>, %arg8: memref<128x128xf32, #tpu.memory_space<vmem>>) attributes {dimension_semantics = [#tpu.dimension_semantics<parallel>], iteration_bounds = array<i64: 2>, scalar_prefetch = 0 : i64, scratch_operands = 0 : i64, tpu.core_type = #tpu.core_type<tc>, window_params = [{transform_indices = @transform_0, window_bounds = array<i64: 128, 3200>}, {pipeline_mode = #tpu.pipeline_mode<synchronous>, transform_indices = @transform_1, window_bounds = array<i64: 3200, 256>}, {pipeline_mode = #tpu.pipeline_mode<synchronous>, transform_indices = @transform_2, window_bounds = array<i64: 1, 256>}, {pipeline_mode = #tpu.pipeline_mode<synchronous>, transform_indices = @transform_3, window_bounds = array<i64: 256, 64>}, {pipeline_mode = #tpu.pipeline_mode<synchronous>, transform_indices = @transform_4, window_bounds = array<i64: 1, 64>}, {pipeline_mode = #tpu.pipeline_mode<synchronous>, transform_indices = @transform_5, window_bounds = array<i64: 64, 128>}, {pipeline_mode = #tpu.pipeline_mode<synchronous>, transform_indices = @transform_6, window_bounds = array<i64: 1, 128>}, {transform_indices = @transform_7, window_bounds = array<i64: 128, 128>}]} {
    %c0 = arith.constant 0 : index
    %c0_0 = arith.constant 0 : index
    %0 = vector.load %arg1[%c0, %c0_0] : memref<128x3200xf32, #tpu.memory_space<vmem>>, vector<128x3200xf32>
    %c0_1 = arith.constant 0 : index
    %c0_2 = arith.constant 0 : index
    %1 = vector.load %arg2[%c0_1, %c0_2] : memref<3200x256xf32, #tpu.memory_space<vmem>>, vector<3200x256xf32>
    %cst = arith.constant dense<0.000000e+00> : vector<128x256xf32>
    %2 = tpu.matmul %0, %1, %cst {dimension_numbers = #tpu.dot_dimension_numbers<[1], [0], [0], [1], [0, 0, 1, 1], [], []>} : vector<128x3200xf32>, vector<3200x256xf32>, vector<128x256xf32> -> vector<128x256xf32>
    %c0_3 = arith.constant 0 : index
    %c0_4 = arith.constant 0 : index
    %3 = vector.load %arg3[%c0_3, %c0_4] : memref<1x256xf32, #tpu.memory_space<vmem>>, vector<1x256xf32>
    %4 = vector.broadcast %3 : vector<1x256xf32> to vector<128x256xf32>
    %5 = arith.addf %2, %4 : vector<128x256xf32>
    %6 = arith.mulf %5, %5 : vector<128x256xf32>
    %c0_5 = arith.constant 0 : index
    %c0_6 = arith.constant 0 : index
    %7 = vector.load %arg4[%c0_5, %c0_6] : memref<256x64xf32, #tpu.memory_space<vmem>>, vector<256x64xf32>
    %cst_7 = arith.constant dense<0.000000e+00> : vector<128x64xf32>
    %8 = tpu.matmul %6, %7, %cst_7 {dimension_numbers = #tpu.dot_dimension_numbers<[1], [0], [0], [1], [0, 0, 1, 1], [], []>} : vector<128x256xf32>, vector<256x64xf32>, vector<128x64xf32> -> vector<128x64xf32>
    %c0_8 = arith.constant 0 : index
    %c0_9 = arith.constant 0 : index
    %9 = vector.load %arg5[%c0_8, %c0_9] : memref<1x64xf32, #tpu.memory_space<vmem>>, vector<1x64xf32>
    %10 = vector.broadcast %9 : vector<1x64xf32> to vector<128x64xf32>
    %11 = arith.addf %8, %10 : vector<128x64xf32>
    %12 = arith.mulf %11, %11 : vector<128x64xf32>
    %c0_10 = arith.constant 0 : index
    %c0_11 = arith.constant 0 : index
    %13 = vector.load %arg6[%c0_10, %c0_11] : memref<64x128xf32, #tpu.memory_space<vmem>>, vector<64x128xf32>
    %cst_12 = arith.constant dense<0.000000e+00> : vector<128x128xf32>
    %14 = tpu.matmul %12, %13, %cst_12 {dimension_numbers = #tpu.dot_dimension_numbers<[1], [0], [0], [1], [0, 0, 1, 1], [], []>} : vector<128x64xf32>, vector<64x128xf32>, vector<128x128xf32> -> vector<128x128xf32>
    %c0_13 = arith.constant 0 : index
    %c0_14 = arith.constant 0 : index
    %15 = vector.load %arg7[%c0_13, %c0_14] : memref<1x128xf32, #tpu.memory_space<vmem>>, vector<1x128xf32>
    %16 = vector.broadcast %15 : vector<1x128xf32> to vector<128x128xf32>
    %17 = arith.addf %14, %16 : vector<128x128xf32>
    %c0_15 = arith.constant 0 : index
    %c0_16 = arith.constant 0 : index
    %18 = vector.load %arg8[%c0_15, %c0_16] : memref<128x128xf32, #tpu.memory_space<vmem>>, vector<128x128xf32>
    tpu.vector_store %arg8[%c0_15, %c0_16], %17 {strides = array<i32>} : memref<128x128xf32, #tpu.memory_space<vmem>>, vector<128x128xf32>,
    return
  }
  func.func @transform_0(%arg0: i32) -> (i32, i32) {
    %c0_i32 = arith.constant 0 : i32
    %c0_i32_0 = arith.constant 0 : i32
    return %arg0, %c0_i32 : i32, i32
  }
  func.func @transform_1(%arg0: i32) -> (i32, i32) {
    %c0_i32 = arith.constant 0 : i32
    %c0_i32_0 = arith.constant 0 : i32
    %c0_i32_1 = arith.constant 0 : i32
    return %c0_i32, %c0_i32_0 : i32, i32
  }
  func.func @transform_2(%arg0: i32) -> (i32, i32) {
    %c0_i32 = arith.constant 0 : i32
    %c0_i32_0 = arith.constant 0 : i32
    %c0_i32_1 = arith.constant 0 : i32
    return %c0_i32, %c0_i32_0 : i32, i32
  }
  func.func @transform_3(%arg0: i32) -> (i32, i32) {
    %c0_i32 = arith.constant 0 : i32
    %c0_i32_0 = arith.constant 0 : i32
    %c0_i32_1 = arith.constant 0 : i32
    return %c0_i32, %c0_i32_0 : i32, i32
  }
  func.func @transform_4(%arg0: i32) -> (i32, i32) {
    %c0_i32 = arith.constant 0 : i32
    %c0_i32_0 = arith.constant 0 : i32
    %c0_i32_1 = arith.constant 0 : i32
    return %c0_i32, %c0_i32_0 : i32, i32
  }
  func.func @transform_5(%arg0: i32) -> (i32, i32) {
    %c0_i32 = arith.constant 0 : i32
    %c0_i32_0 = arith.constant 0 : i32
    %c0_i32_1 = arith.constant 0 : i32
    return %c0_i32, %c0_i32_0 : i32, i32
  }
  func.func @transform_6(%arg0: i32) -> (i32, i32) {
    %c0_i32 = arith.constant 0 : i32
    %c0_i32_0 = arith.constant 0 : i32
    %c0_i32_1 = arith.constant 0 : i32
    return %c0_i32, %c0_i32_0 : i32, i32
  }
  func.func @transform_7(%arg0: i32) -> (i32, i32) {
    %c0_i32 = arith.constant 0 : i32
    %c0_i32_0 = arith.constant 0 : i32
    return %arg0, %c0_i32 : i32, i32
  }
}

</mosaic_0001>

<bundles_post_ra>
// kernel: tpu_custom_call.1
= control target key start
LH: loop header
LB: loop body
LE: loop exit
PB: predicated region body
PF: predicated region fallthrough
CT: control target
= control target key end

     0   :  { %s7359_s0 = inlined_call_operand.hbm [shape: f32[256,3200], index: 0, kind: input, shape index: {}]   ;;  %s7360_s1 = inlined_call_operand.hbm [shape: f32[3200,256], index: 1, kind: input, shape index: {}]   ;;  %s7361_s2 = inlined_call_operand.hbm [shape: f32[1,256], index: 2, kind: input, shape index: {}]   ;;  %s7362_s3 = inlined_call_operand.vmem [shape: f32[256,64], index: 3, kind: input, shape index: {}]   ;;  %s7363_s4 = inlined_call_operand.hbm [shape: f32[1,64], index: 4, kind: input, shape index: {}]   ;;  %s7364_s5 = inlined_call_operand.hbm [shape: f32[64,128], index: 5, kind: input, shape index: {}]   ;;  %s7365_s6 = inlined_call_operand.hbm [shape: f32[1,128], index: 6, kind: input, shape index: {}]   ;;  %s7366_s7 = inlined_call_operand.hbm [shape: f32[256,128], index: 7, kind: output, shape index: {}]  }
   0x1   :  { %7371 = sst [smem:[#allocation27_spill]] %s7360_s1 }
   0x2   :  { %12 = vsyncpa [#allocation3], 0 }
   0x3   :  { %14 = vsyncpa [#allocation3 + $0x1], 0 }
   0x4   :  { %15 = vsyncpa [#allocation6], 0 }
   0x5   :  { %16 = vsyncpa [#allocation9], 0 }
   0x6   :  { %17 = vsyncpa [#allocation12], 0 }
   0x7   :  { %18 = vsyncpa [#allocation4], 0 }
   0x8   :  { %20 = vsyncpa [#allocation4 + $0x1], 0  ;;  %s6145_s24 = smov 0   ;;  %s6147_s25 = smov 0  }
   0x9   :  { %s6149_s26 = smov 0   ;;  %s6151_s27 = smov 0  }
   0xa LB: > { %s6089_s28 = smov [#allocation5]   ;;  %s6166_s30 = sadd.s32 4294967295, %s6087_s27   ;;  %s6087_s27 = sphi %s6151_s27, %s7410_s27   ;;  %s6083_s26 = sphi %s6149_s26, %s7409_s26   ;;  %s6079_s25 = sphi %s6147_s25, %s7408_s25   ;;  %s6075_s24 = sphi %s6145_s24, %s7407_s24  }
   0xb   : > { %s221_s29 = sshll.u32 %s6089_s28, 4  ;;  %p4265_p0 = scmp.ge.s32.totalorder %s6087_s27, 1  ;;  %s6171_s29 = int_to_ptr.vmem [resolvable:$true] %s221_s29 }
   0xc   : > { %p7367_p1 = scmp.eq.s32.totalorder %s6166_s30, 0  ;;  %p209_p2 = scmp.lt.s32.totalorder %s6087_s27, 3 }
   0xd   : > { %s6090_s9 = smov [#allocation8]   ;;  %s6091_s12 = smov [#allocation7]  }
   0xe   : > { %p6173_p3 = pnand %p4265_p0, %p209_p2  ;;  %s249_s10 = sshll.u32 %s6090_s9, 4  ;;  %s6186_s10 = int_to_ptr.vmem [resolvable:$true] %s249_s10 }
   0xf   : > { %s235_s13 = sshll.u32 %s6091_s12, 4  ;;  %s7374_s1 = sld [smem:[#allocation27_spill]]  ;;  %s6188_s13 = int_to_ptr.vmem [resolvable:$true] %s235_s13 }
  0x10   : > { %s7372_s8 = scalar_select %p6173_p3, 1, 0 }
  0x11   : > { %p5757_p5 = pneg %p6173_p3 }
  0x13   : > { %p6182_p6 = pnand %p5757_p5, %p7367_p1 }
  0x15   : > { %s5839_s16 = scalar_lea.hbm %s7374_s1, 102400  ;;  %p6198_p8 = pneg %p6182_p6 }
  0x16   : > { %p5840_p7 = scmp.ne.s32.totalorder %s7374_s1, %s5839_s16  ;;  %p5846_p11 = scmp.lt.u32.totalorder %s5839_s16, %s7374_s1 }
  0x18   : > { %p5842_p9 = pnand %p6198_p8, %p5840_p7 }
  0x1a   : > { %p5843_p10 = pneg %p5842_p9 }
  0x1c   : > { %p5848_p12 = pnand %p5846_p11, %p5843_p10 }
  0x1e   : > { %5851 = shalt.err (!%p5848_p12)
}
  0x1f   : > { %s5852_s22 = scalar_lea.vmem %s6171_s29, 102400  ;;  %p5860_p5 = scmp.lt.s32.totalorder %s6171_s29, %s6171_s29 }
  0x20   : > { %p5853_p13 = scmp.ne.s32.totalorder %s6171_s29, %s5852_s22  ;;  %p5861_p4 = scmp.lt.s32.totalorder %s5852_s22, %s5852_s22 }
  0x22   : > { %p5855_p0 = pnand %p5853_p13, %p6198_p8  ;;  %p5862_p7 = por %p5861_p4, %p5860_p5 }
  0x24   : > { %p5856_p2 = pneg %p5855_p0 }
  0x26   : > { %p5863_p9 = pnand %p5862_p7, %p5856_p2 }
  0x28   : > { %5866 = shalt.err (!%p5863_p9)
}
  0x29   : > { %s6092_s23 = smov 256   ;;  %s6093_s28 = smov 16  }
  0x2a   : > { %5760 = dma.hbm_to_vmem [thread:$0]  (!%p6182_p6), %s7374_s1, 102400, %s6171_s29, [#allocation6], %s6092_s23, %s6092_s23, %s6093_s28  }
  0x2b   : > { %s5867_s16 = scalar_lea.hbm %s7363_s4, 16 }
  0x2c   : > { %p5868_p4 = scmp.ne.s32.totalorder %s7363_s4, %s5867_s16  ;;  %p5874_p12 = scmp.lt.u32.totalorder %s5867_s16, %s7363_s4 }
  0x2e   : > { %p5870_p10 = pnand %p5868_p4, %p6198_p8 }
  0x30   : > { %p5871_p11 = pneg %p5870_p10 }
  0x32   : > { %p5876_p13 = pnand %p5874_p12, %p5871_p11 }
  0x34   : > { %5879 = shalt.err (!%p5876_p13)
}
  0x35   : > { %s5880_s29 = scalar_lea.vmem %s6186_s10, 16  ;;  %s5887_s22 = scalar_lea.vmem %s6186_s10, 32 }
  0x36   : > { %p5881_p0 = scmp.ne.s32.totalorder %s6186_s10, %s5880_s29  ;;  %p5888_p7 = scmp.lt.s32.totalorder %s6186_s10, %s6186_s10 }
  0x37   : > { %p5889_p9 = scmp.lt.s32.totalorder %s5887_s22, %s5880_s29 }
  0x38   : > { %p5883_p2 = pnand %p5881_p0, %p6198_p8 }
  0x39   : > { %p5890_p4 = por %p5889_p9, %p5888_p7 }
  0x3a   : > { %p5884_p5 = pneg %p5883_p2 }
  0x3c   : > { %p5891_p10 = pnand %p5890_p4, %p5884_p5 }
  0x3e   : > { %5894 = shalt.err (!%p5891_p10)
}
  0x3f   : > { %5766 = dma.hbm_to_vmem [thread:$0]  (!%p6182_p6), %s7363_s4, 16, %s6186_s10, [#allocation9]  }
  0x40   : > { %s5895_s14 = scalar_lea.hbm %s7361_s2, 32 }
  0x41   : > { %p5896_p11 = scmp.ne.s32.totalorder %s7361_s2, %s5895_s14  ;;  %p5902_p0 = scmp.lt.u32.totalorder %s5895_s14, %s7361_s2 }
  0x43   : > { %p5898_p12 = pnand %p5896_p11, %p6198_p8 }
  0x45   : > { %p5899_p13 = pneg %p5898_p12 }
  0x47   : > { %p5904_p2 = pnand %p5902_p0, %p5899_p13 }
  0x49   : > { %5907 = shalt.err (!%p5904_p2)
}
  0x4a   : > { %s5908_s10 = scalar_lea.vmem %s6188_s13, 32  ;;  %p5916_p4 = scmp.lt.s32.totalorder %s6188_s13, %s6188_s13 }
  0x4b   : > { %p5909_p5 = scmp.ne.s32.totalorder %s6188_s13, %s5908_s10  ;;  %p5917_p10 = scmp.lt.s32.totalorder %s5908_s10, %s5908_s10 }
  0x4d   : > { %p5911_p7 = pnand %p5909_p5, %p6198_p8  ;;  %p5918_p11 = por %p5917_p10, %p5916_p4 }
  0x4f   : > { %p5912_p9 = pneg %p5911_p7 }
  0x51   : > { %p5919_p12 = pnand %p5918_p11, %p5912_p9 }
  0x53   : > { %5922 = shalt.err (!%p5919_p12)
}
  0x54   : > { %5763 = dma.hbm_to_vmem [thread:$0]  (!%p6182_p6), %s7361_s2, 32, %s6188_s13, [#allocation6]  }
  0x55   : > { %s6094_s29 = smov [#allocation10]   ;;  %s5923_s9 = scalar_lea.hbm %s7364_s5, 1024 }
  0x56   : > { %s259_s22 = sshll.u32 %s6094_s29, 4  ;;  %p5924_p13 = scmp.ne.s32.totalorder %s7364_s5, %s5923_s9  ;;  %s260_s22 = int_to_ptr.vmem [resolvable:$true] %s259_s22 }
  0x57   : > { %p5930_p5 = scmp.lt.u32.totalorder %s5923_s9, %s7364_s5 }
  0x58   : > { %p5926_p0 = pnand %p5924_p13, %p6198_p8 }
  0x5a   : > { %p5927_p2 = pneg %p5926_p0 }
  0x5c   : > { %p5932_p7 = pnand %p5930_p5, %p5927_p2 }
  0x5e   : > { %5935 = shalt.err (!%p5932_p7)
}
  0x5f   : > { %s5936_s13 = scalar_lea.vmem %s260_s22, 1024  ;;  %p5944_p11 = scmp.lt.s32.totalorder %s260_s22, %s260_s22 }
  0x60   : > { %p5937_p9 = scmp.ne.s32.totalorder %s260_s22, %s5936_s13  ;;  %p5945_p12 = scmp.lt.s32.totalorder %s5936_s13, %s5936_s13 }
  0x62   : > { %p5939_p4 = pnand %p5937_p9, %p6198_p8  ;;  %p5946_p1 = por %p5945_p12, %p5944_p11 }
  0x64   : > { %p5940_p10 = pneg %p5939_p4 }
  0x66   : > { %p5947_p3 = pnand %p5946_p1, %p5940_p10 }
  0x68   : > { %5950 = shalt.err (!%p5947_p3)
}
  0x69   : > { %s6095_s17 = smov 128   ;;  %s6096_s18 = smov 8  }
  0x6a   : > { %5769 = dma.hbm_to_vmem [thread:$0]  (!%p6182_p6), %s7364_s5, 1024, %s260_s22, [#allocation9], %s6095_s17, %s6095_s17, %s6096_s18  }
  0x6b   : > { %s6097_s21 = smov [#allocation11]   ;;  %s5951_s9 = scalar_lea.hbm %s7365_s6, 16 }
  0x6c   : > { %s273_s29 = sshll.u32 %s6097_s21, 4  ;;  %p5952_p1 = scmp.ne.s32.totalorder %s7365_s6, %s5951_s9  ;;  %s274_s29 = int_to_ptr.vmem [resolvable:$true] %s273_s29 }
  0x6d   : > { %p5958_p0 = scmp.lt.u32.totalorder %s5951_s9, %s7365_s6 }
  0x6e   : > { %p5954_p3 = pnand %p5952_p1, %p6198_p8 }
  0x70   : > { %p5955_p13 = pneg %p5954_p3 }
  0x72   : > { %p5960_p2 = pnand %p5958_p0, %p5955_p13 }
  0x74   : > { %5963 = shalt.err (!%p5960_p2)
}
  0x75   : > { %s5964_s22 = scalar_lea.vmem %s274_s29, 16  ;;  %s5971_s13 = scalar_lea.vmem %s274_s29, 32 }
  0x76   : > { %p5965_p5 = scmp.ne.s32.totalorder %s274_s29, %s5964_s22  ;;  %p5972_p4 = scmp.lt.s32.totalorder %s274_s29, %s274_s29 }
  0x77   : > { %p5973_p10 = scmp.lt.s32.totalorder %s5971_s13, %s5964_s22 }
  0x78   : > { %p5967_p7 = pnand %p5965_p5, %p6198_p8 }
  0x79   : > { %p5974_p11 = por %p5973_p10, %p5972_p4 }
  0x7a   : > { %p5968_p9 = pneg %p5967_p7 }
  0x7c   : > { %p5975_p12 = pnand %p5974_p11, %p5968_p9 }
  0x7e   : > { %5978 = shalt.err (!%p5975_p12)
}
  0x7f   : > { %5772 = dma.hbm_to_vmem [thread:$0]  (!%p6182_p6), %s7365_s6, 16, %s274_s29, [#allocation12]  }
  0x80   : > { %s4264_s19 = sadd.s32 4294967294, %s6087_s27   ;;  %s6304_s11 = sadd.s32 1, %s6087_s27  }
  0x81   : > { %s33_s10 = sadd.s32 1, %s6083_s26  ;;  %s30_s20 = ssub.s32 %s6087_s27, %s6304_s11 }
  0x82   : > { %p40_p8 = scmp.ne.s32.totalorder %s6083_s26, %s6079_s25  ;;  %p31_p1 = scmp.eq.s32.totalorder %s30_s20, 0 }
  0x83   : > { %p41_p3 = scmp.eq.s32.totalorder %s6087_s27, 0  ;;  %p46_p13 = scmp.ne.s32.totalorder %s6079_s25, %s6075_s24 }
  0x84   : > { %p196_p0 = scmp.eq.s32.totalorder %s6166_s30, 1  ;;  %p7376_p5 = scmp.eq.s32.totalorder %s6166_s30, 0 }
  0x85   : > { %s6316_s21 = scalar_select %p31_p1, %s6083_s26, %s33_s10  }
  0x86   : > { %p42_p2 = por %p41_p3, %p40_p8  ;;  %p6320_p7 = por %p7376_p5, %p46_p13 }
  0x87   : > { %p6324_p6 = por %p196_p0, %p40_p8  ;;  %p202_p9 = scmp.eq.s32.totalorder %s4264_s19, 1 }
  0x88   : > { %p5786_p4 = scmp.lt.s32.totalorder %s6087_s27, 2  ;;  %s284_s28 = sand.u32 1, %s6083_s26  }
  0x89   : > { %s7378_s29 = scalar_select %p6324_p6, 1, 0 }
  0x8a   : > { %p6330_p10 = por %p202_p9, %p46_p13  ;;  %s5730_s12 = smul.u32 3200, %s284_s28 }
  0x8b   : > { %p6334_p11 = pnand %p5786_p4, %p42_p2  ;;  %s5731_s15 = smul.u32 51200, %s6087_s27 }
  0x8c   : > { %s7379_s9 = scalar_select %p6330_p10, 1, 0 }
  0x8d   : > { %s6342_s13 = scalar_lea.hbm %s7359_s0, %s5731_s15  ;;  %s288_s17 = scalar_lea.vmem [#allocation2], %s5730_s12 }
  0x8e   : > { %s296_s18 = sshll.u32 %s288_s17, 4  ;;  %s6346_s19 = scalar_lea.sflag [#allocation3], %s284_s28  ;;  %s6344_s18 = int_to_ptr.vmem [resolvable:$true] %s296_s18 }
  0x8f   : > { %s5979_s10 = scalar_lea.hbm %s6342_s13, 51200  ;;  %p5981_p8 = pneg %p6334_p11 }
  0x90   : > { %p5980_p12 = scmp.ne.s32.totalorder %s6342_s13, %s5979_s10  ;;  %s5984_s16 = scalar_lea.hbm %s7359_s0, 102400 }
  0x91   : > { %p5985_p13 = scmp.lt.u32.totalorder %s6342_s13, %s7359_s0  ;;  %p5986_p0 = scmp.lt.u32.totalorder %s5984_s16, %s5979_s10 }
  0x92   : > { %p5982_p1 = pnand %p5981_p8, %p5980_p12  ;;  %p5988_p5 = scmp.lt.u32.totalorder %s5979_s10, %s6342_s13 }
  0x93   : > { %p5987_p2 = por %p5986_p0, %p5985_p13 }
  0x94   : > { %p5983_p3 = pneg %p5982_p1 }
  0x95   : > { %p5989_p9 = por %p5988_p5, %p5987_p2 }
  0x97   : > { %p5990_p4 = pnand %p5989_p9, %p5983_p3 }
  0x99   : > { %5993 = shalt.err (!%p5990_p4)
}
  0x9a   : > { %s5994_s28 = scalar_lea.vmem %s6344_s18, 51200  ;;  %s6098_s12 = smov [#allocation2]  }
  0x9b   : > { %p5995_p12 = scmp.ne.s32.totalorder %s6344_s18, %s5994_s28  ;;  %s5999_s17 = sshll.u32 %s6098_s12, 4  ;;  %s6000_s17 = int_to_ptr.vmem [resolvable:$false] %s5999_s17 }
  0x9c   : > { %s6001_s1 = scalar_lea.vmem %s6000_s17, 102400  ;;  %p6002_p6 = scmp.lt.s32.totalorder %s6344_s18, %s6000_s17 }
  0x9d   : > { %p5997_p1 = pnand %p5995_p12, %p5981_p8  ;;  %p6003_p13 = scmp.lt.s32.totalorder %s6001_s1, %s5994_s28 }
  0x9f   : > { %p5998_p10 = pneg %p5997_p1  ;;  %p6004_p0 = por %p6003_p13, %p6002_p6 }
  0xa1   : > { %p6005_p2 = pnand %p6004_p0, %p5998_p10 }
  0xa3   : > { %6008 = shalt.err (!%p6005_p2)
}
  0xa4   : > { %s6099_s10 = smov 3200   ;;  %s6100_s20 = smov 200  }
  0xa5   : > { %5776 = dma.hbm_to_vmem [thread:$0]  (!%p6334_p11), %s6342_s13, 51200, %s6344_s18, %s6346_s19, %s6099_s10, %s6099_s10, %s6100_s20  }
  0xa6   : > { %p7381_p8 = scmp.ne.s32.totalorder %s7372_s8, 0 }
  0xa8   : > { %308 = sbr.rel (%p7381_p8) target bundleno = 1434 (0x59a), region = 48 }
  0xaf   : > { %s6377_s15 = sand.u32 1, %s6079_s25  }
  0xb0   : > { %s5732_s16 = smul.u32 3200, %s6377_s15  ;;  %s311_s22 = scalar_lea.sflag [#allocation3], %s6377_s15 }
  0xb2   : > { %s6381_s28 = scalar_lea.vmem [#allocation2], %s5732_s16 }
  0xb3   : > { %6054 = dma.done.wait (%p6320_p7), %s311_s22, 51200  }
  0xb4   : > { %6056 = vsyncadd (%p6320_p7), %s311_s22, 4294916096  ;;  %p7382_p6 = scmp.eq.s32.totalorder %s6166_s30, 0 }
  0xb6   : > { %6058 = dma.done.wait (%p7382_p6), [#allocation6], 102432   ;;  %p7383_p10 = pmov %p7382_p6 }
  0xb7   : > { %p7384_p11 = pmov %p7382_p6 }
  0xb8   : > { %6060 = vsyncadd (%p7383_p10), [#allocation6], 4294864864 }
  0xb9   : > { %6062 = dma.done.wait (%p7384_p11), [#allocation9], 1040   ;;  %p7385_p3 = pmov %p7382_p6 }
  0xbb   : > { %6064 = vsyncadd (%p7385_p3), [#allocation9], 4294966256  ;;  %p7386_p5 = pmov %p7385_p3 }
  0xbc   : > { %p7387_p9 = pmov %p7385_p3 }
  0xbd   : > { %6066 = dma.done.wait (%p7386_p5), [#allocation12], 16  }
  0xbe   : > { %6068 = vsyncadd (%p7387_p9), [#allocation12], 4294967280  ;;  %v768_v0 = vld [vmem:[#allocation5 + $0x8] sm:$0xff]  ;;  %v770_v1 = vld [vmem:[#allocation5 + $0x18] sm:$0xff]  ;;  %vm3919_vm0 = vcmask 523264   ;;  %s4281_s1 = sshll.u32 %s6377_s15, 7 }
  0xbf   : > { %v1088_v2 = vld [vmem:[#allocation5 + $0xa08] sm:$0xff]  ;;  %v4450_v3 = vpack.c.bf16 %v770_v1, %v768_v0  ;;  %v1090_v4 = vld [vmem:[#allocation5 + $0xa18] sm:$0xff]  ;;  %v767_v5 = vld [vmem:[#allocation5] sm:$0xff]  ;;  %s7290_s10 = scalar_lea.vmem [#allocation13], %s4281_s1  ;;  %s4305_s20 = sshll.u32 %s6166_s30, 11 }
  0xc0   : > { %v769_v6 = vld [vmem:[#allocation5 + $0x10] sm:$0xff]  ;;  %v4770_v7 = vpack.c.bf16 %v1090_v4, %v1088_v2  ;;  %v1087_v9 = vld [vmem:[#allocation5 + $0xa00] sm:$0xff]  ;;  %v772_v11 = vld [vmem:[#allocation5 + $0x28] sm:$0xff]  ;;  %s4143_s16 = sshll.u32 %s7290_s10, 4  ;;  %s7311_s8 = scalar_lea.hbm %s7366_s7, %s4305_s20  ;;  %s7313_s16 = int_to_ptr.vmem [resolvable:$true] %s4143_s16 }
  0xc1   : > { %v4452_v8 = vpack.c.bf16 %v769_v6, %v767_v5  ;;  %v1089_v10 = vld [vmem:[#allocation5 + $0xa10] sm:$0xff]  ;;  %4451 = vmatprep.subr.bf16.mxu1 %v4450_v3  ;;  %v774_v13 = vld [vmem:[#allocation5 + $0x38] sm:$0xff]  ;;  %v1092_v14 = vld [vmem:[#allocation5 + $0xa28] sm:$0xff]  ;;  %s4130_s23 = scalar_lea.sflag [#allocation4], %s6377_s15  ;;  %s6009_s14 = scalar_lea.vmem %s7313_s16, 2048 }
  0xc2   : > { %v4772_v12 = vpack.c.bf16 %v1089_v10, %v1087_v9  ;;  %v1094_v15 = vld [vmem:[#allocation5 + $0xa38] sm:$0xff]  ;;  %4771 = vmatprep.subr.bf16.mxu0 %v4770_v7  ;;  %v4454_v16 = vpack.c.bf16 %v774_v13, %v772_v11  ;;  %v771_v18 = vld [vmem:[#allocation5 + $0x20] sm:$0xff]  ;;  %v773_v19 = vld [vmem:[#allocation5 + $0x30] sm:$0xff]  ;;  %p6010_p7 = scmp.ne.s32.totalorder %s7313_s16, %s6009_s14  ;;  %p7404_p4 = scmp.ne.s32.totalorder %s7378_s29, 0 }
  0xc3   : > { %4453 = vmatpush1.bf16.msra.mxu1 %v4452_v8  ;;  %v4774_v17 = vpack.c.bf16 %v1094_v15, %v1092_v14  ;;  %v1091_v20 = vld [vmem:[#allocation5 + $0xa20] sm:$0xff]  ;;  %v4456_v21 = vpack.c.bf16 %v773_v19, %v771_v18  ;;  %v1093_v22 = vld [vmem:[#allocation5 + $0xa30] sm:$0xff]  ;;  %v776_v23 = vld [vmem:[#allocation5 + $0x48] sm:$0xff]  ;;  %s6102_s30 = smov [#allocation13]  }
  0xc4   : > { %4773 = vmatpush1.bf16.msra.mxu0 %v4772_v12  ;;  %v778_v24 = vld [vmem:[#allocation5 + $0x58] sm:$0xff]  ;;  %4455 = vmatprep.subr.bf16.mxu1 %v4454_v16  ;;  %v4776_v25 = vpack.c.bf16 %v1093_v22, %v1091_v20  ;;  %v1096_v27 = vld [vmem:[#allocation5 + $0xa48] sm:$0xff]  ;;  %v775_v29 = vld [vmem:[#allocation5 + $0x40] sm:$0xff]  ;;  %p6011_p12 = pnand %p6010_p7, %p7404_p4  ;;  %s6013_s13 = sshll.u32 %s6102_s30, 4  ;;  %s6014_s13 = int_to_ptr.vmem [resolvable:$false] %s6013_s13 }
  0xc5   : > { %4775 = vmatprep.subr.bf16.mxu0 %v4774_v17  ;;  %v4458_v26 = vpack.c.bf16 %v778_v24, %v776_v23  ;;  %v1098_v28 = vld [vmem:[#allocation5 + $0xa58] sm:$0xff]  ;;  %v777_v31 = vld [vmem:[#allocation5 + $0x50] sm:$0xff]  ;;  %v1095_v32 = vld [vmem:[#allocation5 + $0xa40] sm:$0xff]  ;;  %s6015_s18 = scalar_lea.vmem %s6014_s13, 4096  ;;  %p6016_p13 = scmp.lt.s32.totalorder %s7313_s16, %s6014_s13 }
  0xc6   : > { %v4778_v30 = vpack.c.bf16 %v1098_v28, %v1096_v27  ;;  %v1097_v33 = vld [vmem:[#allocation5 + $0xa50] sm:$0xff]  ;;  %v4460_v34 = vpack.c.bf16 %v777_v31, %v775_v29  ;;  %v780_v35 = vld [vmem:[#allocation5 + $0x68] sm:$0xff]  ;;  %v782_v36 = vld [vmem:[#allocation5 + $0x78] sm:$0xff]  ;;  %p6012_p1 = pneg %p6011_p12  ;;  %p6017_p0 = scmp.lt.s32.totalorder %s6015_s18, %s6009_s14 }
  0xc7   : > { %4457 = vmatpush1.bf16.msra.mxu1 %v4456_v21  ;;  %v1100_v37 = vld [vmem:[#allocation5 + $0xa68] sm:$0xff]  ;;  %v4780_v38 = vpack.c.bf16 %v1097_v33, %v1095_v32  ;;  %v4462_v39 = vpack.c.bf16 %v782_v36, %v780_v35  ;;  %v1102_v40 = vld [vmem:[#allocation5 + $0xa78] sm:$0xff]  ;;  %v779_v41 = vld [vmem:[#allocation5 + $0x60] sm:$0xff] }
  0xc8   : > { %4777 = vmatpush1.bf16.msra.mxu0 %v4776_v25  ;;  %4459 = vmatprep.subr.bf16.mxu1 %v4458_v26  ;;  %v781_v42 = vld [vmem:[#allocation5 + $0x70] sm:$0xff]  ;;  %v4782_v43 = vpack.c.bf16 %v1102_v40, %v1100_v37  ;;  %v1099_v44 = vld [vmem:[#allocation5 + $0xa60] sm:$0xff]  ;;  %v784_v46 = vld [vmem:[#allocation5 + $0x88] sm:$0xff]  ;;  %p6018_p2 = por %p6017_p0, %p6016_p13 }
  0xc9   : > { %4779 = vmatprep.subr.bf16.mxu0 %v4778_v30  ;;  %v1101_v45 = vld [vmem:[#allocation5 + $0xa70] sm:$0xff]  ;;  %v786_v47 = vld [vmem:[#allocation5 + $0x98] sm:$0xff]  ;;  %v1104_v48 = vld [vmem:[#allocation5 + $0xa88] sm:$0xff]  ;;  %v4464_v50 = vpack.c.bf16 %v781_v42, %v779_v41 }
  0xca   : > { %v1106_v49 = vld [vmem:[#allocation5 + $0xa98] sm:$0xff]  ;;  %v4784_v51 = vpack.c.bf16 %v1101_v45, %v1099_v44  ;;  %v4466_v52 = vpack.c.bf16 %v786_v47, %v784_v46  ;;  %v783_v53 = vld [vmem:[#allocation5 + $0x80] sm:$0xff]  ;;  %v785_v54 = vld [vmem:[#allocation5 + $0x90] sm:$0xff]  ;;  %p6019_p8 = pnand %p6018_p2, %p6012_p1 }
  0xcb   : > { %4461 = vmatpush1.bf16.msra.mxu1 %v4460_v34  ;;  %v1103_v55 = vld [vmem:[#allocation5 + $0xa80] sm:$0xff]  ;;  %v4786_v56 = vpack.c.bf16 %v1106_v49, %v1104_v48  ;;  %v1105_v57 = vld [vmem:[#allocation5 + $0xa90] sm:$0xff]  ;;  %v788_v58 = vld [vmem:[#allocation5 + $0xa8] sm:$0xff]  ;;  %v4468_v62 = vpack.c.bf16 %v785_v54, %v783_v53 }
  0xcc   : > { %4781 = vmatpush1.bf16.msra.mxu0 %v4780_v38  ;;  %4463 = vmatprep.subr.bf16.mxu1 %v4462_v39  ;;  %v790_v59 = vld [vmem:[#allocation5 + $0xb8] sm:$0xff]  ;;  %v1108_v60 = vld [vmem:[#allocation5 + $0xaa8] sm:$0xff]  ;;  %v4788_v63 = vpack.c.bf16 %v1105_v57, %v1103_v55  ;;  %v787_v1 = vld [vmem:[#allocation5 + $0xa0] sm:$0xff] }
  0xcd   : > { %4783 = vmatprep.subr.bf16.mxu0 %v4782_v43  ;;  %v1110_v61 = vld [vmem:[#allocation5 + $0xab8] sm:$0xff]  ;;  %v4470_v0 = vpack.c.bf16 %v790_v59, %v788_v58  ;;  %v789_v2 = vld [vmem:[#allocation5 + $0xb0] sm:$0xff]  ;;  %v1107_v3 = vld [vmem:[#allocation5 + $0xaa0] sm:$0xff] }
  0xce   : > { %v4790_v4 = vpack.c.bf16 %v1110_v61, %v1108_v60  ;;  %v1109_v5 = vld [vmem:[#allocation5 + $0xab0] sm:$0xff]  ;;  %v792_v6 = vld [vmem:[#allocation5 + $0xc8] sm:$0xff]  ;;  %v794_v7 = vld [vmem:[#allocation5 + $0xd8] sm:$0xff]  ;;  %v4472_v10 = vpack.c.bf16 %v789_v2, %v787_v1 }
  0xcf   : > { %4465 = vmatpush1.bf16.msra.mxu1 %v4464_v50  ;;  %v1112_v8 = vld [vmem:[#allocation5 + $0xac8] sm:$0xff]  ;;  %v1114_v9 = vld [vmem:[#allocation5 + $0xad8] sm:$0xff]  ;;  %v4792_v11 = vpack.c.bf16 %v1109_v5, %v1107_v3  ;;  %v4474_v12 = vpack.c.bf16 %v794_v7, %v792_v6  ;;  %v791_v13 = vld [vmem:[#allocation5 + $0xc0] sm:$0xff] }
  0xd0   : > { %4785 = vmatpush1.bf16.msra.mxu0 %v4784_v51  ;;  %4467 = vmatprep.subr.bf16.mxu1 %v4466_v52  ;;  %v793_v14 = vld [vmem:[#allocation5 + $0xd0] sm:$0xff]  ;;  %v1111_v15 = vld [vmem:[#allocation5 + $0xac0] sm:$0xff]  ;;  %v4794_v16 = vpack.c.bf16 %v1114_v9, %v1112_v8  ;;  %v796_v18 = vld [vmem:[#allocation5 + $0xe8] sm:$0xff] }
  0xd1   : > { %4787 = vmatprep.subr.bf16.mxu0 %v4786_v56  ;;  %v1113_v17 = vld [vmem:[#allocation5 + $0xad0] sm:$0xff]  ;;  %v798_v19 = vld [vmem:[#allocation5 + $0xf8] sm:$0xff]  ;;  %v1116_v20 = vld [vmem:[#allocation5 + $0xae8] sm:$0xff]  ;;  %v4476_v22 = vpack.c.bf16 %v793_v14, %v791_v13 }
  0xd2   : > { %v1118_v21 = vld [vmem:[#allocation5 + $0xaf8] sm:$0xff]  ;;  %v4796_v23 = vpack.c.bf16 %v1113_v17, %v1111_v15  ;;  %v4478_v24 = vpack.c.bf16 %v798_v19, %v796_v18  ;;  %v795_v25 = vld [vmem:[#allocation5 + $0xe0] sm:$0xff]  ;;  %v797_v26 = vld [vmem:[#allocation5 + $0xf0] sm:$0xff] }
  0xd3   : > { %4469 = vmatpush1.bf16.msra.mxu1 %v4468_v62  ;;  %v1115_v27 = vld [vmem:[#allocation5 + $0xae0] sm:$0xff]  ;;  %v4798_v28 = vpack.c.bf16 %v1118_v21, %v1116_v20  ;;  %v1117_v29 = vld [vmem:[#allocation5 + $0xaf0] sm:$0xff]  ;;  %v800_v30 = vld [vmem:[#allocation5 + $0x108] sm:$0xff]  ;;  %v4480_v34 = vpack.c.bf16 %v797_v26, %v795_v25 }
  0xd4   : > { %4789 = vmatpush1.bf16.msra.mxu0 %v4788_v63  ;;  %4471 = vmatprep.subr.bf16.mxu1 %v4470_v0  ;;  %v802_v31 = vld [vmem:[#allocation5 + $0x118] sm:$0xff]  ;;  %v1120_v32 = vld [vmem:[#allocation5 + $0xb08] sm:$0xff]  ;;  %v4800_v35 = vpack.c.bf16 %v1117_v29, %v1115_v27  ;;  %v799_v37 = vld [vmem:[#allocation5 + $0x100] sm:$0xff] }
  0xd5   : > { %4791 = vmatprep.subr.bf16.mxu0 %v4790_v4  ;;  %v1122_v33 = vld [vmem:[#allocation5 + $0xb18] sm:$0xff]  ;;  %v4482_v36 = vpack.c.bf16 %v802_v31, %v800_v30  ;;  %v801_v38 = vld [vmem:[#allocation5 + $0x110] sm:$0xff]  ;;  %v1119_v39 = vld [vmem:[#allocation5 + $0xb00] sm:$0xff] }
  0xd6   : > { %v4802_v40 = vpack.c.bf16 %v1122_v33, %v1120_v32  ;;  %v1121_v41 = vld [vmem:[#allocation5 + $0xb10] sm:$0xff]  ;;  %v804_v42 = vld [vmem:[#allocation5 + $0x128] sm:$0xff]  ;;  %v806_v43 = vld [vmem:[#allocation5 + $0x138] sm:$0xff]  ;;  %v4484_v46 = vpack.c.bf16 %v801_v38, %v799_v37 }
  0xd7   : > { %4473 = vmatpush1.bf16.msra.mxu1 %v4472_v10  ;;  %v1124_v44 = vld [vmem:[#allocation5 + $0xb28] sm:$0xff]  ;;  %v1126_v45 = vld [vmem:[#allocation5 + $0xb38] sm:$0xff]  ;;  %v4804_v47 = vpack.c.bf16 %v1121_v41, %v1119_v39  ;;  %v4486_v48 = vpack.c.bf16 %v806_v43, %v804_v42  ;;  %v803_v49 = vld [vmem:[#allocation5 + $0x120] sm:$0xff] }
  0xd8   : > { %4793 = vmatpush1.bf16.msra.mxu0 %v4792_v11  ;;  %4475 = vmatprep.subr.bf16.mxu1 %v4474_v12  ;;  %v805_v50 = vld [vmem:[#allocation5 + $0x130] sm:$0xff]  ;;  %v1123_v51 = vld [vmem:[#allocation5 + $0xb20] sm:$0xff]  ;;  %v4806_v52 = vpack.c.bf16 %v1126_v45, %v1124_v44  ;;  %v808_v54 = vld [vmem:[#allocation5 + $0x148] sm:$0xff] }
  0xd9   : > { %4795 = vmatprep.subr.bf16.mxu0 %v4794_v16  ;;  %v1125_v53 = vld [vmem:[#allocation5 + $0xb30] sm:$0xff]  ;;  %v810_v55 = vld [vmem:[#allocation5 + $0x158] sm:$0xff]  ;;  %v1128_v56 = vld [vmem:[#allocation5 + $0xb48] sm:$0xff]  ;;  %v4488_v58 = vpack.c.bf16 %v805_v50, %v803_v49 }
  0xda   : > { %v1130_v57 = vld [vmem:[#allocation5 + $0xb58] sm:$0xff]  ;;  %v4808_v59 = vpack.c.bf16 %v1125_v53, %v1123_v51  ;;  %v4490_v60 = vpack.c.bf16 %v810_v55, %v808_v54  ;;  %v807_v61 = vld [vmem:[#allocation5 + $0x140] sm:$0xff]  ;;  %v809_v62 = vld [vmem:[#allocation5 + $0x150] sm:$0xff] }
  0xdb   : > { %4477 = vmatpush1.bf16.msra.mxu1 %v4476_v22  ;;  %v1127_v63 = vld [vmem:[#allocation5 + $0xb40] sm:$0xff]  ;;  %v4810_v0 = vpack.c.bf16 %v1130_v57, %v1128_v56  ;;  %v1129_v1 = vld [vmem:[#allocation5 + $0xb50] sm:$0xff]  ;;  %v812_v2 = vld [vmem:[#allocation5 + $0x168] sm:$0xff]  ;;  %v4492_v6 = vpack.c.bf16 %v809_v62, %v807_v61 }
  0xdc   : > { %4797 = vmatpush1.bf16.msra.mxu0 %v4796_v23  ;;  %4479 = vmatprep.subr.bf16.mxu1 %v4478_v24  ;;  %v814_v3 = vld [vmem:[#allocation5 + $0x178] sm:$0xff]  ;;  %v1132_v4 = vld [vmem:[#allocation5 + $0xb68] sm:$0xff]  ;;  %v811_v7 = vld [vmem:[#allocation5 + $0x160] sm:$0xff]  ;;  %v4812_v8 = vpack.c.bf16 %v1129_v1, %v1127_v63 }
  0xdd   : > { %4799 = vmatprep.subr.bf16.mxu0 %v4798_v28  ;;  %v1134_v5 = vld [vmem:[#allocation5 + $0xb78] sm:$0xff]  ;;  %v4494_v9 = vpack.c.bf16 %v814_v3, %v812_v2  ;;  %v813_v10 = vld [vmem:[#allocation5 + $0x170] sm:$0xff]  ;;  %v1131_v11 = vld [vmem:[#allocation5 + $0xb60] sm:$0xff] }
  0xde   : > { %v1133_v12 = vld [vmem:[#allocation5 + $0xb70] sm:$0xff]  ;;  %v4814_v13 = vpack.c.bf16 %v1134_v5, %v1132_v4  ;;  %v816_v14 = vld [vmem:[#allocation5 + $0x188] sm:$0xff]  ;;  %v818_v15 = vld [vmem:[#allocation5 + $0x198] sm:$0xff]  ;;  %v4496_v20 = vpack.c.bf16 %v813_v10, %v811_v7 }
  0xdf   : > { %4481 = vmatpush1.bf16.msra.mxu1 %v4480_v34  ;;  %v368_v16 = vld [vmem:[%s6381_s28 + $0x8] sm:$0xff]  ;;  %v1138_v18 = vld [vmem:[#allocation5 + $0xb98] sm:$0xff]  ;;  %v4816_v21 = vpack.c.bf16 %v1133_v12, %v1131_v11  ;;  %v4498_v22 = vpack.c.bf16 %v818_v15, %v816_v14  ;;  %v815_v23 = vld [vmem:[#allocation5 + $0x180] sm:$0xff] }
  0xe0   : > { %4801 = vmatpush1.bf16.msra.mxu0 %v4800_v35  ;;  %4483 = vmatprep.subr.bf16.mxu1 %v4482_v36  ;;  %v1136_v17 = vld [vmem:[#allocation5 + $0xb88] sm:$0xff]  ;;  %v378_v19 = vld [vmem:[%s6381_s28 + $0x58] sm:$0xff]  ;;  %v817_v24 = vld [vmem:[#allocation5 + $0x190] sm:$0xff] }
  0xe1   : > { %4803 = vmatprep.subr.bf16.mxu0 %v4802_v40  ;;  %1643 = vmatprep.mubr.f32.mxu1 %v368_v16  ;;  %v1135_v25 = vld [vmem:[#allocation5 + $0xb80] sm:$0xff]  ;;  %v4818_v26 = vpack.c.bf16 %v1138_v18, %v1136_v17  ;;  %v1137_v27 = vld [vmem:[#allocation5 + $0xb90] sm:$0xff]  ;;  %v820_v28 = vld [vmem:[#allocation5 + $0x1a8] sm:$0xff]  ;;  %v4500_v32 = vpack.c.bf16 %v817_v24, %v815_v23 }
  0xe2   : > { %2448 = vmatprep.mubr.f32.mxu0 %v378_v19  ;;  %v822_v29 = vld [vmem:[#allocation5 + $0x1b8] sm:$0xff]  ;;  %v1140_v30 = vld [vmem:[#allocation5 + $0xba8] sm:$0xff]  ;;  %v4820_v33 = vpack.c.bf16 %v1137_v27, %v1135_v25  ;;  %v819_v35 = vld [vmem:[#allocation5 + $0x1a0] sm:$0xff] }
  0xe3   : > { %4485 = vmatpush1.bf16.msra.mxu1 %v4484_v46  ;;  %v1142_v31 = vld [vmem:[#allocation5 + $0xbb8] sm:$0xff]  ;;  %v4502_v34 = vpack.c.bf16 %v822_v29, %v820_v28  ;;  %v821_v36 = vld [vmem:[#allocation5 + $0x1b0] sm:$0xff]  ;;  %v1139_v37 = vld [vmem:[#allocation5 + $0xba0] sm:$0xff] }
  0xe4   : > { %4805 = vmatpush1.bf16.msra.mxu0 %v4804_v47  ;;  %4487 = vmatprep.subr.bf16.mxu1 %v4486_v48  ;;  %v4822_v38 = vpack.c.bf16 %v1142_v31, %v1140_v30  ;;  %v1141_v39 = vld [vmem:[#allocation5 + $0xbb0] sm:$0xff]  ;;  %v824_v40 = vld [vmem:[#allocation5 + $0x1c8] sm:$0xff]  ;;  %v826_v41 = vld [vmem:[#allocation5 + $0x1d8] sm:$0xff]  ;;  %v4504_v44 = vpack.c.bf16 %v821_v36, %v819_v35 }
  0xe5   : > { %4807 = vmatprep.subr.bf16.mxu0 %v4806_v52  ;;  %v1144_v42 = vld [vmem:[#allocation5 + $0xbc8] sm:$0xff]  ;;  %v1146_v43 = vld [vmem:[#allocation5 + $0xbd8] sm:$0xff]  ;;  %v4824_v45 = vpack.c.bf16 %v1141_v39, %v1139_v37  ;;  %v4506_v46 = vpack.c.bf16 %v826_v41, %v824_v40  ;;  %v823_v47 = vld [vmem:[#allocation5 + $0x1c0] sm:$0xff] }
  0xe6   : > { %v825_v48 = vld [vmem:[#allocation5 + $0x1d0] sm:$0xff]  ;;  %v1143_v49 = vld [vmem:[#allocation5 + $0xbc0] sm:$0xff]  ;;  %v4826_v50 = vpack.c.bf16 %v1146_v43, %v1144_v42  ;;  %v828_v52 = vld [vmem:[#allocation5 + $0x1e8] sm:$0xff] }
  0xe7   : > { %4489 = vmatpush1.bf16.msra.mxu1 %v4488_v58  ;;  %v1145_v51 = vld [vmem:[#allocation5 + $0xbd0] sm:$0xff]  ;;  %v830_v53 = vld [vmem:[#allocation5 + $0x1f8] sm:$0xff]  ;;  %v1148_v54 = vld [vmem:[#allocation5 + $0xbe8] sm:$0xff]  ;;  %v4508_v56 = vpack.c.bf16 %v825_v48, %v823_v47 }
  0xe8   : > { %4809 = vmatpush1.bf16.msra.mxu0 %v4808_v59  ;;  %4491 = vmatprep.subr.bf16.mxu1 %v4490_v60  ;;  %v1150_v55 = vld [vmem:[#allocation5 + $0xbf8] sm:$0xff]  ;;  %v4828_v57 = vpack.c.bf16 %v1145_v51, %v1143_v49  ;;  %v4510_v58 = vpack.c.bf16 %v830_v53, %v828_v52  ;;  %v827_v59 = vld [vmem:[#allocation5 + $0x1e0] sm:$0xff]  ;;  %v829_v60 = vld [vmem:[#allocation5 + $0x1f0] sm:$0xff] }
  0xe9   : > { %4811 = vmatprep.subr.bf16.mxu0 %v4810_v0  ;;  %v1147_v61 = vld [vmem:[#allocation5 + $0xbe0] sm:$0xff]  ;;  %v4830_v62 = vpack.c.bf16 %v1150_v55, %v1148_v54  ;;  %v1149_v63 = vld [vmem:[#allocation5 + $0xbf0] sm:$0xff]  ;;  %v832_v0 = vld [vmem:[#allocation5 + $0x208] sm:$0xff]  ;;  %v4512_v4 = vpack.c.bf16 %v829_v60, %v827_v59 }
  0xea   : > { %v834_v1 = vld [vmem:[#allocation5 + $0x218] sm:$0xff]  ;;  %v1152_v2 = vld [vmem:[#allocation5 + $0xc08] sm:$0xff]  ;;  %v4832_v5 = vpack.c.bf16 %v1149_v63, %v1147_v61  ;;  %v831_v7 = vld [vmem:[#allocation5 + $0x200] sm:$0xff] }
  0xeb   : > { %4493 = vmatpush1.bf16.msra.mxu1 %v4492_v6  ;;  %v1154_v3 = vld [vmem:[#allocation5 + $0xc18] sm:$0xff]  ;;  %v4514_v6 = vpack.c.bf16 %v834_v1, %v832_v0  ;;  %v1151_v10 = vld [vmem:[#allocation5 + $0xc00] sm:$0xff]  ;;  %v1153_v11 = vld [vmem:[#allocation5 + $0xc10] sm:$0xff] }
  0xec   : > { %4813 = vmatpush1.bf16.msra.mxu0 %v4812_v8  ;;  %4495 = vmatprep.subr.bf16.mxu1 %v4494_v9  ;;  %v833_v8 = vld [vmem:[#allocation5 + $0x210] sm:$0xff]  ;;  %v4834_v9 = vpack.c.bf16 %v1154_v3, %v1152_v2  ;;  %v836_v12 = vld [vmem:[#allocation5 + $0x228] sm:$0xff]  ;;  %v367_v14 = vld [vmem:[%s6381_s28] sm:$0xff]  ;;  %v4836_v19 = vpack.c.bf16 %v1153_v11, %v1151_v10 }
  0xed   : > { %4815 = vmatprep.subr.bf16.mxu0 %v4814_v13  ;;  %v838_v13 = vld [vmem:[#allocation5 + $0x238] sm:$0xff]  ;;  %v4516_v15 = vpack.c.bf16 %v833_v8, %v831_v7  ;;  %v1156_v16 = vld [vmem:[#allocation5 + $0xc28] sm:$0xff]  ;;  %v377_v18 = vld [vmem:[%s6381_s28 + $0x50] sm:$0xff] }
  0xee   : > { %v1158_v17 = vld [vmem:[#allocation5 + $0xc38] sm:$0xff]  ;;  %v4518_v23 = vpack.c.bf16 %v838_v13, %v836_v12  ;;  %v1155_v24 = vld [vmem:[#allocation5 + $0xc20] sm:$0xff]  ;;  %v1157_v25 = vld [vmem:[#allocation5 + $0xc30] sm:$0xff] }
  0xef   : > { %4497 = vmatpush1.bf16.msra.mxu1 %v4496_v20  ;;  %v835_v20 = vld [vmem:[#allocation5 + $0x220] sm:$0xff]  ;;  %v4838_v27 = vpack.c.bf16 %v1158_v17, %v1156_v16  ;;  %v840_v28 = vld [vmem:[#allocation5 + $0x248] sm:$0xff]  ;;  %v842_v29 = vld [vmem:[#allocation5 + $0x258] sm:$0xff]  ;;  %v4840_v35 = vpack.c.bf16 %v1157_v25, %v1155_v24 }
  0xf0   : > { %4817 = vmatpush1.bf16.msra.mxu0 %v4816_v21  ;;  %4499 = vmatprep.subr.bf16.mxu1 %v4498_v22  ;;  %v837_v21 = vld [vmem:[#allocation5 + $0x230] sm:$0xff]  ;;  %v392_v30 = vld [vmem:[%s6381_s28 + $0xc8] sm:$0xff]  ;;  %v839_v36 = vld [vmem:[#allocation5 + $0x240] sm:$0xff]  ;;  %v4522_v39 = vpack.c.bf16 %v842_v29, %v840_v28 }
  0xf1   : > { %4819 = vmatprep.subr.bf16.mxu0 %v4818_v26  ;;  %v393_v22 = vld [vmem:[%s6381_s28 + $0xd0] sm:$0xff]  ;;  %v403_v26 = vld [vmem:[%s6381_s28 + $0x120] sm:$0xff]  ;;  %v4520_v31 = vpack.c.bf16 %v837_v21, %v835_v20  ;;  %v428_v42 = vld [vmem:[%s6381_s28 + $0x1e8] sm:$0xff] }
  0xf2   : > { %v841_v37 = vld [vmem:[#allocation5 + $0x250] sm:$0xff]  ;;  %v1159_v40 = vld [vmem:[#allocation5 + $0xc40] sm:$0xff]  ;;  %v1164_v48 = vld [vmem:[#allocation5 + $0xc68] sm:$0xff] }
  0xf3   : > { %4501 = vmatpush1.bf16.msra.mxu1 %v4500_v32  ;;  %v1160_v32 = vld [vmem:[#allocation5 + $0xc48] sm:$0xff]  ;;  %v1161_v41 = vld [vmem:[#allocation5 + $0xc50] sm:$0xff]  ;;  %v4524_v47 = vpack.c.bf16 %v841_v37, %v839_v36  ;;  %v1166_v49 = vld [vmem:[#allocation5 + $0xc78] sm:$0xff] }
  0xf4   : > { %4821 = vmatpush1.bf16.msra.mxu0 %v4820_v33  ;;  %4503 = vmatprep.subr.bf16.mxu1 %v4502_v34  ;;  %v1162_v33 = vld [vmem:[#allocation5 + $0xc58] sm:$0xff]  ;;  %v4844_v51 = vpack.c.bf16 %v1161_v41, %v1159_v40  ;;  %v843_v52 = vld [vmem:[#allocation5 + $0x260] sm:$0xff]  ;;  %v845_v53 = vld [vmem:[#allocation5 + $0x270] sm:$0xff]  ;;  %v4846_v59 = vpack.c.bf16 %v1166_v49, %v1164_v48 }
  0xf5   : > { %4823 = vmatprep.subr.bf16.mxu0 %v4822_v38  ;;  %v402_v34 = vld [vmem:[%s6381_s28 + $0x118] sm:$0xff]  ;;  %v4842_v43 = vpack.c.bf16 %v1162_v33, %v1160_v32  ;;  %v443_v54 = vld [vmem:[%s6381_s28 + $0x260] sm:$0xff]  ;;  %v848_v60 = vld [vmem:[#allocation5 + $0x288] sm:$0xff]  ;;  %v4528_v63 = vpack.c.bf16 %v845_v53, %v843_v52 }
  0xf6   : > { %v418_v38 = vld [vmem:[%s6381_s28 + $0x198] sm:$0xff]  ;;  %v1168_v0 = vld [vmem:[#allocation5 + $0xc88] sm:$0xff]  ;;  %v1167_v8 = vld [vmem:[#allocation5 + $0xc80] sm:$0xff] }
  0xf7   : > { %4505 = vmatpush1.bf16.msra.mxu1 %v4504_v44  ;;  %v844_v44 = vld [vmem:[#allocation5 + $0x268] sm:$0xff]  ;;  %v850_v61 = vld [vmem:[#allocation5 + $0x298] sm:$0xff]  ;;  %v851_v20 = vld [vmem:[#allocation5 + $0x2a0] sm:$0xff] }
  0xf8   : > { %4825 = vmatpush1.bf16.msra.mxu0 %v4824_v45  ;;  %4507 = vmatprep.subr.bf16.mxu1 %v4506_v46  ;;  %v846_v45 = vld [vmem:[#allocation5 + $0x278] sm:$0xff]  ;;  %v417_v46 = vld [vmem:[%s6381_s28 + $0x190] sm:$0xff]  ;;  %v452_v2 = vld [vmem:[%s6381_s28 + $0x2a8] sm:$0xff]  ;;  %v4530_v7 = vpack.c.bf16 %v850_v61, %v848_v60 }
  0xf9   : > { %4827 = vmatprep.subr.bf16.mxu0 %v4826_v50  ;;  %v427_v50 = vld [vmem:[%s6381_s28 + $0x1e0] sm:$0xff]  ;;  %v4526_v55 = vpack.c.bf16 %v846_v45, %v844_v44  ;;  %v1170_v1 = vld [vmem:[#allocation5 + $0xc98] sm:$0xff]  ;;  %v852_v12 = vld [vmem:[#allocation5 + $0x2a8] sm:$0xff] }
  0xfa   : > { %v478_v10 = vld [vmem:[%s6381_s28 + $0x378] sm:$0xff]  ;;  %v4850_v11 = vpack.c.bf16 %v1170_v1, %v1168_v0  ;;  %v1172_v16 = vld [vmem:[#allocation5 + $0xca8] sm:$0xff]  ;;  %v853_v21 = vld [vmem:[#allocation5 + $0x2b0] sm:$0xff] }
  0xfb   : > { %4509 = vmatpush1.bf16.msra.mxu1 %v4508_v56  ;;  %v1163_v56 = vld [vmem:[#allocation5 + $0xc60] sm:$0xff]  ;;  %v854_v13 = vld [vmem:[#allocation5 + $0x2b8] sm:$0xff]  ;;  %v1173_v25 = vld [vmem:[#allocation5 + $0xcb0] sm:$0xff] }
  0xfc   : > { %4829 = vmatpush1.bf16.msra.mxu0 %v4828_v57  ;;  %4511 = vmatprep.subr.bf16.mxu1 %v4510_v58  ;;  %v1165_v57 = vld [vmem:[#allocation5 + $0xc70] sm:$0xff]  ;;  %v1174_v17 = vld [vmem:[#allocation5 + $0xcb8] sm:$0xff]  ;;  %v1171_v24 = vld [vmem:[#allocation5 + $0xca0] sm:$0xff] }
  0xfd   : > { %4831 = vmatprep.subr.bf16.mxu0 %v4830_v62  ;;  %v453_v58 = vld [vmem:[%s6381_s28 + $0x2b0] sm:$0xff]  ;;  %v442_v62 = vld [vmem:[%s6381_s28 + $0x258] sm:$0xff]  ;;  %v4848_v3 = vpack.c.bf16 %v1165_v57, %v1163_v56  ;;  %v856_v28 = vld [vmem:[#allocation5 + $0x2c8] sm:$0xff] }
  0xfe   : > { %v858_v29 = vld [vmem:[#allocation5 + $0x2d8] sm:$0xff]  ;;  %v1176_v32 = vld [vmem:[#allocation5 + $0xcc8] sm:$0xff]  ;;  %v855_v36 = vld [vmem:[#allocation5 + $0x2c0] sm:$0xff] }
  0xff   : > { %4513 = vmatpush1.bf16.msra.mxu1 %v4512_v4  ;;  %v847_v4 = vld [vmem:[#allocation5 + $0x280] sm:$0xff]  ;;  %v1178_v33 = vld [vmem:[#allocation5 + $0xcd8] sm:$0xff]  ;;  %v857_v37 = vld [vmem:[#allocation5 + $0x2d0] sm:$0xff] }
 0x100   : > { %4833 = vmatpush1.bf16.msra.mxu0 %v4832_v5  ;;  %4515 = vmatprep.subr.bf16.mxu1 %v4514_v6  ;;  %v849_v5 = vld [vmem:[#allocation5 + $0x290] sm:$0xff]  ;;  %v468_v6 = vld [vmem:[%s6381_s28 + $0x328] sm:$0xff]  ;;  %v1175_v40 = vld [vmem:[#allocation5 + $0xcc0] sm:$0xff] }
 0x101   : > { %4835 = vmatprep.subr.bf16.mxu0 %v4834_v9  ;;  %v1169_v9 = vld [vmem:[#allocation5 + $0xc90] sm:$0xff]  ;;  %v860_v44 = vld [vmem:[#allocation5 + $0x2e8] sm:$0xff]  ;;  %v862_v45 = vld [vmem:[#allocation5 + $0x2f8] sm:$0xff] }
 0x102   : > { %1644 = vmatmul.mubr.f32.vlgmr.msra.gmra.mrb[0].mxu1 %v367_v14  ;;  %v467_v14 = vld [vmem:[%s6381_s28 + $0x320] sm:$0xff]  ;;  %v1177_v41 = vld [vmem:[#allocation5 + $0xcd0] sm:$0xff]  ;;  %v1180_v48 = vld [vmem:[#allocation5 + $0xce8] sm:$0xff] }
 0x103   : > { %2449 = vmatmul.mubr.f32.vlgmr.msra.gmra.mrb[0].mxu0 %v377_v18  ;;  %4517 = vmatpush1.bf16.msra.mxu1 %v4516_v15  ;;  %v4532_v15 = vpack.c.bf16 %v849_v5, %v847_v4  ;;  %v477_v18 = vld [vmem:[%s6381_s28 + $0x370] sm:$0xff]  ;;  %v1182_v49 = vld [vmem:[#allocation5 + $0xcf8] sm:$0xff]  ;;  %v859_v52 = vld [vmem:[#allocation5 + $0x2e0] sm:$0xff] }
 0x104   : > { %4837 = vmatpush1.bf16.msra.mxu0 %v4836_v19  ;;  %1649 = vmatprep.mubr.f32.mxu1 %v393_v22  ;;  %v4852_v19 = vpack.c.bf16 %v1169_v9, %v1167_v8  ;;  %v493_v22 = vld [vmem:[%s6381_s28 + $0x3f0] sm:$0xff]  ;;  %v1179_v56 = vld [vmem:[#allocation5 + $0xce0] sm:$0xff]  ;;  %v864_v60 = vld [vmem:[#allocation5 + $0x308] sm:$0xff] }
 0x105   : > { %2454 = vmatprep.mubr.f32.mxu0 %v403_v26  ;;  %4519 = vmatprep.subr.bf16.mxu1 %v4518_v23  ;;  %v4534_v23 = vpack.c.bf16 %v854_v13, %v852_v12  ;;  %v503_v26 = vld [vmem:[%s6381_s28 + $0x440] sm:$0xff]  ;;  %v861_v53 = vld [vmem:[#allocation5 + $0x2f0] sm:$0xff]  ;;  %v866_v61 = vld [vmem:[#allocation5 + $0x318] sm:$0xff] }
 0x106   : > { %1650 = vmatmul.mubr.f32.gmra.mrb[2].mxu1 %v392_v30  ;;  %4839 = vmatprep.subr.bf16.mxu0 %v4838_v27  ;;  %v4854_v27 = vpack.c.bf16 %v1174_v17, %v1172_v16  ;;  %v492_v30 = vld [vmem:[%s6381_s28 + $0x3e8] sm:$0xff]  ;;  %v1181_v57 = vld [vmem:[#allocation5 + $0xcf0] sm:$0xff]  ;;  %v1186_v1 = vld [vmem:[#allocation5 + $0xd18] sm:$0xff] }
 0x107   : > { %2455 = vmatmul.mubr.f32.gmra.mrb[2].mxu0 %v402_v34  ;;  %4521 = vmatpush1.bf16.msra.mxu1 %v4520_v31  ;;  %v4536_v31 = vpack.c.bf16 %v853_v21, %v851_v20  ;;  %v502_v34 = vld [vmem:[%s6381_s28 + $0x438] sm:$0xff]  ;;  %v1184_v0 = vld [vmem:[#allocation5 + $0xd08] sm:$0xff]  ;;  %v863_v4 = vld [vmem:[#allocation5 + $0x300] sm:$0xff] }
 0x108   : > { %4841 = vmatpush1.bf16.msra.mxu0 %v4840_v35  ;;  %1655 = vmatprep.mubr.f32.mxu1 %v418_v38  ;;  %v4856_v35 = vpack.c.bf16 %v1173_v25, %v1171_v24  ;;  %v518_v38 = vld [vmem:[%s6381_s28 + $0x4b8] sm:$0xff]  ;;  %v865_v5 = vld [vmem:[#allocation5 + $0x310] sm:$0xff]  ;;  %v1183_v8 = vld [vmem:[#allocation5 + $0xd00] sm:$0xff] }
 0x109   : > { %2460 = vmatprep.mubr.f32.mxu0 %v428_v42  ;;  %4523 = vmatprep.subr.bf16.mxu1 %v4522_v39  ;;  %v4538_v39 = vpack.c.bf16 %v858_v29, %v856_v28  ;;  %v528_v42 = vld [vmem:[%s6381_s28 + $0x508] sm:$0xff]  ;;  %v1185_v9 = vld [vmem:[#allocation5 + $0xd10] sm:$0xff]  ;;  %v870_v13 = vld [vmem:[#allocation5 + $0x338] sm:$0xff] }
 0x10a   : > { %1656 = vmatmul.mubr.f32.gmra.mrb[4].mxu1 %v417_v46  ;;  %4843 = vmatprep.subr.bf16.mxu0 %v4842_v43  ;;  %v4858_v43 = vpack.c.bf16 %v1178_v33, %v1176_v32  ;;  %v517_v46 = vld [vmem:[%s6381_s28 + $0x4b0] sm:$0xff]  ;;  %v868_v12 = vld [vmem:[#allocation5 + $0x328] sm:$0xff]  ;;  %v1190_v17 = vld [vmem:[#allocation5 + $0xd38] sm:$0xff] }
 0x10b   : > { %2461 = vmatmul.mubr.f32.gmra.mrb[4].mxu0 %v427_v50  ;;  %4525 = vmatpush1.bf16.msra.mxu1 %v4524_v47  ;;  %v4540_v47 = vpack.c.bf16 %v857_v37, %v855_v36  ;;  %v527_v50 = vld [vmem:[%s6381_s28 + $0x500] sm:$0xff]  ;;  %v1188_v16 = vld [vmem:[#allocation5 + $0xd28] sm:$0xff]  ;;  %v869_v21 = vld [vmem:[#allocation5 + $0x330] sm:$0xff] }
 0x10c   : > { %4845 = vmatpush1.bf16.msra.mxu0 %v4844_v51  ;;  %1661 = vmatprep.mubr.f32.mxu1 %v443_v54  ;;  %v4860_v51 = vpack.c.bf16 %v1177_v41, %v1175_v40  ;;  %v543_v54 = vld [vmem:[%s6381_s28 + $0x580] sm:$0xff]  ;;  %v1189_v25 = vld [vmem:[#allocation5 + $0xd30] sm:$0xff]  ;;  %v872_v28 = vld [vmem:[#allocation5 + $0x348] sm:$0xff] }
 0x10d   : > { %2466 = vmatprep.mubr.f32.mxu0 %v453_v58  ;;  %4527 = vmatprep.subr.bf16.mxu1 %v4526_v55  ;;  %v4542_v55 = vpack.c.bf16 %v862_v45, %v860_v44  ;;  %v553_v58 = vld [vmem:[%s6381_s28 + $0x5d0] sm:$0xff]  ;;  %v867_v20 = vld [vmem:[#allocation5 + $0x320] sm:$0xff]  ;;  %v874_v29 = vld [vmem:[#allocation5 + $0x358] sm:$0xff] }
 0x10e   : > { %1662 = vmatmul.mubr.f32.gmra.mrb[6].mxu1 %v442_v62  ;;  %4847 = vmatprep.subr.bf16.mxu0 %v4846_v59  ;;  %v4862_v59 = vpack.c.bf16 %v1182_v49, %v1180_v48  ;;  %v542_v62 = vld [vmem:[%s6381_s28 + $0x578] sm:$0xff]  ;;  %v1187_v24 = vld [vmem:[#allocation5 + $0xd20] sm:$0xff]  ;;  %v1192_v32 = vld [vmem:[#allocation5 + $0xd48] sm:$0xff] }
 0x10f   : > { %2467 = vmatmul.mubr.f32.gmra.mrb[6].mxu0 %v452_v2  ;;  %4529 = vmatpush1.bf16.msra.mxu1 %v4528_v63  ;;  %v4544_v63 = vpack.c.bf16 %v861_v53, %v859_v52  ;;  %v552_v2 = vld [vmem:[%s6381_s28 + $0x5c8] sm:$0xff]  ;;  %v1194_v33 = vld [vmem:[#allocation5 + $0xd58] sm:$0xff]  ;;  %v871_v36 = vld [vmem:[#allocation5 + $0x340] sm:$0xff] }
 0x110   : > { %4849 = vmatpush1.bf16.msra.mxu0 %v4848_v3  ;;  %1667 = vmatprep.mubr.f32.mxu1 %v468_v6  ;;  %v4864_v3 = vpack.c.bf16 %v1181_v57, %v1179_v56  ;;  %v568_v6 = vld [vmem:[%s6381_s28 + $0x648] sm:$0xff]  ;;  %v873_v37 = vld [vmem:[#allocation5 + $0x350] sm:$0xff]  ;;  %v1191_v40 = vld [vmem:[#allocation5 + $0xd40] sm:$0xff] }
 0x111   : > { %2472 = vmatprep.mubr.f32.mxu0 %v478_v10  ;;  %4531 = vmatprep.subr.bf16.mxu1 %v4530_v7  ;;  %v4546_v7 = vpack.c.bf16 %v866_v61, %v864_v60  ;;  %v578_v10 = vld [vmem:[%s6381_s28 + $0x698] sm:$0xff]  ;;  %v1193_v41 = vld [vmem:[#allocation5 + $0xd50] sm:$0xff]  ;;  %v876_v44 = vld [vmem:[#allocation5 + $0x368] sm:$0xff] }
 0x112   : > { %1668 = vmatmul.mubr.f32.gmra.mrb[8].mxu1 %v467_v14  ;;  %4851 = vmatprep.subr.bf16.mxu0 %v4850_v11  ;;  %v4866_v11 = vpack.c.bf16 %v1186_v1, %v1184_v0  ;;  %v567_v14 = vld [vmem:[%s6381_s28 + $0x640] sm:$0xff]  ;;  %v878_v45 = vld [vmem:[#allocation5 + $0x378] sm:$0xff]  ;;  %v1196_v48 = vld [vmem:[#allocation5 + $0xd68] sm:$0xff] }
 0x113   : > { %2473 = vmatmul.mubr.f32.gmra.mrb[8].mxu0 %v477_v18  ;;  %4533 = vmatpush1.bf16.msra.mxu1 %v4532_v15  ;;  %v4548_v15 = vpack.c.bf16 %v865_v5, %v863_v4  ;;  %v577_v18 = vld [vmem:[%s6381_s28 + $0x690] sm:$0xff]  ;;  %v1198_v49 = vld [vmem:[#allocation5 + $0xd78] sm:$0xff]  ;;  %v875_v52 = vld [vmem:[#allocation5 + $0x360] sm:$0xff] }
 0x114   : > { %4853 = vmatpush1.bf16.msra.mxu0 %v4852_v19  ;;  %1673 = vmatprep.mubr.f32.mxu1 %v493_v22  ;;  %v4868_v19 = vpack.c.bf16 %v1185_v9, %v1183_v8  ;;  %v593_v22 = vld [vmem:[%s6381_s28 + $0x710] sm:$0xff]  ;;  %v1195_v56 = vld [vmem:[#allocation5 + $0xd60] sm:$0xff]  ;;  %v880_v60 = vld [vmem:[#allocation5 + $0x388] sm:$0xff] }
 0x115   : > { %2478 = vmatprep.mubr.f32.mxu0 %v503_v26  ;;  %4535 = vmatprep.subr.bf16.mxu1 %v4534_v23  ;;  %v4550_v23 = vpack.c.bf16 %v870_v13, %v868_v12  ;;  %v603_v26 = vld [vmem:[%s6381_s28 + $0x760] sm:$0xff]  ;;  %v877_v53 = vld [vmem:[#allocation5 + $0x370] sm:$0xff]  ;;  %v882_v61 = vld [vmem:[#allocation5 + $0x398] sm:$0xff] }
 0x116   : > { %1674 = vmatmul.mubr.f32.gmra.mrb[10].mxu1 %v492_v30  ;;  %4855 = vmatprep.subr.bf16.mxu0 %v4854_v27  ;;  %v4870_v27 = vpack.c.bf16 %v1190_v17, %v1188_v16  ;;  %v592_v30 = vld [vmem:[%s6381_s28 + $0x708] sm:$0xff]  ;;  %v1197_v57 = vld [vmem:[#allocation5 + $0xd70] sm:$0xff]  ;;  %v1202_v1 = vld [vmem:[#allocation5 + $0xd98] sm:$0xff] }
 0x117   : > { %2479 = vmatmul.mubr.f32.gmra.mrb[10].mxu0 %v502_v34  ;;  %4537 = vmatpush1.bf16.msra.mxu1 %v4536_v31  ;;  %v4552_v31 = vpack.c.bf16 %v869_v21, %v867_v20  ;;  %v602_v34 = vld [vmem:[%s6381_s28 + $0x758] sm:$0xff]  ;;  %v1200_v0 = vld [vmem:[#allocation5 + $0xd88] sm:$0xff]  ;;  %v879_v4 = vld [vmem:[#allocation5 + $0x380] sm:$0xff] }
 0x118   : > { %4857 = vmatpush1.bf16.msra.mxu0 %v4856_v35  ;;  %1679 = vmatprep.mubr.f32.mxu1 %v518_v38  ;;  %v4872_v35 = vpack.c.bf16 %v1189_v25, %v1187_v24  ;;  %v618_v38 = vld [vmem:[%s6381_s28 + $0x7d8] sm:$0xff]  ;;  %v881_v5 = vld [vmem:[#allocation5 + $0x390] sm:$0xff]  ;;  %v1199_v8 = vld [vmem:[#allocation5 + $0xd80] sm:$0xff] }
 0x119   : > { %2484 = vmatprep.mubr.f32.mxu0 %v528_v42  ;;  %4539 = vmatprep.subr.bf16.mxu1 %v4538_v39  ;;  %v4554_v39 = vpack.c.bf16 %v874_v29, %v872_v28  ;;  %v628_v42 = vld [vmem:[%s6381_s28 + $0x828] sm:$0xff]  ;;  %v1201_v9 = vld [vmem:[#allocation5 + $0xd90] sm:$0xff]  ;;  %v886_v13 = vld [vmem:[#allocation5 + $0x3b8] sm:$0xff] }
 0x11a   : > { %1680 = vmatmul.mubr.f32.gmra.mrb[12].mxu1 %v517_v46  ;;  %4859 = vmatprep.subr.bf16.mxu0 %v4858_v43  ;;  %v4874_v43 = vpack.c.bf16 %v1194_v33, %v1192_v32  ;;  %v617_v46 = vld [vmem:[%s6381_s28 + $0x7d0] sm:$0xff]  ;;  %v884_v12 = vld [vmem:[#allocation5 + $0x3a8] sm:$0xff]  ;;  %v1206_v17 = vld [vmem:[#allocation5 + $0xdb8] sm:$0xff] }
 0x11b   : > { %2485 = vmatmul.mubr.f32.gmra.mrb[12].mxu0 %v527_v50  ;;  %4541 = vmatpush1.bf16.msra.mxu1 %v4540_v47  ;;  %v4556_v47 = vpack.c.bf16 %v873_v37, %v871_v36  ;;  %v627_v50 = vld [vmem:[%s6381_s28 + $0x820] sm:$0xff]  ;;  %v1204_v16 = vld [vmem:[#allocation5 + $0xda8] sm:$0xff]  ;;  %v885_v21 = vld [vmem:[#allocation5 + $0x3b0] sm:$0xff] }
 0x11c   : > { %4861 = vmatpush1.bf16.msra.mxu0 %v4860_v51  ;;  %1685 = vmatprep.mubr.f32.mxu1 %v543_v54  ;;  %v4876_v51 = vpack.c.bf16 %v1193_v41, %v1191_v40  ;;  %v643_v54 = vld [vmem:[%s6381_s28 + $0x8a0] sm:$0xff]  ;;  %v1205_v25 = vld [vmem:[#allocation5 + $0xdb0] sm:$0xff]  ;;  %v888_v28 = vld [vmem:[#allocation5 + $0x3c8] sm:$0xff] }
 0x11d   : > { %2490 = vmatprep.mubr.f32.mxu0 %v553_v58  ;;  %4543 = vmatprep.subr.bf16.mxu1 %v4542_v55  ;;  %v4558_v55 = vpack.c.bf16 %v878_v45, %v876_v44  ;;  %v653_v58 = vld [vmem:[%s6381_s28 + $0x8f0] sm:$0xff]  ;;  %v883_v20 = vld [vmem:[#allocation5 + $0x3a0] sm:$0xff]  ;;  %v890_v29 = vld [vmem:[#allocation5 + $0x3d8] sm:$0xff] }
 0x11e   : > { %1686 = vmatmul.mubr.f32.gmra.mrb[14].mxu1 %v542_v62  ;;  %4863 = vmatprep.subr.bf16.mxu0 %v4862_v59  ;;  %v4878_v59 = vpack.c.bf16 %v1198_v49, %v1196_v48  ;;  %v642_v62 = vld [vmem:[%s6381_s28 + $0x898] sm:$0xff]  ;;  %v1203_v24 = vld [vmem:[#allocation5 + $0xda0] sm:$0xff]  ;;  %v1208_v32 = vld [vmem:[#allocation5 + $0xdc8] sm:$0xff] }
 0x11f   : > { %2491 = vmatmul.mubr.f32.gmra.mrb[14].mxu0 %v552_v2  ;;  %4545 = vmatpush1.bf16.msra.mxu1 %v4544_v63  ;;  %v4560_v63 = vpack.c.bf16 %v877_v53, %v875_v52  ;;  %v652_v2 = vld [vmem:[%s6381_s28 + $0x8e8] sm:$0xff]  ;;  %v1210_v33 = vld [vmem:[#allocation5 + $0xdd8] sm:$0xff]  ;;  %v887_v36 = vld [vmem:[#allocation5 + $0x3c0] sm:$0xff] }
 0x120   : > { %4865 = vmatpush1.bf16.msra.mxu0 %v4864_v3  ;;  %1691 = vmatprep.mubr.f32.mxu1 %v568_v6  ;;  %v4880_v3 = vpack.c.bf16 %v1197_v57, %v1195_v56  ;;  %v668_v6 = vld [vmem:[%s6381_s28 + $0x968] sm:$0xff]  ;;  %v889_v37 = vld [vmem:[#allocation5 + $0x3d0] sm:$0xff]  ;;  %v1207_v40 = vld [vmem:[#allocation5 + $0xdc0] sm:$0xff] }
 0x121   : > { %2496 = vmatprep.mubr.f32.mxu0 %v578_v10  ;;  %4547 = vmatprep.subr.bf16.mxu1 %v4546_v7  ;;  %v4562_v7 = vpack.c.bf16 %v882_v61, %v880_v60  ;;  %v678_v10 = vld [vmem:[%s6381_s28 + $0x9b8] sm:$0xff]  ;;  %v1209_v41 = vld [vmem:[#allocation5 + $0xdd0] sm:$0xff]  ;;  %v892_v44 = vld [vmem:[#allocation5 + $0x3e8] sm:$0xff] }
 0x122   : > { %1692 = vmatmul.mubr.f32.gmra.mrb[16].mxu1 %v567_v14  ;;  %4867 = vmatprep.subr.bf16.mxu0 %v4866_v11  ;;  %v4882_v11 = vpack.c.bf16 %v1202_v1, %v1200_v0  ;;  %v667_v14 = vld [vmem:[%s6381_s28 + $0x960] sm:$0xff]  ;;  %v894_v45 = vld [vmem:[#allocation5 + $0x3f8] sm:$0xff]  ;;  %v1212_v48 = vld [vmem:[#allocation5 + $0xde8] sm:$0xff] }
 0x123   : > { %2497 = vmatmul.mubr.f32.gmra.mrb[16].mxu0 %v577_v18  ;;  %4549 = vmatpush1.bf16.msra.mxu1 %v4548_v15  ;;  %v4564_v15 = vpack.c.bf16 %v881_v5, %v879_v4  ;;  %v677_v18 = vld [vmem:[%s6381_s28 + $0x9b0] sm:$0xff]  ;;  %v1214_v49 = vld [vmem:[#allocation5 + $0xdf8] sm:$0xff]  ;;  %v891_v52 = vld [vmem:[#allocation5 + $0x3e0] sm:$0xff] }
 0x124   : > { %4869 = vmatpush1.bf16.msra.mxu0 %v4868_v19  ;;  %1697 = vmatprep.mubr.f32.mxu1 %v593_v22  ;;  %v4884_v19 = vpack.c.bf16 %v1201_v9, %v1199_v8  ;;  %v693_v22 = vld [vmem:[%s6381_s28 + $0xa30] sm:$0xff]  ;;  %v1211_v56 = vld [vmem:[#allocation5 + $0xde0] sm:$0xff]  ;;  %v896_v60 = vld [vmem:[#allocation5 + $0x408] sm:$0xff] }
 0x125   : > { %2502 = vmatprep.mubr.f32.mxu0 %v603_v26  ;;  %4551 = vmatprep.subr.bf16.mxu1 %v4550_v23  ;;  %v4566_v23 = vpack.c.bf16 %v886_v13, %v884_v12  ;;  %v703_v26 = vld [vmem:[%s6381_s28 + $0xa80] sm:$0xff]  ;;  %v893_v53 = vld [vmem:[#allocation5 + $0x3f0] sm:$0xff]  ;;  %v898_v61 = vld [vmem:[#allocation5 + $0x418] sm:$0xff] }
 0x126   : > { %1698 = vmatmul.mubr.f32.gmra.mrb[18].mxu1 %v592_v30  ;;  %4871 = vmatprep.subr.bf16.mxu0 %v4870_v27  ;;  %v4886_v27 = vpack.c.bf16 %v1206_v17, %v1204_v16  ;;  %v692_v30 = vld [vmem:[%s6381_s28 + $0xa28] sm:$0xff]  ;;  %v1213_v57 = vld [vmem:[#allocation5 + $0xdf0] sm:$0xff]  ;;  %v1218_v1 = vld [vmem:[#allocation5 + $0xe18] sm:$0xff] }
 0x127   : > { %2503 = vmatmul.mubr.f32.gmra.mrb[18].mxu0 %v602_v34  ;;  %4553 = vmatpush1.bf16.msra.mxu1 %v4552_v31  ;;  %v4568_v31 = vpack.c.bf16 %v885_v21, %v883_v20  ;;  %v702_v34 = vld [vmem:[%s6381_s28 + $0xa78] sm:$0xff]  ;;  %v1216_v0 = vld [vmem:[#allocation5 + $0xe08] sm:$0xff]  ;;  %v895_v4 = vld [vmem:[#allocation5 + $0x400] sm:$0xff] }
 0x128   : > { %4873 = vmatpush1.bf16.msra.mxu0 %v4872_v35  ;;  %1703 = vmatprep.mubr.f32.mxu1 %v618_v38  ;;  %v4888_v35 = vpack.c.bf16 %v1205_v25, %v1203_v24  ;;  %v718_v38 = vld [vmem:[%s6381_s28 + $0xaf8] sm:$0xff]  ;;  %v897_v5 = vld [vmem:[#allocation5 + $0x410] sm:$0xff]  ;;  %v1215_v8 = vld [vmem:[#allocation5 + $0xe00] sm:$0xff] }
 0x129   : > { %2508 = vmatprep.mubr.f32.mxu0 %v628_v42  ;;  %4555 = vmatprep.subr.bf16.mxu1 %v4554_v39  ;;  %v4570_v39 = vpack.c.bf16 %v890_v29, %v888_v28  ;;  %v728_v42 = vld [vmem:[%s6381_s28 + $0xb48] sm:$0xff]  ;;  %v1217_v9 = vld [vmem:[#allocation5 + $0xe10] sm:$0xff]  ;;  %v902_v13 = vld [vmem:[#allocation5 + $0x438] sm:$0xff] }
 0x12a   : > { %1704 = vmatmul.mubr.f32.gmra.mrb[20].mxu1 %v617_v46  ;;  %4875 = vmatprep.subr.bf16.mxu0 %v4874_v43  ;;  %v4890_v43 = vpack.c.bf16 %v1210_v33, %v1208_v32  ;;  %v717_v46 = vld [vmem:[%s6381_s28 + $0xaf0] sm:$0xff]  ;;  %v900_v12 = vld [vmem:[#allocation5 + $0x428] sm:$0xff]  ;;  %v1222_v17 = vld [vmem:[#allocation5 + $0xe38] sm:$0xff] }
 0x12b   : > { %2509 = vmatmul.mubr.f32.gmra.mrb[20].mxu0 %v627_v50  ;;  %4557 = vmatpush1.bf16.msra.mxu1 %v4556_v47  ;;  %v4572_v47 = vpack.c.bf16 %v889_v37, %v887_v36  ;;  %v727_v50 = vld [vmem:[%s6381_s28 + $0xb40] sm:$0xff]  ;;  %v1220_v16 = vld [vmem:[#allocation5 + $0xe28] sm:$0xff]  ;;  %v901_v21 = vld [vmem:[#allocation5 + $0x430] sm:$0xff] }
 0x12c   : > { %4877 = vmatpush1.bf16.msra.mxu0 %v4876_v51  ;;  %1709 = vmatprep.mubr.f32.mxu1 %v643_v54  ;;  %v4892_v51 = vpack.c.bf16 %v1209_v41, %v1207_v40  ;;  %v743_v54 = vld [vmem:[%s6381_s28 + $0xbc0] sm:$0xff]  ;;  %v1221_v25 = vld [vmem:[#allocation5 + $0xe30] sm:$0xff]  ;;  %v904_v28 = vld [vmem:[#allocation5 + $0x448] sm:$0xff] }
 0x12d   : > { %2514 = vmatprep.mubr.f32.mxu0 %v653_v58  ;;  %4559 = vmatprep.subr.bf16.mxu1 %v4558_v55  ;;  %v4574_v55 = vpack.c.bf16 %v894_v45, %v892_v44  ;;  %v753_v58 = vld [vmem:[%s6381_s28 + $0xc10] sm:$0xff]  ;;  %v899_v20 = vld [vmem:[#allocation5 + $0x420] sm:$0xff]  ;;  %v906_v29 = vld [vmem:[#allocation5 + $0x458] sm:$0xff] }
 0x12e   : > { %1710 = vmatmul.mubr.f32.gmra.mrb[22].mxu1 %v642_v62  ;;  %4879 = vmatprep.subr.bf16.mxu0 %v4878_v59  ;;  %v4894_v59 = vpack.c.bf16 %v1214_v49, %v1212_v48  ;;  %v742_v62 = vld [vmem:[%s6381_s28 + $0xbb8] sm:$0xff]  ;;  %v1219_v24 = vld [vmem:[#allocation5 + $0xe20] sm:$0xff]  ;;  %v1224_v32 = vld [vmem:[#allocation5 + $0xe48] sm:$0xff] }
 0x12f   : > { %2515 = vmatmul.mubr.f32.gmra.mrb[22].mxu0 %v652_v2  ;;  %4561 = vmatpush1.bf16.msra.mxu1 %v4560_v63  ;;  %v4576_v63 = vpack.c.bf16 %v893_v53, %v891_v52  ;;  %v752_v2 = vld [vmem:[%s6381_s28 + $0xc08] sm:$0xff]  ;;  %v1226_v33 = vld [vmem:[#allocation5 + $0xe58] sm:$0xff]  ;;  %v903_v36 = vld [vmem:[#allocation5 + $0x440] sm:$0xff] }
 0x130   : > { %4881 = vmatpush1.bf16.msra.mxu0 %v4880_v3  ;;  %1715 = vmatprep.mubr.f32.mxu1 %v668_v6  ;;  %v4896_v3 = vpack.c.bf16 %v1213_v57, %v1211_v56  ;;  %v370_v6 = vld [vmem:[%s6381_s28 + $0x18] sm:$0xff]  ;;  %v905_v37 = vld [vmem:[#allocation5 + $0x450] sm:$0xff]  ;;  %v1223_v40 = vld [vmem:[#allocation5 + $0xe40] sm:$0xff] }
 0x131   : > { %2520 = vmatprep.mubr.f32.mxu0 %v678_v10  ;;  %4563 = vmatprep.subr.bf16.mxu1 %v4562_v7  ;;  %v4578_v7 = vpack.c.bf16 %v898_v61, %v896_v60  ;;  %v380_v10 = vld [vmem:[%s6381_s28 + $0x68] sm:$0xff]  ;;  %v1225_v41 = vld [vmem:[#allocation5 + $0xe50] sm:$0xff]  ;;  %v910_v45 = vld [vmem:[#allocation5 + $0x478] sm:$0xff] }
 0x132   : > { %1716 = vmatmul.mubr.f32.gmra.mrb[24].mxu1 %v667_v14  ;;  %4883 = vmatprep.subr.bf16.mxu0 %v4882_v11  ;;  %v4898_v11 = vpack.c.bf16 %v1218_v1, %v1216_v0  ;;  %v369_v14 = vld [vmem:[%s6381_s28 + $0x10] sm:$0xff]  ;;  %v908_v44 = vld [vmem:[#allocation5 + $0x468] sm:$0xff]  ;;  %v1230_v49 = vld [vmem:[#allocation5 + $0xe78] sm:$0xff] }
 0x133   : > { %2521 = vmatmul.mubr.f32.gmra.mrb[24].mxu0 %v677_v18  ;;  %4565 = vmatpush1.bf16.msra.mxu1 %v4564_v15  ;;  %v4580_v15 = vpack.c.bf16 %v897_v5, %v895_v4  ;;  %v379_v18 = vld [vmem:[%s6381_s28 + $0x60] sm:$0xff]  ;;  %v1228_v48 = vld [vmem:[#allocation5 + $0xe68] sm:$0xff]  ;;  %v909_v53 = vld [vmem:[#allocation5 + $0x470] sm:$0xff] }
 0x134   : > { %4885 = vmatpush1.bf16.msra.mxu0 %v4884_v19  ;;  %1721 = vmatprep.mubr.f32.mxu1 %v693_v22  ;;  %v4900_v19 = vpack.c.bf16 %v1217_v9, %v1215_v8  ;;  %v395_v22 = vld [vmem:[%s6381_s28 + $0xe0] sm:$0xff]  ;;  %v1229_v57 = vld [vmem:[#allocation5 + $0xe70] sm:$0xff]  ;;  %v912_v60 = vld [vmem:[#allocation5 + $0x488] sm:$0xff] }
 0x135   : > { %2526 = vmatprep.mubr.f32.mxu0 %v703_v26  ;;  %4567 = vmatprep.subr.bf16.mxu1 %v4566_v23  ;;  %v4582_v23 = vpack.c.bf16 %v902_v13, %v900_v12  ;;  %v405_v26 = vld [vmem:[%s6381_s28 + $0x130] sm:$0xff]  ;;  %v907_v52 = vld [vmem:[#allocation5 + $0x460] sm:$0xff]  ;;  %v914_v61 = vld [vmem:[#allocation5 + $0x498] sm:$0xff] }
 0x136   : > { %1722 = vmatmul.mubr.f32.gmra.mrb[26].mxu1 %v692_v30  ;;  %4887 = vmatprep.subr.bf16.mxu0 %v4886_v27  ;;  %v4902_v27 = vpack.c.bf16 %v1222_v17, %v1220_v16  ;;  %v394_v30 = vld [vmem:[%s6381_s28 + $0xd8] sm:$0xff]  ;;  %v1227_v56 = vld [vmem:[#allocation5 + $0xe60] sm:$0xff]  ;;  %v1232_v0 = vld [vmem:[#allocation5 + $0xe88] sm:$0xff] }
 0x137   : > { %2527 = vmatmul.mubr.f32.gmra.mrb[26].mxu0 %v702_v34  ;;  %4569 = vmatpush1.bf16.msra.mxu1 %v4568_v31  ;;  %v4584_v31 = vpack.c.bf16 %v901_v21, %v899_v20  ;;  %v404_v34 = vld [vmem:[%s6381_s28 + $0x128] sm:$0xff]  ;;  %v1234_v1 = vld [vmem:[#allocation5 + $0xe98] sm:$0xff]  ;;  %v911_v4 = vld [vmem:[#allocation5 + $0x480] sm:$0xff] }
 0x138   : > { %4889 = vmatpush1.bf16.msra.mxu0 %v4888_v35  ;;  %1727 = vmatprep.mubr.f32.mxu1 %v718_v38  ;;  %v4904_v35 = vpack.c.bf16 %v1221_v25, %v1219_v24  ;;  %v420_v38 = vld [vmem:[%s6381_s28 + $0x1a8] sm:$0xff]  ;;  %v913_v5 = vld [vmem:[#allocation5 + $0x490] sm:$0xff]  ;;  %v1231_v8 = vld [vmem:[#allocation5 + $0xe80] sm:$0xff] }
 0x139   : > { %2532 = vmatprep.mubr.f32.mxu0 %v728_v42  ;;  %4571 = vmatprep.subr.bf16.mxu1 %v4570_v39  ;;  %v4586_v39 = vpack.c.bf16 %v906_v29, %v904_v28  ;;  %v430_v42 = vld [vmem:[%s6381_s28 + $0x1f8] sm:$0xff]  ;;  %v1233_v9 = vld [vmem:[#allocation5 + $0xe90] sm:$0xff]  ;;  %v916_v12 = vld [vmem:[#allocation5 + $0x4a8] sm:$0xff] }
 0x13a   : > { %1728 = vmatmul.mubr.f32.gmra.mrb[28].mxu1 %v717_v46  ;;  %4891 = vmatprep.subr.bf16.mxu0 %v4890_v43  ;;  %v4906_v43 = vpack.c.bf16 %v1226_v33, %v1224_v32  ;;  %v419_v46 = vld [vmem:[%s6381_s28 + $0x1a0] sm:$0xff]  ;;  %v918_v13 = vld [vmem:[#allocation5 + $0x4b8] sm:$0xff]  ;;  %v1236_v16 = vld [vmem:[#allocation5 + $0xea8] sm:$0xff] }
 0x13b   : > { %2533 = vmatmul.mubr.f32.gmra.mrb[28].mxu0 %v727_v50  ;;  %4573 = vmatpush1.bf16.msra.mxu1 %v4572_v47  ;;  %v4588_v47 = vpack.c.bf16 %v905_v37, %v903_v36  ;;  %v429_v50 = vld [vmem:[%s6381_s28 + $0x1f0] sm:$0xff]  ;;  %v1238_v17 = vld [vmem:[#allocation5 + $0xeb8] sm:$0xff]  ;;  %v915_v20 = vld [vmem:[#allocation5 + $0x4a0] sm:$0xff] }
 0x13c   : > { %4893 = vmatpush1.bf16.msra.mxu0 %v4892_v51  ;;  %1733 = vmatprep.mubr.f32.mxu1 %v743_v54  ;;  %v4908_v51 = vpack.c.bf16 %v1225_v41, %v1223_v40  ;;  %v445_v54 = vld [vmem:[%s6381_s28 + $0x270] sm:$0xff]  ;;  %v1235_v24 = vld [vmem:[#allocation5 + $0xea0] sm:$0xff]  ;;  %v920_v28 = vld [vmem:[#allocation5 + $0x4c8] sm:$0xff] }
 0x13d   : > { %2538 = vmatprep.mubr.f32.mxu0 %v753_v58  ;;  %4575 = vmatprep.subr.bf16.mxu1 %v4574_v55  ;;  %v4590_v55 = vpack.c.bf16 %v910_v45, %v908_v44  ;;  %v455_v58 = vld [vmem:[%s6381_s28 + $0x2c0] sm:$0xff]  ;;  %v917_v21 = vld [vmem:[#allocation5 + $0x4b0] sm:$0xff]  ;;  %v922_v29 = vld [vmem:[#allocation5 + $0x4d8] sm:$0xff] }
 0x13e   : > { %1734 = vmatmul.mubr.f32.gmra.mrb[30].mxu1 %v742_v62  ;;  %4895 = vmatprep.subr.bf16.mxu0 %v4894_v59  ;;  %v4910_v59 = vpack.c.bf16 %v1230_v49, %v1228_v48  ;;  %v444_v62 = vld [vmem:[%s6381_s28 + $0x268] sm:$0xff]  ;;  %v1237_v25 = vld [vmem:[#allocation5 + $0xeb0] sm:$0xff]  ;;  %v1242_v33 = vld [vmem:[#allocation5 + $0xed8] sm:$0xff] }
 0x13f   : > { %2539 = vmatmul.mubr.f32.gmra.mrb[30].mxu0 %v752_v2  ;;  %4577 = vmatpush1.bf16.msra.mxu1 %v4576_v63  ;;  %v4592_v63 = vpack.c.bf16 %v909_v53, %v907_v52  ;;  %v454_v2 = vld [vmem:[%s6381_s28 + $0x2b8] sm:$0xff]  ;;  %v1240_v32 = vld [vmem:[#allocation5 + $0xec8] sm:$0xff]  ;;  %v919_v36 = vld [vmem:[#allocation5 + $0x4c0] sm:$0xff] }
 0x140   : > { %4897 = vmatpush1.bf16.msra.mxu0 %v4896_v3  ;;  %1804 = vmatprep.mubr.f32.mxu1 %v370_v6  ;;  %v4912_v3 = vpack.c.bf16 %v1229_v57, %v1227_v56  ;;  %v470_v6 = vld [vmem:[%s6381_s28 + $0x338] sm:$0xff]  ;;  %v921_v37 = vld [vmem:[#allocation5 + $0x4d0] sm:$0xff]  ;;  %v1239_v40 = vld [vmem:[#allocation5 + $0xec0] sm:$0xff] }
 0x141   : > { %2609 = vmatprep.mubr.f32.mxu0 %v380_v10  ;;  %4579 = vmatprep.subr.bf16.mxu1 %v4578_v7  ;;  %v4594_v7 = vpack.c.bf16 %v914_v61, %v912_v60  ;;  %v480_v10 = vld [vmem:[%s6381_s28 + $0x388] sm:$0xff]  ;;  %v1241_v41 = vld [vmem:[#allocation5 + $0xed0] sm:$0xff]  ;;  %v926_v45 = vld [vmem:[#allocation5 + $0x4f8] sm:$0xff] }
 0x142   : > { %1805 = vmatmul.mubr.f32.vlgmr.msra.gmra.mrb[0].mxu1 %v369_v14  ;;  %4899 = vmatprep.subr.bf16.mxu0 %v4898_v11  ;;  %v4914_v11 = vpack.c.bf16 %v1234_v1, %v1232_v0  ;;  %v469_v14 = vld [vmem:[%s6381_s28 + $0x330] sm:$0xff]  ;;  %v924_v44 = vld [vmem:[#allocation5 + $0x4e8] sm:$0xff]  ;;  %v1246_v49 = vld [vmem:[#allocation5 + $0xef8] sm:$0xff] }
 0x143   : > { %2610 = vmatmul.mubr.f32.vlgmr.msra.gmra.mrb[0].mxu0 %v379_v18  ;;  %4581 = vmatpush1.bf16.msra.mxu1 %v4580_v15  ;;  %v4596_v15 = vpack.c.bf16 %v913_v5, %v911_v4  ;;  %v479_v18 = vld [vmem:[%s6381_s28 + $0x380] sm:$0xff]  ;;  %v1244_v48 = vld [vmem:[#allocation5 + $0xee8] sm:$0xff]  ;;  %v925_v53 = vld [vmem:[#allocation5 + $0x4f0] sm:$0xff] }
 0x144   : > { %4901 = vmatpush1.bf16.msra.mxu0 %v4900_v19  ;;  %1810 = vmatprep.mubr.f32.mxu1 %v395_v22  ;;  %v4916_v19 = vpack.c.bf16 %v1233_v9, %v1231_v8  ;;  %v495_v22 = vld [vmem:[%s6381_s28 + $0x400] sm:$0xff]  ;;  %v1245_v57 = vld [vmem:[#allocation5 + $0xef0] sm:$0xff]  ;;  %v928_v60 = vld [vmem:[#allocation5 + $0x508] sm:$0xff] }
 0x145   : > { %2615 = vmatprep.mubr.f32.mxu0 %v405_v26  ;;  %4583 = vmatprep.subr.bf16.mxu1 %v4582_v23  ;;  %v4598_v23 = vpack.c.bf16 %v918_v13, %v916_v12  ;;  %v505_v26 = vld [vmem:[%s6381_s28 + $0x450] sm:$0xff]  ;;  %v923_v52 = vld [vmem:[#allocation5 + $0x4e0] sm:$0xff]  ;;  %v930_v61 = vld [vmem:[#allocation5 + $0x518] sm:$0xff] }
 0x146   : > { %1811 = vmatmul.mubr.f32.gmra.mrb[2].mxu1 %v394_v30  ;;  %4903 = vmatprep.subr.bf16.mxu0 %v4902_v27  ;;  %v4918_v27 = vpack.c.bf16 %v1238_v17, %v1236_v16  ;;  %v494_v30 = vld [vmem:[%s6381_s28 + $0x3f8] sm:$0xff]  ;;  %v1243_v56 = vld [vmem:[#allocation5 + $0xee0] sm:$0xff]  ;;  %v1248_v0 = vld [vmem:[#allocation5 + $0xf08] sm:$0xff] }
 0x147   : > { %2616 = vmatmul.mubr.f32.gmra.mrb[2].mxu0 %v404_v34  ;;  %4585 = vmatpush1.bf16.msra.mxu1 %v4584_v31  ;;  %v4600_v31 = vpack.c.bf16 %v917_v21, %v915_v20  ;;  %v504_v34 = vld [vmem:[%s6381_s28 + $0x448] sm:$0xff]  ;;  %v1250_v1 = vld [vmem:[#allocation5 + $0xf18] sm:$0xff]  ;;  %v927_v4 = vld [vmem:[#allocation5 + $0x500] sm:$0xff] }
 0x148   : > { %4905 = vmatpush1.bf16.msra.mxu0 %v4904_v35  ;;  %1816 = vmatprep.mubr.f32.mxu1 %v420_v38  ;;  %v4920_v35 = vpack.c.bf16 %v1237_v25, %v1235_v24  ;;  %v520_v38 = vld [vmem:[%s6381_s28 + $0x4c8] sm:$0xff]  ;;  %v929_v5 = vld [vmem:[#allocation5 + $0x510] sm:$0xff]  ;;  %v1247_v8 = vld [vmem:[#allocation5 + $0xf00] sm:$0xff] }
 0x149   : > { %2621 = vmatprep.mubr.f32.mxu0 %v430_v42  ;;  %4587 = vmatprep.subr.bf16.mxu1 %v4586_v39  ;;  %v4602_v39 = vpack.c.bf16 %v922_v29, %v920_v28  ;;  %v530_v42 = vld [vmem:[%s6381_s28 + $0x518] sm:$0xff]  ;;  %v1249_v9 = vld [vmem:[#allocation5 + $0xf10] sm:$0xff]  ;;  %v932_v12 = vld [vmem:[#allocation5 + $0x528] sm:$0xff] }
 0x14a   : > { %1817 = vmatmul.mubr.f32.gmra.mrb[4].mxu1 %v419_v46  ;;  %4907 = vmatprep.subr.bf16.mxu0 %v4906_v43  ;;  %v4922_v43 = vpack.c.bf16 %v1242_v33, %v1240_v32  ;;  %v519_v46 = vld [vmem:[%s6381_s28 + $0x4c0] sm:$0xff]  ;;  %v934_v13 = vld [vmem:[#allocation5 + $0x538] sm:$0xff]  ;;  %v1252_v16 = vld [vmem:[#allocation5 + $0xf28] sm:$0xff] }
 0x14b   : > { %2622 = vmatmul.mubr.f32.gmra.mrb[4].mxu0 %v429_v50  ;;  %4589 = vmatpush1.bf16.msra.mxu1 %v4588_v47  ;;  %v4604_v47 = vpack.c.bf16 %v921_v37, %v919_v36  ;;  %v529_v50 = vld [vmem:[%s6381_s28 + $0x510] sm:$0xff]  ;;  %v1254_v17 = vld [vmem:[#allocation5 + $0xf38] sm:$0xff]  ;;  %v931_v20 = vld [vmem:[#allocation5 + $0x520] sm:$0xff] }
 0x14c   : > { %4909 = vmatpush1.bf16.msra.mxu0 %v4908_v51  ;;  %1822 = vmatprep.mubr.f32.mxu1 %v445_v54  ;;  %v4924_v51 = vpack.c.bf16 %v1241_v41, %v1239_v40  ;;  %v545_v54 = vld [vmem:[%s6381_s28 + $0x590] sm:$0xff]  ;;  %v1251_v24 = vld [vmem:[#allocation5 + $0xf20] sm:$0xff]  ;;  %v936_v28 = vld [vmem:[#allocation5 + $0x548] sm:$0xff] }
 0x14d   : > { %2627 = vmatprep.mubr.f32.mxu0 %v455_v58  ;;  %4591 = vmatprep.subr.bf16.mxu1 %v4590_v55  ;;  %v4606_v55 = vpack.c.bf16 %v926_v45, %v924_v44  ;;  %v555_v58 = vld [vmem:[%s6381_s28 + $0x5e0] sm:$0xff]  ;;  %v933_v21 = vld [vmem:[#allocation5 + $0x530] sm:$0xff]  ;;  %v938_v29 = vld [vmem:[#allocation5 + $0x558] sm:$0xff] }
 0x14e   : > { %1823 = vmatmul.mubr.f32.gmra.mrb[6].mxu1 %v444_v62  ;;  %4911 = vmatprep.subr.bf16.mxu0 %v4910_v59  ;;  %v4926_v59 = vpack.c.bf16 %v1246_v49, %v1244_v48  ;;  %v544_v62 = vld [vmem:[%s6381_s28 + $0x588] sm:$0xff]  ;;  %v1253_v25 = vld [vmem:[#allocation5 + $0xf30] sm:$0xff]  ;;  %v1258_v33 = vld [vmem:[#allocation5 + $0xf58] sm:$0xff] }
 0x14f   : > { %2628 = vmatmul.mubr.f32.gmra.mrb[6].mxu0 %v454_v2  ;;  %4593 = vmatpush1.bf16.msra.mxu1 %v4592_v63  ;;  %v4608_v63 = vpack.c.bf16 %v925_v53, %v923_v52  ;;  %v554_v2 = vld [vmem:[%s6381_s28 + $0x5d8] sm:$0xff]  ;;  %v1256_v32 = vld [vmem:[#allocation5 + $0xf48] sm:$0xff]  ;;  %v935_v36 = vld [vmem:[#allocation5 + $0x540] sm:$0xff] }
 0x150   : > { %4913 = vmatpush1.bf16.msra.mxu0 %v4912_v3  ;;  %1828 = vmatprep.mubr.f32.mxu1 %v470_v6  ;;  %v4928_v3 = vpack.c.bf16 %v1245_v57, %v1243_v56  ;;  %v570_v6 = vld [vmem:[%s6381_s28 + $0x658] sm:$0xff]  ;;  %v937_v37 = vld [vmem:[#allocation5 + $0x550] sm:$0xff]  ;;  %v1255_v40 = vld [vmem:[#allocation5 + $0xf40] sm:$0xff] }
 0x151   : > { %2633 = vmatprep.mubr.f32.mxu0 %v480_v10  ;;  %4595 = vmatprep.subr.bf16.mxu1 %v4594_v7  ;;  %v4610_v7 = vpack.c.bf16 %v930_v61, %v928_v60  ;;  %v580_v10 = vld [vmem:[%s6381_s28 + $0x6a8] sm:$0xff]  ;;  %v1257_v41 = vld [vmem:[#allocation5 + $0xf50] sm:$0xff]  ;;  %v942_v45 = vld [vmem:[#allocation5 + $0x578] sm:$0xff] }
 0x152   : > { %1829 = vmatmul.mubr.f32.gmra.mrb[8].mxu1 %v469_v14  ;;  %4915 = vmatprep.subr.bf16.mxu0 %v4914_v11  ;;  %v4930_v11 = vpack.c.bf16 %v1250_v1, %v1248_v0  ;;  %v569_v14 = vld [vmem:[%s6381_s28 + $0x650] sm:$0xff]  ;;  %v940_v44 = vld [vmem:[#allocation5 + $0x568] sm:$0xff]  ;;  %v1262_v49 = vld [vmem:[#allocation5 + $0xf78] sm:$0xff] }
 0x153   : > { %2634 = vmatmul.mubr.f32.gmra.mrb[8].mxu0 %v479_v18  ;;  %4597 = vmatpush1.bf16.msra.mxu1 %v4596_v15  ;;  %v4612_v15 = vpack.c.bf16 %v929_v5, %v927_v4  ;;  %v579_v18 = vld [vmem:[%s6381_s28 + $0x6a0] sm:$0xff]  ;;  %v1260_v48 = vld [vmem:[#allocation5 + $0xf68] sm:$0xff]  ;;  %v941_v53 = vld [vmem:[#allocation5 + $0x570] sm:$0xff] }
 0x154   : > { %4917 = vmatpush1.bf16.msra.mxu0 %v4916_v19  ;;  %1834 = vmatprep.mubr.f32.mxu1 %v495_v22  ;;  %v4932_v19 = vpack.c.bf16 %v1249_v9, %v1247_v8  ;;  %v595_v22 = vld [vmem:[%s6381_s28 + $0x720] sm:$0xff]  ;;  %v1261_v57 = vld [vmem:[#allocation5 + $0xf70] sm:$0xff]  ;;  %v944_v60 = vld [vmem:[#allocation5 + $0x588] sm:$0xff] }
 0x155   : > { %2639 = vmatprep.mubr.f32.mxu0 %v505_v26  ;;  %4599 = vmatprep.subr.bf16.mxu1 %v4598_v23  ;;  %v4614_v23 = vpack.c.bf16 %v934_v13, %v932_v12  ;;  %v605_v26 = vld [vmem:[%s6381_s28 + $0x770] sm:$0xff]  ;;  %v939_v52 = vld [vmem:[#allocation5 + $0x560] sm:$0xff]  ;;  %v946_v61 = vld [vmem:[#allocation5 + $0x598] sm:$0xff] }
 0x156   : > { %1835 = vmatmul.mubr.f32.gmra.mrb[10].mxu1 %v494_v30  ;;  %4919 = vmatprep.subr.bf16.mxu0 %v4918_v27  ;;  %v4934_v27 = vpack.c.bf16 %v1254_v17, %v1252_v16  ;;  %v594_v30 = vld [vmem:[%s6381_s28 + $0x718] sm:$0xff]  ;;  %v1259_v56 = vld [vmem:[#allocation5 + $0xf60] sm:$0xff]  ;;  %v1264_v0 = vld [vmem:[#allocation5 + $0xf88] sm:$0xff] }
 0x157   : > { %2640 = vmatmul.mubr.f32.gmra.mrb[10].mxu0 %v504_v34  ;;  %4601 = vmatpush1.bf16.msra.mxu1 %v4600_v31  ;;  %v4616_v31 = vpack.c.bf16 %v933_v21, %v931_v20  ;;  %v604_v34 = vld [vmem:[%s6381_s28 + $0x768] sm:$0xff]  ;;  %v1266_v1 = vld [vmem:[#allocation5 + $0xf98] sm:$0xff]  ;;  %v943_v4 = vld [vmem:[#allocation5 + $0x580] sm:$0xff] }
 0x158   : > { %4921 = vmatpush1.bf16.msra.mxu0 %v4920_v35  ;;  %1840 = vmatprep.mubr.f32.mxu1 %v520_v38  ;;  %v4936_v35 = vpack.c.bf16 %v1253_v25, %v1251_v24  ;;  %v620_v38 = vld [vmem:[%s6381_s28 + $0x7e8] sm:$0xff]  ;;  %v945_v5 = vld [vmem:[#allocation5 + $0x590] sm:$0xff]  ;;  %v1263_v8 = vld [vmem:[#allocation5 + $0xf80] sm:$0xff] }
 0x159   : > { %2645 = vmatprep.mubr.f32.mxu0 %v530_v42  ;;  %4603 = vmatprep.subr.bf16.mxu1 %v4602_v39  ;;  %v4618_v39 = vpack.c.bf16 %v938_v29, %v936_v28  ;;  %v630_v42 = vld [vmem:[%s6381_s28 + $0x838] sm:$0xff]  ;;  %v1265_v9 = vld [vmem:[#allocation5 + $0xf90] sm:$0xff]  ;;  %v948_v12 = vld [vmem:[#allocation5 + $0x5a8] sm:$0xff] }
 0x15a   : > { %1841 = vmatmul.mubr.f32.gmra.mrb[12].mxu1 %v519_v46  ;;  %4923 = vmatprep.subr.bf16.mxu0 %v4922_v43  ;;  %v4938_v43 = vpack.c.bf16 %v1258_v33, %v1256_v32  ;;  %v619_v46 = vld [vmem:[%s6381_s28 + $0x7e0] sm:$0xff]  ;;  %v950_v13 = vld [vmem:[#allocation5 + $0x5b8] sm:$0xff]  ;;  %v1268_v16 = vld [vmem:[#allocation5 + $0xfa8] sm:$0xff] }
 0x15b   : > { %2646 = vmatmul.mubr.f32.gmra.mrb[12].mxu0 %v529_v50  ;;  %4605 = vmatpush1.bf16.msra.mxu1 %v4604_v47  ;;  %v4620_v47 = vpack.c.bf16 %v937_v37, %v935_v36  ;;  %v629_v50 = vld [vmem:[%s6381_s28 + $0x830] sm:$0xff]  ;;  %v1270_v17 = vld [vmem:[#allocation5 + $0xfb8] sm:$0xff]  ;;  %v947_v20 = vld [vmem:[#allocation5 + $0x5a0] sm:$0xff] }
 0x15c   : > { %4925 = vmatpush1.bf16.msra.mxu0 %v4924_v51  ;;  %1846 = vmatprep.mubr.f32.mxu1 %v545_v54  ;;  %v4940_v51 = vpack.c.bf16 %v1257_v41, %v1255_v40  ;;  %v645_v54 = vld [vmem:[%s6381_s28 + $0x8b0] sm:$0xff]  ;;  %v1267_v24 = vld [vmem:[#allocation5 + $0xfa0] sm:$0xff]  ;;  %v952_v28 = vld [vmem:[#allocation5 + $0x5c8] sm:$0xff] }
 0x15d   : > { %2651 = vmatprep.mubr.f32.mxu0 %v555_v58  ;;  %4607 = vmatprep.subr.bf16.mxu1 %v4606_v55  ;;  %v4622_v55 = vpack.c.bf16 %v942_v45, %v940_v44  ;;  %v655_v58 = vld [vmem:[%s6381_s28 + $0x900] sm:$0xff]  ;;  %v949_v21 = vld [vmem:[#allocation5 + $0x5b0] sm:$0xff]  ;;  %v954_v29 = vld [vmem:[#allocation5 + $0x5d8] sm:$0xff] }
 0x15e   : > { %1847 = vmatmul.mubr.f32.gmra.mrb[14].mxu1 %v544_v62  ;;  %4927 = vmatprep.subr.bf16.mxu0 %v4926_v59  ;;  %v4942_v59 = vpack.c.bf16 %v1262_v49, %v1260_v48  ;;  %v644_v62 = vld [vmem:[%s6381_s28 + $0x8a8] sm:$0xff]  ;;  %v1269_v25 = vld [vmem:[#allocation5 + $0xfb0] sm:$0xff]  ;;  %v1274_v33 = vld [vmem:[#allocation5 + $0xfd8] sm:$0xff] }
 0x15f   : > { %2652 = vmatmul.mubr.f32.gmra.mrb[14].mxu0 %v554_v2  ;;  %4609 = vmatpush1.bf16.msra.mxu1 %v4608_v63  ;;  %v4624_v63 = vpack.c.bf16 %v941_v53, %v939_v52  ;;  %v654_v2 = vld [vmem:[%s6381_s28 + $0x8f8] sm:$0xff]  ;;  %v1272_v32 = vld [vmem:[#allocation5 + $0xfc8] sm:$0xff]  ;;  %v951_v36 = vld [vmem:[#allocation5 + $0x5c0] sm:$0xff] }
 0x160   : > { %4929 = vmatpush1.bf16.msra.mxu0 %v4928_v3  ;;  %1852 = vmatprep.mubr.f32.mxu1 %v570_v6  ;;  %v4944_v3 = vpack.c.bf16 %v1261_v57, %v1259_v56  ;;  %v670_v6 = vld [vmem:[%s6381_s28 + $0x978] sm:$0xff]  ;;  %v953_v37 = vld [vmem:[#allocation5 + $0x5d0] sm:$0xff]  ;;  %v1271_v40 = vld [vmem:[#allocation5 + $0xfc0] sm:$0xff] }
 0x161   : > { %2657 = vmatprep.mubr.f32.mxu0 %v580_v10  ;;  %4611 = vmatprep.subr.bf16.mxu1 %v4610_v7  ;;  %v4626_v7 = vpack.c.bf16 %v946_v61, %v944_v60  ;;  %v680_v10 = vld [vmem:[%s6381_s28 + $0x9c8] sm:$0xff]  ;;  %v1273_v41 = vld [vmem:[#allocation5 + $0xfd0] sm:$0xff]  ;;  %v958_v45 = vld [vmem:[#allocation5 + $0x5f8] sm:$0xff] }
 0x162   : > { %1853 = vmatmul.mubr.f32.gmra.mrb[16].mxu1 %v569_v14  ;;  %4931 = vmatprep.subr.bf16.mxu0 %v4930_v11  ;;  %v4946_v11 = vpack.c.bf16 %v1266_v1, %v1264_v0  ;;  %v669_v14 = vld [vmem:[%s6381_s28 + $0x970] sm:$0xff]  ;;  %v956_v44 = vld [vmem:[#allocation5 + $0x5e8] sm:$0xff]  ;;  %v1278_v49 = vld [vmem:[#allocation5 + $0xff8] sm:$0xff] }
 0x163   : > { %2658 = vmatmul.mubr.f32.gmra.mrb[16].mxu0 %v579_v18  ;;  %4613 = vmatpush1.bf16.msra.mxu1 %v4612_v15  ;;  %v4628_v15 = vpack.c.bf16 %v945_v5, %v943_v4  ;;  %v679_v18 = vld [vmem:[%s6381_s28 + $0x9c0] sm:$0xff]  ;;  %v1276_v48 = vld [vmem:[#allocation5 + $0xfe8] sm:$0xff]  ;;  %v957_v53 = vld [vmem:[#allocation5 + $0x5f0] sm:$0xff] }
 0x164   : > { %4933 = vmatpush1.bf16.msra.mxu0 %v4932_v19  ;;  %1858 = vmatprep.mubr.f32.mxu1 %v595_v22  ;;  %v4948_v19 = vpack.c.bf16 %v1265_v9, %v1263_v8  ;;  %v695_v22 = vld [vmem:[%s6381_s28 + $0xa40] sm:$0xff]  ;;  %v1277_v57 = vld [vmem:[#allocation5 + $0xff0] sm:$0xff]  ;;  %v960_v60 = vld [vmem:[#allocation5 + $0x608] sm:$0xff] }
 0x165   : > { %2663 = vmatprep.mubr.f32.mxu0 %v605_v26  ;;  %4615 = vmatprep.subr.bf16.mxu1 %v4614_v23  ;;  %v4630_v23 = vpack.c.bf16 %v950_v13, %v948_v12  ;;  %v705_v26 = vld [vmem:[%s6381_s28 + $0xa90] sm:$0xff]  ;;  %v955_v52 = vld [vmem:[#allocation5 + $0x5e0] sm:$0xff]  ;;  %v962_v61 = vld [vmem:[#allocation5 + $0x618] sm:$0xff] }
 0x166   : > { %1859 = vmatmul.mubr.f32.gmra.mrb[18].mxu1 %v594_v30  ;;  %4935 = vmatprep.subr.bf16.mxu0 %v4934_v27  ;;  %v4950_v27 = vpack.c.bf16 %v1270_v17, %v1268_v16  ;;  %v694_v30 = vld [vmem:[%s6381_s28 + $0xa38] sm:$0xff]  ;;  %v1275_v56 = vld [vmem:[#allocation5 + $0xfe0] sm:$0xff]  ;;  %v1280_v0 = vld [vmem:[#allocation5 + $0x1008] sm:$0xff] }
 0x167   : > { %2664 = vmatmul.mubr.f32.gmra.mrb[18].mxu0 %v604_v34  ;;  %4617 = vmatpush1.bf16.msra.mxu1 %v4616_v31  ;;  %v4632_v31 = vpack.c.bf16 %v949_v21, %v947_v20  ;;  %v704_v34 = vld [vmem:[%s6381_s28 + $0xa88] sm:$0xff]  ;;  %v1282_v1 = vld [vmem:[#allocation5 + $0x1018] sm:$0xff]  ;;  %v959_v4 = vld [vmem:[#allocation5 + $0x600] sm:$0xff] }
 0x168   : > { %4937 = vmatpush1.bf16.msra.mxu0 %v4936_v35  ;;  %1864 = vmatprep.mubr.f32.mxu1 %v620_v38  ;;  %v4952_v35 = vpack.c.bf16 %v1269_v25, %v1267_v24  ;;  %v720_v38 = vld [vmem:[%s6381_s28 + $0xb08] sm:$0xff]  ;;  %v961_v5 = vld [vmem:[#allocation5 + $0x610] sm:$0xff]  ;;  %v1279_v8 = vld [vmem:[#allocation5 + $0x1000] sm:$0xff] }
 0x169   : > { %2669 = vmatprep.mubr.f32.mxu0 %v630_v42  ;;  %4619 = vmatprep.subr.bf16.mxu1 %v4618_v39  ;;  %v4634_v39 = vpack.c.bf16 %v954_v29, %v952_v28  ;;  %v730_v42 = vld [vmem:[%s6381_s28 + $0xb58] sm:$0xff]  ;;  %v1281_v9 = vld [vmem:[#allocation5 + $0x1010] sm:$0xff]  ;;  %v964_v12 = vld [vmem:[#allocation5 + $0x628] sm:$0xff] }
 0x16a   : > { %1865 = vmatmul.mubr.f32.gmra.mrb[20].mxu1 %v619_v46  ;;  %4939 = vmatprep.subr.bf16.mxu0 %v4938_v43  ;;  %v4954_v43 = vpack.c.bf16 %v1274_v33, %v1272_v32  ;;  %v719_v46 = vld [vmem:[%s6381_s28 + $0xb00] sm:$0xff]  ;;  %v966_v13 = vld [vmem:[#allocation5 + $0x638] sm:$0xff]  ;;  %v1284_v16 = vld [vmem:[#allocation5 + $0x1028] sm:$0xff] }
 0x16b   : > { %2670 = vmatmul.mubr.f32.gmra.mrb[20].mxu0 %v629_v50  ;;  %4621 = vmatpush1.bf16.msra.mxu1 %v4620_v47  ;;  %v4636_v47 = vpack.c.bf16 %v953_v37, %v951_v36  ;;  %v729_v50 = vld [vmem:[%s6381_s28 + $0xb50] sm:$0xff]  ;;  %v1286_v17 = vld [vmem:[#allocation5 + $0x1038] sm:$0xff]  ;;  %v963_v20 = vld [vmem:[#allocation5 + $0x620] sm:$0xff] }
 0x16c   : > { %4941 = vmatpush1.bf16.msra.mxu0 %v4940_v51  ;;  %1870 = vmatprep.mubr.f32.mxu1 %v645_v54  ;;  %v4956_v51 = vpack.c.bf16 %v1273_v41, %v1271_v40  ;;  %v745_v54 = vld [vmem:[%s6381_s28 + $0xbd0] sm:$0xff]  ;;  %v1283_v24 = vld [vmem:[#allocation5 + $0x1020] sm:$0xff]  ;;  %v968_v28 = vld [vmem:[#allocation5 + $0x648] sm:$0xff] }
 0x16d   : > { %2675 = vmatprep.mubr.f32.mxu0 %v655_v58  ;;  %4623 = vmatprep.subr.bf16.mxu1 %v4622_v55  ;;  %v4638_v55 = vpack.c.bf16 %v958_v45, %v956_v44  ;;  %v755_v58 = vld [vmem:[%s6381_s28 + $0xc20] sm:$0xff]  ;;  %v965_v21 = vld [vmem:[#allocation5 + $0x630] sm:$0xff]  ;;  %v970_v29 = vld [vmem:[#allocation5 + $0x658] sm:$0xff] }
 0x16e   : > { %1871 = vmatmul.mubr.f32.gmra.mrb[22].mxu1 %v644_v62  ;;  %4943 = vmatprep.subr.bf16.mxu0 %v4942_v59  ;;  %v4958_v59 = vpack.c.bf16 %v1278_v49, %v1276_v48  ;;  %v744_v62 = vld [vmem:[%s6381_s28 + $0xbc8] sm:$0xff]  ;;  %v1285_v25 = vld [vmem:[#allocation5 + $0x1030] sm:$0xff]  ;;  %v1290_v33 = vld [vmem:[#allocation5 + $0x1058] sm:$0xff] }
 0x16f   : > { %2676 = vmatmul.mubr.f32.gmra.mrb[22].mxu0 %v654_v2  ;;  %4625 = vmatpush1.bf16.msra.mxu1 %v4624_v63  ;;  %v4640_v63 = vpack.c.bf16 %v957_v53, %v955_v52  ;;  %v754_v2 = vld [vmem:[%s6381_s28 + $0xc18] sm:$0xff]  ;;  %v1288_v32 = vld [vmem:[#allocation5 + $0x1048] sm:$0xff]  ;;  %v967_v36 = vld [vmem:[#allocation5 + $0x640] sm:$0xff] }
 0x170   : > { %4945 = vmatpush1.bf16.msra.mxu0 %v4944_v3  ;;  %1876 = vmatprep.mubr.f32.mxu1 %v670_v6  ;;  %v4960_v3 = vpack.c.bf16 %v1277_v57, %v1275_v56  ;;  %v372_v6 = vld [vmem:[%s6381_s28 + $0x28] sm:$0xff]  ;;  %v969_v37 = vld [vmem:[#allocation5 + $0x650] sm:$0xff]  ;;  %v1287_v40 = vld [vmem:[#allocation5 + $0x1040] sm:$0xff] }
 0x171   : > { %2681 = vmatprep.mubr.f32.mxu0 %v680_v10  ;;  %4627 = vmatprep.subr.bf16.mxu1 %v4626_v7  ;;  %v4642_v7 = vpack.c.bf16 %v962_v61, %v960_v60  ;;  %v382_v10 = vld [vmem:[%s6381_s28 + $0x78] sm:$0xff]  ;;  %v1289_v41 = vld [vmem:[#allocation5 + $0x1050] sm:$0xff]  ;;  %v972_v44 = vld [vmem:[#allocation5 + $0x668] sm:$0xff] }
 0x172   : > { %1877 = vmatmul.mubr.f32.gmra.mrb[24].mxu1 %v669_v14  ;;  %4947 = vmatprep.subr.bf16.mxu0 %v4946_v11  ;;  %v4962_v11 = vpack.c.bf16 %v1282_v1, %v1280_v0  ;;  %v371_v14 = vld [vmem:[%s6381_s28 + $0x20] sm:$0xff]  ;;  %v974_v45 = vld [vmem:[#allocation5 + $0x678] sm:$0xff]  ;;  %v1292_v48 = vld [vmem:[#allocation5 + $0x1068] sm:$0xff] }
 0x173   : > { %2682 = vmatmul.mubr.f32.gmra.mrb[24].mxu0 %v679_v18  ;;  %4629 = vmatpush1.bf16.msra.mxu1 %v4628_v15  ;;  %v4644_v15 = vpack.c.bf16 %v961_v5, %v959_v4  ;;  %v381_v18 = vld [vmem:[%s6381_s28 + $0x70] sm:$0xff]  ;;  %v1294_v49 = vld [vmem:[#allocation5 + $0x1078] sm:$0xff]  ;;  %v971_v52 = vld [vmem:[#allocation5 + $0x660] sm:$0xff] }
 0x174   : > { %4949 = vmatpush1.bf16.msra.mxu0 %v4948_v19  ;;  %1882 = vmatprep.mubr.f32.mxu1 %v695_v22  ;;  %v4964_v19 = vpack.c.bf16 %v1281_v9, %v1279_v8  ;;  %v397_v22 = vld [vmem:[%s6381_s28 + $0xf0] sm:$0xff]  ;;  %v1291_v56 = vld [vmem:[#allocation5 + $0x1060] sm:$0xff]  ;;  %v976_v60 = vld [vmem:[#allocation5 + $0x688] sm:$0xff] }
 0x175   : > { %2687 = vmatprep.mubr.f32.mxu0 %v705_v26  ;;  %4631 = vmatprep.subr.bf16.mxu1 %v4630_v23  ;;  %v4646_v23 = vpack.c.bf16 %v966_v13, %v964_v12  ;;  %v407_v26 = vld [vmem:[%s6381_s28 + $0x140] sm:$0xff]  ;;  %v973_v53 = vld [vmem:[#allocation5 + $0x670] sm:$0xff]  ;;  %v978_v61 = vld [vmem:[#allocation5 + $0x698] sm:$0xff] }
 0x176   : > { %1883 = vmatmul.mubr.f32.gmra.mrb[26].mxu1 %v694_v30  ;;  %4951 = vmatprep.subr.bf16.mxu0 %v4950_v27  ;;  %v4966_v27 = vpack.c.bf16 %v1286_v17, %v1284_v16  ;;  %v396_v30 = vld [vmem:[%s6381_s28 + $0xe8] sm:$0xff]  ;;  %v1293_v57 = vld [vmem:[#allocation5 + $0x1070] sm:$0xff]  ;;  %v1298_v1 = vld [vmem:[#allocation5 + $0x1098] sm:$0xff] }
 0x177   : > { %2688 = vmatmul.mubr.f32.gmra.mrb[26].mxu0 %v704_v34  ;;  %4633 = vmatpush1.bf16.msra.mxu1 %v4632_v31  ;;  %v4648_v31 = vpack.c.bf16 %v965_v21, %v963_v20  ;;  %v406_v34 = vld [vmem:[%s6381_s28 + $0x138] sm:$0xff]  ;;  %v1296_v0 = vld [vmem:[#allocation5 + $0x1088] sm:$0xff]  ;;  %v975_v4 = vld [vmem:[#allocation5 + $0x680] sm:$0xff] }
 0x178   : > { %4953 = vmatpush1.bf16.msra.mxu0 %v4952_v35  ;;  %1888 = vmatprep.mubr.f32.mxu1 %v720_v38  ;;  %v4968_v35 = vpack.c.bf16 %v1285_v25, %v1283_v24  ;;  %v422_v38 = vld [vmem:[%s6381_s28 + $0x1b8] sm:$0xff]  ;;  %v977_v5 = vld [vmem:[#allocation5 + $0x690] sm:$0xff]  ;;  %v1295_v8 = vld [vmem:[#allocation5 + $0x1080] sm:$0xff] }
 0x179   : > { %2693 = vmatprep.mubr.f32.mxu0 %v730_v42  ;;  %4635 = vmatprep.subr.bf16.mxu1 %v4634_v39  ;;  %v4650_v39 = vpack.c.bf16 %v970_v29, %v968_v28  ;;  %v432_v42 = vld [vmem:[%s6381_s28 + $0x208] sm:$0xff]  ;;  %v1297_v9 = vld [vmem:[#allocation5 + $0x1090] sm:$0xff]  ;;  %v982_v13 = vld [vmem:[#allocation5 + $0x6b8] sm:$0xff] }
 0x17a   : > { %1889 = vmatmul.mubr.f32.gmra.mrb[28].mxu1 %v719_v46  ;;  %4955 = vmatprep.subr.bf16.mxu0 %v4954_v43  ;;  %v4970_v43 = vpack.c.bf16 %v1290_v33, %v1288_v32  ;;  %v421_v46 = vld [vmem:[%s6381_s28 + $0x1b0] sm:$0xff]  ;;  %v980_v12 = vld [vmem:[#allocation5 + $0x6a8] sm:$0xff]  ;;  %v1302_v17 = vld [vmem:[#allocation5 + $0x10b8] sm:$0xff] }
 0x17b   : > { %2694 = vmatmul.mubr.f32.gmra.mrb[28].mxu0 %v729_v50  ;;  %4637 = vmatpush1.bf16.msra.mxu1 %v4636_v47  ;;  %v4652_v47 = vpack.c.bf16 %v969_v37, %v967_v36  ;;  %v431_v50 = vld [vmem:[%s6381_s28 + $0x200] sm:$0xff]  ;;  %v1300_v16 = vld [vmem:[#allocation5 + $0x10a8] sm:$0xff]  ;;  %v981_v21 = vld [vmem:[#allocation5 + $0x6b0] sm:$0xff] }
 0x17c   : > { %4957 = vmatpush1.bf16.msra.mxu0 %v4956_v51  ;;  %1894 = vmatprep.mubr.f32.mxu1 %v745_v54  ;;  %v4972_v51 = vpack.c.bf16 %v1289_v41, %v1287_v40  ;;  %v447_v54 = vld [vmem:[%s6381_s28 + $0x280] sm:$0xff]  ;;  %v1301_v25 = vld [vmem:[#allocation5 + $0x10b0] sm:$0xff]  ;;  %v984_v28 = vld [vmem:[#allocation5 + $0x6c8] sm:$0xff] }
 0x17d   : > { %2699 = vmatprep.mubr.f32.mxu0 %v755_v58  ;;  %4639 = vmatprep.subr.bf16.mxu1 %v4638_v55  ;;  %v4654_v55 = vpack.c.bf16 %v974_v45, %v972_v44  ;;  %v457_v58 = vld [vmem:[%s6381_s28 + $0x2d0] sm:$0xff]  ;;  %v979_v20 = vld [vmem:[#allocation5 + $0x6a0] sm:$0xff]  ;;  %v986_v29 = vld [vmem:[#allocation5 + $0x6d8] sm:$0xff] }
 0x17e   : > { %1895 = vmatmul.mubr.f32.gmra.mrb[30].mxu1 %v744_v62  ;;  %4959 = vmatprep.subr.bf16.mxu0 %v4958_v59  ;;  %v4974_v59 = vpack.c.bf16 %v1294_v49, %v1292_v48  ;;  %v446_v62 = vld [vmem:[%s6381_s28 + $0x278] sm:$0xff]  ;;  %v1299_v24 = vld [vmem:[#allocation5 + $0x10a0] sm:$0xff]  ;;  %v1304_v32 = vld [vmem:[#allocation5 + $0x10c8] sm:$0xff] }
 0x17f   : > { %2700 = vmatmul.mubr.f32.gmra.mrb[30].mxu0 %v754_v2  ;;  %4641 = vmatpush1.bf16.msra.mxu1 %v4640_v63  ;;  %v4656_v63 = vpack.c.bf16 %v973_v53, %v971_v52  ;;  %v456_v2 = vld [vmem:[%s6381_s28 + $0x2c8] sm:$0xff]  ;;  %v1306_v33 = vld [vmem:[#allocation5 + $0x10d8] sm:$0xff]  ;;  %v983_v36 = vld [vmem:[#allocation5 + $0x6c0] sm:$0xff] }
 0x180   : > { %4961 = vmatpush1.bf16.msra.mxu0 %v4960_v3  ;;  %1965 = vmatprep.mubr.f32.mxu1 %v372_v6  ;;  %v4976_v3 = vpack.c.bf16 %v1293_v57, %v1291_v56  ;;  %v472_v6 = vld [vmem:[%s6381_s28 + $0x348] sm:$0xff]  ;;  %v985_v37 = vld [vmem:[#allocation5 + $0x6d0] sm:$0xff]  ;;  %v1303_v40 = vld [vmem:[#allocation5 + $0x10c0] sm:$0xff] }
 0x181   : > { %2770 = vmatprep.mubr.f32.mxu0 %v382_v10  ;;  %4643 = vmatprep.subr.bf16.mxu1 %v4642_v7  ;;  %v4658_v7 = vpack.c.bf16 %v978_v61, %v976_v60  ;;  %v482_v10 = vld [vmem:[%s6381_s28 + $0x398] sm:$0xff]  ;;  %v1305_v41 = vld [vmem:[#allocation5 + $0x10d0] sm:$0xff]  ;;  %v988_v44 = vld [vmem:[#allocation5 + $0x6e8] sm:$0xff] }
 0x182   : > { %1966 = vmatmul.mubr.f32.vlgmr.msra.gmra.mrb[0].mxu1 %v371_v14  ;;  %4963 = vmatprep.subr.bf16.mxu0 %v4962_v11  ;;  %v4978_v11 = vpack.c.bf16 %v1298_v1, %v1296_v0  ;;  %v471_v14 = vld [vmem:[%s6381_s28 + $0x340] sm:$0xff]  ;;  %v990_v45 = vld [vmem:[#allocation5 + $0x6f8] sm:$0xff]  ;;  %v1308_v48 = vld [vmem:[#allocation5 + $0x10e8] sm:$0xff] }
 0x183   : > { %2771 = vmatmul.mubr.f32.vlgmr.msra.gmra.mrb[0].mxu0 %v381_v18  ;;  %4645 = vmatpush1.bf16.msra.mxu1 %v4644_v15  ;;  %v4660_v15 = vpack.c.bf16 %v977_v5, %v975_v4  ;;  %v481_v18 = vld [vmem:[%s6381_s28 + $0x390] sm:$0xff]  ;;  %v1310_v49 = vld [vmem:[#allocation5 + $0x10f8] sm:$0xff]  ;;  %v987_v52 = vld [vmem:[#allocation5 + $0x6e0] sm:$0xff] }
 0x184   : > { %4965 = vmatpush1.bf16.msra.mxu0 %v4964_v19  ;;  %1971 = vmatprep.mubr.f32.mxu1 %v397_v22  ;;  %v4980_v19 = vpack.c.bf16 %v1297_v9, %v1295_v8  ;;  %v497_v22 = vld [vmem:[%s6381_s28 + $0x410] sm:$0xff]  ;;  %v1307_v56 = vld [vmem:[#allocation5 + $0x10e0] sm:$0xff]  ;;  %v992_v60 = vld [vmem:[#allocation5 + $0x708] sm:$0xff] }
 0x185   : > { %2776 = vmatprep.mubr.f32.mxu0 %v407_v26  ;;  %4647 = vmatprep.subr.bf16.mxu1 %v4646_v23  ;;  %v4662_v23 = vpack.c.bf16 %v982_v13, %v980_v12  ;;  %v507_v26 = vld [vmem:[%s6381_s28 + $0x460] sm:$0xff]  ;;  %v989_v53 = vld [vmem:[#allocation5 + $0x6f0] sm:$0xff]  ;;  %v994_v61 = vld [vmem:[#allocation5 + $0x718] sm:$0xff] }
 0x186   : > { %1972 = vmatmul.mubr.f32.gmra.mrb[2].mxu1 %v396_v30  ;;  %4967 = vmatprep.subr.bf16.mxu0 %v4966_v27  ;;  %v4982_v27 = vpack.c.bf16 %v1302_v17, %v1300_v16  ;;  %v496_v30 = vld [vmem:[%s6381_s28 + $0x408] sm:$0xff]  ;;  %v1309_v57 = vld [vmem:[#allocation5 + $0x10f0] sm:$0xff]  ;;  %v1314_v1 = vld [vmem:[#allocation5 + $0x1118] sm:$0xff] }
 0x187   : > { %2777 = vmatmul.mubr.f32.gmra.mrb[2].mxu0 %v406_v34  ;;  %4649 = vmatpush1.bf16.msra.mxu1 %v4648_v31  ;;  %v4664_v31 = vpack.c.bf16 %v981_v21, %v979_v20  ;;  %v506_v34 = vld [vmem:[%s6381_s28 + $0x458] sm:$0xff]  ;;  %v1312_v0 = vld [vmem:[#allocation5 + $0x1108] sm:$0xff]  ;;  %v991_v4 = vld [vmem:[#allocation5 + $0x700] sm:$0xff] }
 0x188   : > { %4969 = vmatpush1.bf16.msra.mxu0 %v4968_v35  ;;  %1977 = vmatprep.mubr.f32.mxu1 %v422_v38  ;;  %v4984_v35 = vpack.c.bf16 %v1301_v25, %v1299_v24  ;;  %v522_v38 = vld [vmem:[%s6381_s28 + $0x4d8] sm:$0xff]  ;;  %v993_v5 = vld [vmem:[#allocation5 + $0x710] sm:$0xff]  ;;  %v1311_v8 = vld [vmem:[#allocation5 + $0x1100] sm:$0xff] }
 0x189   : > { %2782 = vmatprep.mubr.f32.mxu0 %v432_v42  ;;  %4651 = vmatprep.subr.bf16.mxu1 %v4650_v39  ;;  %v4666_v39 = vpack.c.bf16 %v986_v29, %v984_v28  ;;  %v532_v42 = vld [vmem:[%s6381_s28 + $0x528] sm:$0xff]  ;;  %v1313_v9 = vld [vmem:[#allocation5 + $0x1110] sm:$0xff]  ;;  %v998_v13 = vld [vmem:[#allocation5 + $0x738] sm:$0xff] }
 0x18a   : > { %1978 = vmatmul.mubr.f32.gmra.mrb[4].mxu1 %v421_v46  ;;  %4971 = vmatprep.subr.bf16.mxu0 %v4970_v43  ;;  %v4986_v43 = vpack.c.bf16 %v1306_v33, %v1304_v32  ;;  %v521_v46 = vld [vmem:[%s6381_s28 + $0x4d0] sm:$0xff]  ;;  %v996_v12 = vld [vmem:[#allocation5 + $0x728] sm:$0xff]  ;;  %v1318_v17 = vld [vmem:[#allocation5 + $0x1138] sm:$0xff] }
 0x18b   : > { %2783 = vmatmul.mubr.f32.gmra.mrb[4].mxu0 %v431_v50  ;;  %4653 = vmatpush1.bf16.msra.mxu1 %v4652_v47  ;;  %v4668_v47 = vpack.c.bf16 %v985_v37, %v983_v36  ;;  %v531_v50 = vld [vmem:[%s6381_s28 + $0x520] sm:$0xff]  ;;  %v1316_v16 = vld [vmem:[#allocation5 + $0x1128] sm:$0xff]  ;;  %v997_v21 = vld [vmem:[#allocation5 + $0x730] sm:$0xff] }
 0x18c   : > { %4973 = vmatpush1.bf16.msra.mxu0 %v4972_v51  ;;  %1983 = vmatprep.mubr.f32.mxu1 %v447_v54  ;;  %v4988_v51 = vpack.c.bf16 %v1305_v41, %v1303_v40  ;;  %v547_v54 = vld [vmem:[%s6381_s28 + $0x5a0] sm:$0xff]  ;;  %v1317_v25 = vld [vmem:[#allocation5 + $0x1130] sm:$0xff]  ;;  %v1000_v28 = vld [vmem:[#allocation5 + $0x748] sm:$0xff] }
 0x18d   : > { %2788 = vmatprep.mubr.f32.mxu0 %v457_v58  ;;  %4655 = vmatprep.subr.bf16.mxu1 %v4654_v55  ;;  %v4670_v55 = vpack.c.bf16 %v990_v45, %v988_v44  ;;  %v557_v58 = vld [vmem:[%s6381_s28 + $0x5f0] sm:$0xff]  ;;  %v995_v20 = vld [vmem:[#allocation5 + $0x720] sm:$0xff]  ;;  %v1002_v29 = vld [vmem:[#allocation5 + $0x758] sm:$0xff] }
 0x18e   : > { %1984 = vmatmul.mubr.f32.gmra.mrb[6].mxu1 %v446_v62  ;;  %4975 = vmatprep.subr.bf16.mxu0 %v4974_v59  ;;  %v4990_v59 = vpack.c.bf16 %v1310_v49, %v1308_v48  ;;  %v546_v62 = vld [vmem:[%s6381_s28 + $0x598] sm:$0xff]  ;;  %v1315_v24 = vld [vmem:[#allocation5 + $0x1120] sm:$0xff]  ;;  %v1320_v32 = vld [vmem:[#allocation5 + $0x1148] sm:$0xff] }
 0x18f   : > { %2789 = vmatmul.mubr.f32.gmra.mrb[6].mxu0 %v456_v2  ;;  %4657 = vmatpush1.bf16.msra.mxu1 %v4656_v63  ;;  %v4672_v63 = vpack.c.bf16 %v989_v53, %v987_v52  ;;  %v556_v2 = vld [vmem:[%s6381_s28 + $0x5e8] sm:$0xff]  ;;  %v1322_v33 = vld [vmem:[#allocation5 + $0x1158] sm:$0xff]  ;;  %v999_v36 = vld [vmem:[#allocation5 + $0x740] sm:$0xff] }
 0x190   : > { %4977 = vmatpush1.bf16.msra.mxu0 %v4976_v3  ;;  %1989 = vmatprep.mubr.f32.mxu1 %v472_v6  ;;  %v4992_v3 = vpack.c.bf16 %v1309_v57, %v1307_v56  ;;  %v572_v6 = vld [vmem:[%s6381_s28 + $0x668] sm:$0xff]  ;;  %v1001_v37 = vld [vmem:[#allocation5 + $0x750] sm:$0xff]  ;;  %v1319_v40 = vld [vmem:[#allocation5 + $0x1140] sm:$0xff] }
 0x191   : > { %2794 = vmatprep.mubr.f32.mxu0 %v482_v10  ;;  %4659 = vmatprep.subr.bf16.mxu1 %v4658_v7  ;;  %v4674_v7 = vpack.c.bf16 %v994_v61, %v992_v60  ;;  %v582_v10 = vld [vmem:[%s6381_s28 + $0x6b8] sm:$0xff]  ;;  %v1321_v41 = vld [vmem:[#allocation5 + $0x1150] sm:$0xff]  ;;  %v1004_v44 = vld [vmem:[#allocation5 + $0x768] sm:$0xff] }
 0x192   : > { %1990 = vmatmul.mubr.f32.gmra.mrb[8].mxu1 %v471_v14  ;;  %4979 = vmatprep.subr.bf16.mxu0 %v4978_v11  ;;  %v4994_v11 = vpack.c.bf16 %v1314_v1, %v1312_v0  ;;  %v571_v14 = vld [vmem:[%s6381_s28 + $0x660] sm:$0xff]  ;;  %v1006_v45 = vld [vmem:[#allocation5 + $0x778] sm:$0xff]  ;;  %v1324_v48 = vld [vmem:[#allocation5 + $0x1168] sm:$0xff] }
 0x193   : > { %2795 = vmatmul.mubr.f32.gmra.mrb[8].mxu0 %v481_v18  ;;  %4661 = vmatpush1.bf16.msra.mxu1 %v4660_v15  ;;  %v4676_v15 = vpack.c.bf16 %v993_v5, %v991_v4  ;;  %v581_v18 = vld [vmem:[%s6381_s28 + $0x6b0] sm:$0xff]  ;;  %v1326_v49 = vld [vmem:[#allocation5 + $0x1178] sm:$0xff]  ;;  %v1003_v52 = vld [vmem:[#allocation5 + $0x760] sm:$0xff] }
 0x194   : > { %4981 = vmatpush1.bf16.msra.mxu0 %v4980_v19  ;;  %1995 = vmatprep.mubr.f32.mxu1 %v497_v22  ;;  %v4996_v19 = vpack.c.bf16 %v1313_v9, %v1311_v8  ;;  %v597_v22 = vld [vmem:[%s6381_s28 + $0x730] sm:$0xff]  ;;  %v1323_v56 = vld [vmem:[#allocation5 + $0x1160] sm:$0xff]  ;;  %v1008_v60 = vld [vmem:[#allocation5 + $0x788] sm:$0xff] }
 0x195   : > { %2800 = vmatprep.mubr.f32.mxu0 %v507_v26  ;;  %4663 = vmatprep.subr.bf16.mxu1 %v4662_v23  ;;  %v4678_v23 = vpack.c.bf16 %v998_v13, %v996_v12  ;;  %v607_v26 = vld [vmem:[%s6381_s28 + $0x780] sm:$0xff]  ;;  %v1005_v53 = vld [vmem:[#allocation5 + $0x770] sm:$0xff]  ;;  %v1010_v61 = vld [vmem:[#allocation5 + $0x798] sm:$0xff] }
 0x196   : > { %1996 = vmatmul.mubr.f32.gmra.mrb[10].mxu1 %v496_v30  ;;  %4983 = vmatprep.subr.bf16.mxu0 %v4982_v27  ;;  %v4998_v27 = vpack.c.bf16 %v1318_v17, %v1316_v16  ;;  %v596_v30 = vld [vmem:[%s6381_s28 + $0x728] sm:$0xff]  ;;  %v1325_v57 = vld [vmem:[#allocation5 + $0x1170] sm:$0xff]  ;;  %v1330_v1 = vld [vmem:[#allocation5 + $0x1198] sm:$0xff] }
 0x197   : > { %2801 = vmatmul.mubr.f32.gmra.mrb[10].mxu0 %v506_v34  ;;  %4665 = vmatpush1.bf16.msra.mxu1 %v4664_v31  ;;  %v4680_v31 = vpack.c.bf16 %v997_v21, %v995_v20  ;;  %v606_v34 = vld [vmem:[%s6381_s28 + $0x778] sm:$0xff]  ;;  %v1328_v0 = vld [vmem:[#allocation5 + $0x1188] sm:$0xff]  ;;  %v1007_v4 = vld [vmem:[#allocation5 + $0x780] sm:$0xff] }
 0x198   : > { %4985 = vmatpush1.bf16.msra.mxu0 %v4984_v35  ;;  %2001 = vmatprep.mubr.f32.mxu1 %v522_v38  ;;  %v5000_v35 = vpack.c.bf16 %v1317_v25, %v1315_v24  ;;  %v622_v38 = vld [vmem:[%s6381_s28 + $0x7f8] sm:$0xff]  ;;  %v1009_v5 = vld [vmem:[#allocation5 + $0x790] sm:$0xff]  ;;  %v1327_v8 = vld [vmem:[#allocation5 + $0x1180] sm:$0xff] }
 0x199   : > { %2806 = vmatprep.mubr.f32.mxu0 %v532_v42  ;;  %4667 = vmatprep.subr.bf16.mxu1 %v4666_v39  ;;  %v4682_v39 = vpack.c.bf16 %v1002_v29, %v1000_v28  ;;  %v632_v42 = vld [vmem:[%s6381_s28 + $0x848] sm:$0xff]  ;;  %v1329_v9 = vld [vmem:[#allocation5 + $0x1190] sm:$0xff]  ;;  %v1014_v13 = vld [vmem:[#allocation5 + $0x7b8] sm:$0xff] }
 0x19a   : > { %2002 = vmatmul.mubr.f32.gmra.mrb[12].mxu1 %v521_v46  ;;  %4987 = vmatprep.subr.bf16.mxu0 %v4986_v43  ;;  %v5002_v43 = vpack.c.bf16 %v1322_v33, %v1320_v32  ;;  %v621_v46 = vld [vmem:[%s6381_s28 + $0x7f0] sm:$0xff]  ;;  %v1012_v12 = vld [vmem:[#allocation5 + $0x7a8] sm:$0xff]  ;;  %v1334_v17 = vld [vmem:[#allocation5 + $0x11b8] sm:$0xff] }
 0x19b   : > { %2807 = vmatmul.mubr.f32.gmra.mrb[12].mxu0 %v531_v50  ;;  %4669 = vmatpush1.bf16.msra.mxu1 %v4668_v47  ;;  %v4684_v47 = vpack.c.bf16 %v1001_v37, %v999_v36  ;;  %v631_v50 = vld [vmem:[%s6381_s28 + $0x840] sm:$0xff]  ;;  %v1332_v16 = vld [vmem:[#allocation5 + $0x11a8] sm:$0xff]  ;;  %v1013_v21 = vld [vmem:[#allocation5 + $0x7b0] sm:$0xff] }
 0x19c   : > { %4989 = vmatpush1.bf16.msra.mxu0 %v4988_v51  ;;  %2007 = vmatprep.mubr.f32.mxu1 %v547_v54  ;;  %v5004_v51 = vpack.c.bf16 %v1321_v41, %v1319_v40  ;;  %v647_v54 = vld [vmem:[%s6381_s28 + $0x8c0] sm:$0xff]  ;;  %v1333_v25 = vld [vmem:[#allocation5 + $0x11b0] sm:$0xff]  ;;  %v1016_v28 = vld [vmem:[#allocation5 + $0x7c8] sm:$0xff] }
 0x19d   : > { %2812 = vmatprep.mubr.f32.mxu0 %v557_v58  ;;  %4671 = vmatprep.subr.bf16.mxu1 %v4670_v55  ;;  %v4686_v55 = vpack.c.bf16 %v1006_v45, %v1004_v44  ;;  %v657_v58 = vld [vmem:[%s6381_s28 + $0x910] sm:$0xff]  ;;  %v1011_v20 = vld [vmem:[#allocation5 + $0x7a0] sm:$0xff]  ;;  %v1018_v29 = vld [vmem:[#allocation5 + $0x7d8] sm:$0xff] }
 0x19e   : > { %2008 = vmatmul.mubr.f32.gmra.mrb[14].mxu1 %v546_v62  ;;  %4991 = vmatprep.subr.bf16.mxu0 %v4990_v59  ;;  %v5006_v59 = vpack.c.bf16 %v1326_v49, %v1324_v48  ;;  %v646_v62 = vld [vmem:[%s6381_s28 + $0x8b8] sm:$0xff]  ;;  %v1331_v24 = vld [vmem:[#allocation5 + $0x11a0] sm:$0xff]  ;;  %v1336_v32 = vld [vmem:[#allocation5 + $0x11c8] sm:$0xff] }
 0x19f   : > { %2813 = vmatmul.mubr.f32.gmra.mrb[14].mxu0 %v556_v2  ;;  %4673 = vmatpush1.bf16.msra.mxu1 %v4672_v63  ;;  %v4688_v63 = vpack.c.bf16 %v1005_v53, %v1003_v52  ;;  %v656_v2 = vld [vmem:[%s6381_s28 + $0x908] sm:$0xff]  ;;  %v1338_v33 = vld [vmem:[#allocation5 + $0x11d8] sm:$0xff]  ;;  %v1015_v36 = vld [vmem:[#allocation5 + $0x7c0] sm:$0xff] }
 0x1a0   : > { %4993 = vmatpush1.bf16.msra.mxu0 %v4992_v3  ;;  %2013 = vmatprep.mubr.f32.mxu1 %v572_v6  ;;  %v5008_v3 = vpack.c.bf16 %v1325_v57, %v1323_v56  ;;  %v672_v6 = vld [vmem:[%s6381_s28 + $0x988] sm:$0xff]  ;;  %v1017_v37 = vld [vmem:[#allocation5 + $0x7d0] sm:$0xff]  ;;  %v1335_v40 = vld [vmem:[#allocation5 + $0x11c0] sm:$0xff] }
 0x1a1   : > { %2818 = vmatprep.mubr.f32.mxu0 %v582_v10  ;;  %4675 = vmatprep.subr.bf16.mxu1 %v4674_v7  ;;  %v4690_v7 = vpack.c.bf16 %v1010_v61, %v1008_v60  ;;  %v682_v10 = vld [vmem:[%s6381_s28 + $0x9d8] sm:$0xff]  ;;  %v1337_v41 = vld [vmem:[#allocation5 + $0x11d0] sm:$0xff]  ;;  %v1020_v44 = vld [vmem:[#allocation5 + $0x7e8] sm:$0xff] }
 0x1a2   : > { %2014 = vmatmul.mubr.f32.gmra.mrb[16].mxu1 %v571_v14  ;;  %4995 = vmatprep.subr.bf16.mxu0 %v4994_v11  ;;  %v5010_v11 = vpack.c.bf16 %v1330_v1, %v1328_v0  ;;  %v671_v14 = vld [vmem:[%s6381_s28 + $0x980] sm:$0xff]  ;;  %v1022_v45 = vld [vmem:[#allocation5 + $0x7f8] sm:$0xff]  ;;  %v1340_v48 = vld [vmem:[#allocation5 + $0x11e8] sm:$0xff] }
 0x1a3   : > { %2819 = vmatmul.mubr.f32.gmra.mrb[16].mxu0 %v581_v18  ;;  %4677 = vmatpush1.bf16.msra.mxu1 %v4676_v15  ;;  %v4692_v15 = vpack.c.bf16 %v1009_v5, %v1007_v4  ;;  %v681_v18 = vld [vmem:[%s6381_s28 + $0x9d0] sm:$0xff]  ;;  %v1342_v49 = vld [vmem:[#allocation5 + $0x11f8] sm:$0xff]  ;;  %v1019_v52 = vld [vmem:[#allocation5 + $0x7e0] sm:$0xff] }
 0x1a4   : > { %4997 = vmatpush1.bf16.msra.mxu0 %v4996_v19  ;;  %2019 = vmatprep.mubr.f32.mxu1 %v597_v22  ;;  %v5012_v19 = vpack.c.bf16 %v1329_v9, %v1327_v8  ;;  %v697_v22 = vld [vmem:[%s6381_s28 + $0xa50] sm:$0xff]  ;;  %v1339_v56 = vld [vmem:[#allocation5 + $0x11e0] sm:$0xff]  ;;  %v1024_v60 = vld [vmem:[#allocation5 + $0x808] sm:$0xff] }
 0x1a5   : > { %2824 = vmatprep.mubr.f32.mxu0 %v607_v26  ;;  %4679 = vmatprep.subr.bf16.mxu1 %v4678_v23  ;;  %v4694_v23 = vpack.c.bf16 %v1014_v13, %v1012_v12  ;;  %v707_v26 = vld [vmem:[%s6381_s28 + $0xaa0] sm:$0xff]  ;;  %v1021_v53 = vld [vmem:[#allocation5 + $0x7f0] sm:$0xff]  ;;  %v1026_v61 = vld [vmem:[#allocation5 + $0x818] sm:$0xff] }
 0x1a6   : > { %2020 = vmatmul.mubr.f32.gmra.mrb[18].mxu1 %v596_v30  ;;  %4999 = vmatprep.subr.bf16.mxu0 %v4998_v27  ;;  %v5014_v27 = vpack.c.bf16 %v1334_v17, %v1332_v16  ;;  %v696_v30 = vld [vmem:[%s6381_s28 + $0xa48] sm:$0xff]  ;;  %v1341_v57 = vld [vmem:[#allocation5 + $0x11f0] sm:$0xff]  ;;  %v1346_v1 = vld [vmem:[#allocation5 + $0x1218] sm:$0xff] }
 0x1a7   : > { %2825 = vmatmul.mubr.f32.gmra.mrb[18].mxu0 %v606_v34  ;;  %4681 = vmatpush1.bf16.msra.mxu1 %v4680_v31  ;;  %v4696_v31 = vpack.c.bf16 %v1013_v21, %v1011_v20  ;;  %v706_v34 = vld [vmem:[%s6381_s28 + $0xa98] sm:$0xff]  ;;  %v1344_v0 = vld [vmem:[#allocation5 + $0x1208] sm:$0xff]  ;;  %v1023_v4 = vld [vmem:[#allocation5 + $0x800] sm:$0xff] }
 0x1a8   : > { %5001 = vmatpush1.bf16.msra.mxu0 %v5000_v35  ;;  %2025 = vmatprep.mubr.f32.mxu1 %v622_v38  ;;  %v5016_v35 = vpack.c.bf16 %v1333_v25, %v1331_v24  ;;  %v722_v38 = vld [vmem:[%s6381_s28 + $0xb18] sm:$0xff]  ;;  %v1025_v5 = vld [vmem:[#allocation5 + $0x810] sm:$0xff]  ;;  %v1343_v8 = vld [vmem:[#allocation5 + $0x1200] sm:$0xff] }
 0x1a9   : > { %2830 = vmatprep.mubr.f32.mxu0 %v632_v42  ;;  %4683 = vmatprep.subr.bf16.mxu1 %v4682_v39  ;;  %v4698_v39 = vpack.c.bf16 %v1018_v29, %v1016_v28  ;;  %v732_v42 = vld [vmem:[%s6381_s28 + $0xb68] sm:$0xff]  ;;  %v1345_v9 = vld [vmem:[#allocation5 + $0x1210] sm:$0xff]  ;;  %v1030_v13 = vld [vmem:[#allocation5 + $0x838] sm:$0xff] }
 0x1aa   : > { %2026 = vmatmul.mubr.f32.gmra.mrb[20].mxu1 %v621_v46  ;;  %5003 = vmatprep.subr.bf16.mxu0 %v5002_v43  ;;  %v5018_v43 = vpack.c.bf16 %v1338_v33, %v1336_v32  ;;  %v721_v46 = vld [vmem:[%s6381_s28 + $0xb10] sm:$0xff]  ;;  %v1028_v12 = vld [vmem:[#allocation5 + $0x828] sm:$0xff]  ;;  %v1350_v17 = vld [vmem:[#allocation5 + $0x1238] sm:$0xff] }
 0x1ab   : > { %2831 = vmatmul.mubr.f32.gmra.mrb[20].mxu0 %v631_v50  ;;  %4685 = vmatpush1.bf16.msra.mxu1 %v4684_v47  ;;  %v4700_v47 = vpack.c.bf16 %v1017_v37, %v1015_v36  ;;  %v731_v50 = vld [vmem:[%s6381_s28 + $0xb60] sm:$0xff]  ;;  %v1348_v16 = vld [vmem:[#allocation5 + $0x1228] sm:$0xff]  ;;  %v1029_v21 = vld [vmem:[#allocation5 + $0x830] sm:$0xff] }
 0x1ac   : > { %5005 = vmatpush1.bf16.msra.mxu0 %v5004_v51  ;;  %2031 = vmatprep.mubr.f32.mxu1 %v647_v54  ;;  %v5020_v51 = vpack.c.bf16 %v1337_v41, %v1335_v40  ;;  %v747_v54 = vld [vmem:[%s6381_s28 + $0xbe0] sm:$0xff]  ;;  %v1349_v25 = vld [vmem:[#allocation5 + $0x1230] sm:$0xff]  ;;  %v1032_v28 = vld [vmem:[#allocation5 + $0x848] sm:$0xff] }
 0x1ad   : > { %2836 = vmatprep.mubr.f32.mxu0 %v657_v58  ;;  %4687 = vmatprep.subr.bf16.mxu1 %v4686_v55  ;;  %v4702_v55 = vpack.c.bf16 %v1022_v45, %v1020_v44  ;;  %v757_v58 = vld [vmem:[%s6381_s28 + $0xc30] sm:$0xff]  ;;  %v1027_v20 = vld [vmem:[#allocation5 + $0x820] sm:$0xff]  ;;  %v1034_v29 = vld [vmem:[#allocation5 + $0x858] sm:$0xff] }
 0x1ae   : > { %2032 = vmatmul.mubr.f32.gmra.mrb[22].mxu1 %v646_v62  ;;  %5007 = vmatprep.subr.bf16.mxu0 %v5006_v59  ;;  %v5022_v59 = vpack.c.bf16 %v1342_v49, %v1340_v48  ;;  %v746_v62 = vld [vmem:[%s6381_s28 + $0xbd8] sm:$0xff]  ;;  %v1347_v24 = vld [vmem:[#allocation5 + $0x1220] sm:$0xff]  ;;  %v1352_v32 = vld [vmem:[#allocation5 + $0x1248] sm:$0xff] }
 0x1af   : > { %2837 = vmatmul.mubr.f32.gmra.mrb[22].mxu0 %v656_v2  ;;  %4689 = vmatpush1.bf16.msra.mxu1 %v4688_v63  ;;  %v4704_v63 = vpack.c.bf16 %v1021_v53, %v1019_v52  ;;  %v756_v2 = vld [vmem:[%s6381_s28 + $0xc28] sm:$0xff]  ;;  %v1354_v33 = vld [vmem:[#allocation5 + $0x1258] sm:$0xff]  ;;  %v1031_v36 = vld [vmem:[#allocation5 + $0x840] sm:$0xff] }
 0x1b0   : > { %5009 = vmatpush1.bf16.msra.mxu0 %v5008_v3  ;;  %2037 = vmatprep.mubr.f32.mxu1 %v672_v6  ;;  %v5024_v3 = vpack.c.bf16 %v1341_v57, %v1339_v56  ;;  %v374_v6 = vld [vmem:[%s6381_s28 + $0x38] sm:$0xff]  ;;  %v1033_v37 = vld [vmem:[#allocation5 + $0x850] sm:$0xff]  ;;  %v1351_v40 = vld [vmem:[#allocation5 + $0x1240] sm:$0xff] }
 0x1b1   : > { %2842 = vmatprep.mubr.f32.mxu0 %v682_v10  ;;  %4691 = vmatprep.subr.bf16.mxu1 %v4690_v7  ;;  %v4706_v7 = vpack.c.bf16 %v1026_v61, %v1024_v60  ;;  %v384_v10 = vld [vmem:[%s6381_s28 + $0x88] sm:$0xff]  ;;  %v1353_v41 = vld [vmem:[#allocation5 + $0x1250] sm:$0xff]  ;;  %v1038_v45 = vld [vmem:[#allocation5 + $0x878] sm:$0xff] }
 0x1b2   : > { %2038 = vmatmul.mubr.f32.gmra.mrb[24].mxu1 %v671_v14  ;;  %5011 = vmatprep.subr.bf16.mxu0 %v5010_v11  ;;  %v5026_v11 = vpack.c.bf16 %v1346_v1, %v1344_v0  ;;  %v373_v14 = vld [vmem:[%s6381_s28 + $0x30] sm:$0xff]  ;;  %v1036_v44 = vld [vmem:[#allocation5 + $0x868] sm:$0xff]  ;;  %v1358_v49 = vld [vmem:[#allocation5 + $0x1278] sm:$0xff] }
 0x1b3   : > { %2843 = vmatmul.mubr.f32.gmra.mrb[24].mxu0 %v681_v18  ;;  %4693 = vmatpush1.bf16.msra.mxu1 %v4692_v15  ;;  %v4708_v15 = vpack.c.bf16 %v1025_v5, %v1023_v4  ;;  %v383_v18 = vld [vmem:[%s6381_s28 + $0x80] sm:$0xff]  ;;  %v1356_v48 = vld [vmem:[#allocation5 + $0x1268] sm:$0xff]  ;;  %v1037_v53 = vld [vmem:[#allocation5 + $0x870] sm:$0xff] }
 0x1b4   : > { %5013 = vmatpush1.bf16.msra.mxu0 %v5012_v19  ;;  %2043 = vmatprep.mubr.f32.mxu1 %v697_v22  ;;  %v5028_v19 = vpack.c.bf16 %v1345_v9, %v1343_v8  ;;  %v399_v22 = vld [vmem:[%s6381_s28 + $0x100] sm:$0xff]  ;;  %v1357_v57 = vld [vmem:[#allocation5 + $0x1270] sm:$0xff]  ;;  %v1040_v60 = vld [vmem:[#allocation5 + $0x888] sm:$0xff] }
 0x1b5   : > { %2848 = vmatprep.mubr.f32.mxu0 %v707_v26  ;;  %4695 = vmatprep.subr.bf16.mxu1 %v4694_v23  ;;  %v4710_v23 = vpack.c.bf16 %v1030_v13, %v1028_v12  ;;  %v409_v26 = vld [vmem:[%s6381_s28 + $0x150] sm:$0xff]  ;;  %v1035_v52 = vld [vmem:[#allocation5 + $0x860] sm:$0xff]  ;;  %v1042_v61 = vld [vmem:[#allocation5 + $0x898] sm:$0xff] }
 0x1b6   : > { %2044 = vmatmul.mubr.f32.gmra.mrb[26].mxu1 %v696_v30  ;;  %5015 = vmatprep.subr.bf16.mxu0 %v5014_v27  ;;  %v5030_v27 = vpack.c.bf16 %v1350_v17, %v1348_v16  ;;  %v398_v30 = vld [vmem:[%s6381_s28 + $0xf8] sm:$0xff]  ;;  %v1355_v56 = vld [vmem:[#allocation5 + $0x1260] sm:$0xff]  ;;  %v1360_v0 = vld [vmem:[#allocation5 + $0x1288] sm:$0xff] }
 0x1b7   : > { %2849 = vmatmul.mubr.f32.gmra.mrb[26].mxu0 %v706_v34  ;;  %4697 = vmatpush1.bf16.msra.mxu1 %v4696_v31  ;;  %v4712_v31 = vpack.c.bf16 %v1029_v21, %v1027_v20  ;;  %v408_v34 = vld [vmem:[%s6381_s28 + $0x148] sm:$0xff]  ;;  %v1362_v1 = vld [vmem:[#allocation5 + $0x1298] sm:$0xff]  ;;  %v1039_v4 = vld [vmem:[#allocation5 + $0x880] sm:$0xff] }
 0x1b8   : > { %5017 = vmatpush1.bf16.msra.mxu0 %v5016_v35  ;;  %2049 = vmatprep.mubr.f32.mxu1 %v722_v38  ;;  %v5032_v35 = vpack.c.bf16 %v1349_v25, %v1347_v24  ;;  %v424_v38 = vld [vmem:[%s6381_s28 + $0x1c8] sm:$0xff]  ;;  %v1041_v5 = vld [vmem:[#allocation5 + $0x890] sm:$0xff]  ;;  %v1359_v8 = vld [vmem:[#allocation5 + $0x1280] sm:$0xff] }
 0x1b9   : > { %2854 = vmatprep.mubr.f32.mxu0 %v732_v42  ;;  %4699 = vmatprep.subr.bf16.mxu1 %v4698_v39  ;;  %v4714_v39 = vpack.c.bf16 %v1034_v29, %v1032_v28  ;;  %v434_v42 = vld [vmem:[%s6381_s28 + $0x218] sm:$0xff]  ;;  %v1361_v9 = vld [vmem:[#allocation5 + $0x1290] sm:$0xff]  ;;  %v1044_v12 = vld [vmem:[#allocation5 + $0x8a8] sm:$0xff] }
 0x1ba   : > { %2050 = vmatmul.mubr.f32.gmra.mrb[28].mxu1 %v721_v46  ;;  %5019 = vmatprep.subr.bf16.mxu0 %v5018_v43  ;;  %v5034_v43 = vpack.c.bf16 %v1354_v33, %v1352_v32  ;;  %v423_v46 = vld [vmem:[%s6381_s28 + $0x1c0] sm:$0xff]  ;;  %v1046_v13 = vld [vmem:[#allocation5 + $0x8b8] sm:$0xff]  ;;  %v1364_v16 = vld [vmem:[#allocation5 + $0x12a8] sm:$0xff] }
 0x1bb   : > { %2855 = vmatmul.mubr.f32.gmra.mrb[28].mxu0 %v731_v50  ;;  %4701 = vmatpush1.bf16.msra.mxu1 %v4700_v47  ;;  %v4716_v47 = vpack.c.bf16 %v1033_v37, %v1031_v36  ;;  %v433_v50 = vld [vmem:[%s6381_s28 + $0x210] sm:$0xff]  ;;  %v1366_v17 = vld [vmem:[#allocation5 + $0x12b8] sm:$0xff]  ;;  %v1043_v20 = vld [vmem:[#allocation5 + $0x8a0] sm:$0xff] }
 0x1bc   : > { %5021 = vmatpush1.bf16.msra.mxu0 %v5020_v51  ;;  %2055 = vmatprep.mubr.f32.mxu1 %v747_v54  ;;  %v5036_v51 = vpack.c.bf16 %v1353_v41, %v1351_v40  ;;  %v449_v54 = vld [vmem:[%s6381_s28 + $0x290] sm:$0xff]  ;;  %v1363_v24 = vld [vmem:[#allocation5 + $0x12a0] sm:$0xff]  ;;  %v1048_v28 = vld [vmem:[#allocation5 + $0x8c8] sm:$0xff] }
 0x1bd   : > { %2860 = vmatprep.mubr.f32.mxu0 %v757_v58  ;;  %4703 = vmatprep.subr.bf16.mxu1 %v4702_v55  ;;  %v4718_v55 = vpack.c.bf16 %v1038_v45, %v1036_v44  ;;  %v459_v58 = vld [vmem:[%s6381_s28 + $0x2e0] sm:$0xff]  ;;  %v1045_v21 = vld [vmem:[#allocation5 + $0x8b0] sm:$0xff]  ;;  %v1050_v29 = vld [vmem:[#allocation5 + $0x8d8] sm:$0xff] }
 0x1be   : > { %2056 = vmatmul.mubr.f32.gmra.mrb[30].mxu1 %v746_v62  ;;  %5023 = vmatprep.subr.bf16.mxu0 %v5022_v59  ;;  %v5038_v59 = vpack.c.bf16 %v1358_v49, %v1356_v48  ;;  %v448_v62 = vld [vmem:[%s6381_s28 + $0x288] sm:$0xff]  ;;  %v1365_v25 = vld [vmem:[#allocation5 + $0x12b0] sm:$0xff]  ;;  %v1370_v33 = vld [vmem:[#allocation5 + $0x12d8] sm:$0xff] }
 0x1bf   : > { %2861 = vmatmul.mubr.f32.gmra.mrb[30].mxu0 %v756_v2  ;;  %4705 = vmatpush1.bf16.msra.mxu1 %v4704_v63  ;;  %v4720_v63 = vpack.c.bf16 %v1037_v53, %v1035_v52  ;;  %v458_v2 = vld [vmem:[%s6381_s28 + $0x2d8] sm:$0xff]  ;;  %v1368_v32 = vld [vmem:[#allocation5 + $0x12c8] sm:$0xff]  ;;  %v1047_v36 = vld [vmem:[#allocation5 + $0x8c0] sm:$0xff] }
 0x1c0   : > { %5025 = vmatpush1.bf16.msra.mxu0 %v5024_v3  ;;  %2126 = vmatprep.mubr.f32.mxu1 %v374_v6  ;;  %v5040_v3 = vpack.c.bf16 %v1357_v57, %v1355_v56  ;;  %v474_v6 = vld [vmem:[%s6381_s28 + $0x358] sm:$0xff]  ;;  %v1049_v37 = vld [vmem:[#allocation5 + $0x8d0] sm:$0xff]  ;;  %v1367_v40 = vld [vmem:[#allocation5 + $0x12c0] sm:$0xff] }
 0x1c1   : > { %2931 = vmatprep.mubr.f32.mxu0 %v384_v10  ;;  %4707 = vmatprep.subr.bf16.mxu1 %v4706_v7  ;;  %v4722_v7 = vpack.c.bf16 %v1042_v61, %v1040_v60  ;;  %v484_v10 = vld [vmem:[%s6381_s28 + $0x3a8] sm:$0xff]  ;;  %v1369_v41 = vld [vmem:[#allocation5 + $0x12d0] sm:$0xff]  ;;  %v1054_v45 = vld [vmem:[#allocation5 + $0x8f8] sm:$0xff] }
 0x1c2   : > { %2127 = vmatmul.mubr.f32.vlgmr.msra.gmra.mrb[0].mxu1 %v373_v14  ;;  %5027 = vmatprep.subr.bf16.mxu0 %v5026_v11  ;;  %v5042_v11 = vpack.c.bf16 %v1362_v1, %v1360_v0  ;;  %v473_v14 = vld [vmem:[%s6381_s28 + $0x350] sm:$0xff]  ;;  %v1052_v44 = vld [vmem:[#allocation5 + $0x8e8] sm:$0xff]  ;;  %v1374_v49 = vld [vmem:[#allocation5 + $0x12f8] sm:$0xff] }
 0x1c3   : > { %2932 = vmatmul.mubr.f32.vlgmr.msra.gmra.mrb[0].mxu0 %v383_v18  ;;  %4709 = vmatpush1.bf16.msra.mxu1 %v4708_v15  ;;  %v4724_v15 = vpack.c.bf16 %v1041_v5, %v1039_v4  ;;  %v483_v18 = vld [vmem:[%s6381_s28 + $0x3a0] sm:$0xff]  ;;  %v1372_v48 = vld [vmem:[#allocation5 + $0x12e8] sm:$0xff]  ;;  %v1053_v53 = vld [vmem:[#allocation5 + $0x8f0] sm:$0xff] }
 0x1c4   : > { %5029 = vmatpush1.bf16.msra.mxu0 %v5028_v19  ;;  %2132 = vmatprep.mubr.f32.mxu1 %v399_v22  ;;  %v5044_v19 = vpack.c.bf16 %v1361_v9, %v1359_v8  ;;  %v499_v22 = vld [vmem:[%s6381_s28 + $0x420] sm:$0xff]  ;;  %v1373_v57 = vld [vmem:[#allocation5 + $0x12f0] sm:$0xff]  ;;  %v1056_v60 = vld [vmem:[#allocation5 + $0x908] sm:$0xff] }
 0x1c5   : > { %2937 = vmatprep.mubr.f32.mxu0 %v409_v26  ;;  %4711 = vmatprep.subr.bf16.mxu1 %v4710_v23  ;;  %v4726_v23 = vpack.c.bf16 %v1046_v13, %v1044_v12  ;;  %v509_v26 = vld [vmem:[%s6381_s28 + $0x470] sm:$0xff]  ;;  %v1051_v52 = vld [vmem:[#allocation5 + $0x8e0] sm:$0xff]  ;;  %v1058_v61 = vld [vmem:[#allocation5 + $0x918] sm:$0xff] }
 0x1c6   : > { %2133 = vmatmul.mubr.f32.gmra.mrb[2].mxu1 %v398_v30  ;;  %5031 = vmatprep.subr.bf16.mxu0 %v5030_v27  ;;  %v5046_v27 = vpack.c.bf16 %v1366_v17, %v1364_v16  ;;  %v498_v30 = vld [vmem:[%s6381_s28 + $0x418] sm:$0xff]  ;;  %v1371_v56 = vld [vmem:[#allocation5 + $0x12e0] sm:$0xff]  ;;  %v1376_v0 = vld [vmem:[#allocation5 + $0x1308] sm:$0xff] }
 0x1c7   : > { %2938 = vmatmul.mubr.f32.gmra.mrb[2].mxu0 %v408_v34  ;;  %4713 = vmatpush1.bf16.msra.mxu1 %v4712_v31  ;;  %v4728_v31 = vpack.c.bf16 %v1045_v21, %v1043_v20  ;;  %v508_v34 = vld [vmem:[%s6381_s28 + $0x468] sm:$0xff]  ;;  %v1378_v1 = vld [vmem:[#allocation5 + $0x1318] sm:$0xff]  ;;  %v1055_v4 = vld [vmem:[#allocation5 + $0x900] sm:$0xff] }
 0x1c8   : > { %5033 = vmatpush1.bf16.msra.mxu0 %v5032_v35  ;;  %2138 = vmatprep.mubr.f32.mxu1 %v424_v38  ;;  %v5048_v35 = vpack.c.bf16 %v1365_v25, %v1363_v24  ;;  %v524_v38 = vld [vmem:[%s6381_s28 + $0x4e8] sm:$0xff]  ;;  %v1057_v5 = vld [vmem:[#allocation5 + $0x910] sm:$0xff]  ;;  %v1375_v8 = vld [vmem:[#allocation5 + $0x1300] sm:$0xff] }
 0x1c9   : > { %2943 = vmatprep.mubr.f32.mxu0 %v434_v42  ;;  %4715 = vmatprep.subr.bf16.mxu1 %v4714_v39  ;;  %v4730_v39 = vpack.c.bf16 %v1050_v29, %v1048_v28  ;;  %v534_v42 = vld [vmem:[%s6381_s28 + $0x538] sm:$0xff]  ;;  %v1377_v9 = vld [vmem:[#allocation5 + $0x1310] sm:$0xff]  ;;  %v1060_v12 = vld [vmem:[#allocation5 + $0x928] sm:$0xff] }
 0x1ca   : > { %2139 = vmatmul.mubr.f32.gmra.mrb[4].mxu1 %v423_v46  ;;  %5035 = vmatprep.subr.bf16.mxu0 %v5034_v43  ;;  %v5050_v43 = vpack.c.bf16 %v1370_v33, %v1368_v32  ;;  %v523_v46 = vld [vmem:[%s6381_s28 + $0x4e0] sm:$0xff]  ;;  %v1062_v13 = vld [vmem:[#allocation5 + $0x938] sm:$0xff]  ;;  %v1380_v16 = vld [vmem:[#allocation5 + $0x1328] sm:$0xff] }
 0x1cb   : > { %2944 = vmatmul.mubr.f32.gmra.mrb[4].mxu0 %v433_v50  ;;  %4717 = vmatpush1.bf16.msra.mxu1 %v4716_v47  ;;  %v4732_v47 = vpack.c.bf16 %v1049_v37, %v1047_v36  ;;  %v533_v50 = vld [vmem:[%s6381_s28 + $0x530] sm:$0xff]  ;;  %v1382_v17 = vld [vmem:[#allocation5 + $0x1338] sm:$0xff]  ;;  %v1059_v20 = vld [vmem:[#allocation5 + $0x920] sm:$0xff] }
 0x1cc   : > { %5037 = vmatpush1.bf16.msra.mxu0 %v5036_v51  ;;  %2144 = vmatprep.mubr.f32.mxu1 %v449_v54  ;;  %v5052_v51 = vpack.c.bf16 %v1369_v41, %v1367_v40  ;;  %v549_v54 = vld [vmem:[%s6381_s28 + $0x5b0] sm:$0xff]  ;;  %v1379_v24 = vld [vmem:[#allocation5 + $0x1320] sm:$0xff]  ;;  %v1064_v28 = vld [vmem:[#allocation5 + $0x948] sm:$0xff] }
 0x1cd   : > { %2949 = vmatprep.mubr.f32.mxu0 %v459_v58  ;;  %4719 = vmatprep.subr.bf16.mxu1 %v4718_v55  ;;  %v4734_v55 = vpack.c.bf16 %v1054_v45, %v1052_v44  ;;  %v559_v58 = vld [vmem:[%s6381_s28 + $0x600] sm:$0xff]  ;;  %v1061_v21 = vld [vmem:[#allocation5 + $0x930] sm:$0xff]  ;;  %v1066_v29 = vld [vmem:[#allocation5 + $0x958] sm:$0xff] }
 0x1ce   : > { %2145 = vmatmul.mubr.f32.gmra.mrb[6].mxu1 %v448_v62  ;;  %5039 = vmatprep.subr.bf16.mxu0 %v5038_v59  ;;  %v5054_v59 = vpack.c.bf16 %v1374_v49, %v1372_v48  ;;  %v548_v62 = vld [vmem:[%s6381_s28 + $0x5a8] sm:$0xff]  ;;  %v1381_v25 = vld [vmem:[#allocation5 + $0x1330] sm:$0xff]  ;;  %v1386_v33 = vld [vmem:[#allocation5 + $0x1358] sm:$0xff] }
 0x1cf   : > { %2950 = vmatmul.mubr.f32.gmra.mrb[6].mxu0 %v458_v2  ;;  %4721 = vmatpush1.bf16.msra.mxu1 %v4720_v63  ;;  %v4736_v63 = vpack.c.bf16 %v1053_v53, %v1051_v52  ;;  %v558_v2 = vld [vmem:[%s6381_s28 + $0x5f8] sm:$0xff]  ;;  %v1384_v32 = vld [vmem:[#allocation5 + $0x1348] sm:$0xff]  ;;  %v1063_v36 = vld [vmem:[#allocation5 + $0x940] sm:$0xff] }
 0x1d0   : > { %5041 = vmatpush1.bf16.msra.mxu0 %v5040_v3  ;;  %2150 = vmatprep.mubr.f32.mxu1 %v474_v6  ;;  %v5056_v3 = vpack.c.bf16 %v1373_v57, %v1371_v56  ;;  %v574_v6 = vld [vmem:[%s6381_s28 + $0x678] sm:$0xff]  ;;  %v1065_v37 = vld [vmem:[#allocation5 + $0x950] sm:$0xff]  ;;  %v1383_v40 = vld [vmem:[#allocation5 + $0x1340] sm:$0xff] }
 0x1d1   : > { %2955 = vmatprep.mubr.f32.mxu0 %v484_v10  ;;  %4723 = vmatprep.subr.bf16.mxu1 %v4722_v7  ;;  %v4738_v7 = vpack.c.bf16 %v1058_v61, %v1056_v60  ;;  %v584_v10 = vld [vmem:[%s6381_s28 + $0x6c8] sm:$0xff]  ;;  %v1385_v41 = vld [vmem:[#allocation5 + $0x1350] sm:$0xff]  ;;  %v1070_v45 = vld [vmem:[#allocation5 + $0x978] sm:$0xff] }
 0x1d2   : > { %2151 = vmatmul.mubr.f32.gmra.mrb[8].mxu1 %v473_v14  ;;  %5043 = vmatprep.subr.bf16.mxu0 %v5042_v11  ;;  %v5058_v11 = vpack.c.bf16 %v1378_v1, %v1376_v0  ;;  %v573_v14 = vld [vmem:[%s6381_s28 + $0x670] sm:$0xff]  ;;  %v1068_v44 = vld [vmem:[#allocation5 + $0x968] sm:$0xff]  ;;  %v1390_v49 = vld [vmem:[#allocation5 + $0x1378] sm:$0xff] }
 0x1d3   : > { %2956 = vmatmul.mubr.f32.gmra.mrb[8].mxu0 %v483_v18  ;;  %4725 = vmatpush1.bf16.msra.mxu1 %v4724_v15  ;;  %v4740_v15 = vpack.c.bf16 %v1057_v5, %v1055_v4  ;;  %v583_v18 = vld [vmem:[%s6381_s28 + $0x6c0] sm:$0xff]  ;;  %v1388_v48 = vld [vmem:[#allocation5 + $0x1368] sm:$0xff]  ;;  %v1069_v53 = vld [vmem:[#allocation5 + $0x970] sm:$0xff] }
 0x1d4   : > { %5045 = vmatpush1.bf16.msra.mxu0 %v5044_v19  ;;  %2156 = vmatprep.mubr.f32.mxu1 %v499_v22  ;;  %v5060_v19 = vpack.c.bf16 %v1377_v9, %v1375_v8  ;;  %v599_v22 = vld [vmem:[%s6381_s28 + $0x740] sm:$0xff]  ;;  %v1389_v57 = vld [vmem:[#allocation5 + $0x1370] sm:$0xff]  ;;  %v1072_v60 = vld [vmem:[#allocation5 + $0x988] sm:$0xff] }
 0x1d5   : > { %2961 = vmatprep.mubr.f32.mxu0 %v509_v26  ;;  %4727 = vmatprep.subr.bf16.mxu1 %v4726_v23  ;;  %v4742_v23 = vpack.c.bf16 %v1062_v13, %v1060_v12  ;;  %v609_v26 = vld [vmem:[%s6381_s28 + $0x790] sm:$0xff]  ;;  %v1067_v52 = vld [vmem:[#allocation5 + $0x960] sm:$0xff]  ;;  %v1074_v61 = vld [vmem:[#allocation5 + $0x998] sm:$0xff] }
 0x1d6   : > { %2157 = vmatmul.mubr.f32.gmra.mrb[10].mxu1 %v498_v30  ;;  %5047 = vmatprep.subr.bf16.mxu0 %v5046_v27  ;;  %v5062_v27 = vpack.c.bf16 %v1382_v17, %v1380_v16  ;;  %v598_v30 = vld [vmem:[%s6381_s28 + $0x738] sm:$0xff]  ;;  %v1387_v56 = vld [vmem:[#allocation5 + $0x1360] sm:$0xff]  ;;  %v1392_v0 = vld [vmem:[#allocation5 + $0x1388] sm:$0xff] }
 0x1d7   : > { %2962 = vmatmul.mubr.f32.gmra.mrb[10].mxu0 %v508_v34  ;;  %4729 = vmatpush1.bf16.msra.mxu1 %v4728_v31  ;;  %v4744_v31 = vpack.c.bf16 %v1061_v21, %v1059_v20  ;;  %v608_v34 = vld [vmem:[%s6381_s28 + $0x788] sm:$0xff]  ;;  %v1394_v1 = vld [vmem:[#allocation5 + $0x1398] sm:$0xff]  ;;  %v1071_v4 = vld [vmem:[#allocation5 + $0x980] sm:$0xff] }
 0x1d8   : > { %5049 = vmatpush1.bf16.msra.mxu0 %v5048_v35  ;;  %2162 = vmatprep.mubr.f32.mxu1 %v524_v38  ;;  %v5064_v35 = vpack.c.bf16 %v1381_v25, %v1379_v24  ;;  %v624_v38 = vld [vmem:[%s6381_s28 + $0x808] sm:$0xff]  ;;  %v1073_v5 = vld [vmem:[#allocation5 + $0x990] sm:$0xff]  ;;  %v1391_v8 = vld [vmem:[#allocation5 + $0x1380] sm:$0xff] }
 0x1d9   : > { %2967 = vmatprep.mubr.f32.mxu0 %v534_v42  ;;  %4731 = vmatprep.subr.bf16.mxu1 %v4730_v39  ;;  %v4746_v39 = vpack.c.bf16 %v1066_v29, %v1064_v28  ;;  %v634_v42 = vld [vmem:[%s6381_s28 + $0x858] sm:$0xff]  ;;  %v1393_v9 = vld [vmem:[#allocation5 + $0x1390] sm:$0xff]  ;;  %v1076_v12 = vld [vmem:[#allocation5 + $0x9a8] sm:$0xff] }
 0x1da   : > { %2163 = vmatmul.mubr.f32.gmra.mrb[12].mxu1 %v523_v46  ;;  %5051 = vmatprep.subr.bf16.mxu0 %v5050_v43  ;;  %v5066_v43 = vpack.c.bf16 %v1386_v33, %v1384_v32  ;;  %v623_v46 = vld [vmem:[%s6381_s28 + $0x800] sm:$0xff]  ;;  %v1078_v13 = vld [vmem:[#allocation5 + $0x9b8] sm:$0xff]  ;;  %v1396_v16 = vld [vmem:[#allocation5 + $0x13a8] sm:$0xff] }
 0x1db   : > { %2968 = vmatmul.mubr.f32.gmra.mrb[12].mxu0 %v533_v50  ;;  %4733 = vmatpush1.bf16.msra.mxu1 %v4732_v47  ;;  %v4748_v47 = vpack.c.bf16 %v1065_v37, %v1063_v36  ;;  %v633_v50 = vld [vmem:[%s6381_s28 + $0x850] sm:$0xff]  ;;  %v1398_v17 = vld [vmem:[#allocation5 + $0x13b8] sm:$0xff]  ;;  %v1075_v20 = vld [vmem:[#allocation5 + $0x9a0] sm:$0xff] }
 0x1dc   : > { %5053 = vmatpush1.bf16.msra.mxu0 %v5052_v51  ;;  %2168 = vmatprep.mubr.f32.mxu1 %v549_v54  ;;  %v5068_v51 = vpack.c.bf16 %v1385_v41, %v1383_v40  ;;  %v649_v54 = vld [vmem:[%s6381_s28 + $0x8d0] sm:$0xff]  ;;  %v1395_v24 = vld [vmem:[#allocation5 + $0x13a0] sm:$0xff]  ;;  %v1080_v28 = vld [vmem:[#allocation5 + $0x9c8] sm:$0xff] }
 0x1dd   : > { %2973 = vmatprep.mubr.f32.mxu0 %v559_v58  ;;  %4735 = vmatprep.subr.bf16.mxu1 %v4734_v55  ;;  %v4750_v55 = vpack.c.bf16 %v1070_v45, %v1068_v44  ;;  %v659_v58 = vld [vmem:[%s6381_s28 + $0x920] sm:$0xff]  ;;  %v1077_v21 = vld [vmem:[#allocation5 + $0x9b0] sm:$0xff]  ;;  %v1082_v29 = vld [vmem:[#allocation5 + $0x9d8] sm:$0xff] }
 0x1de   : > { %2169 = vmatmul.mubr.f32.gmra.mrb[14].mxu1 %v548_v62  ;;  %5055 = vmatprep.subr.bf16.mxu0 %v5054_v59  ;;  %v5070_v59 = vpack.c.bf16 %v1390_v49, %v1388_v48  ;;  %v648_v62 = vld [vmem:[%s6381_s28 + $0x8c8] sm:$0xff]  ;;  %v1397_v25 = vld [vmem:[#allocation5 + $0x13b0] sm:$0xff]  ;;  %v1402_v33 = vld [vmem:[#allocation5 + $0x13d8] sm:$0xff] }
 0x1df   : > { %2974 = vmatmul.mubr.f32.gmra.mrb[14].mxu0 %v558_v2  ;;  %4737 = vmatpush1.bf16.msra.mxu1 %v4736_v63  ;;  %v4752_v63 = vpack.c.bf16 %v1069_v53, %v1067_v52  ;;  %v658_v2 = vld [vmem:[%s6381_s28 + $0x918] sm:$0xff]  ;;  %v1400_v32 = vld [vmem:[#allocation5 + $0x13c8] sm:$0xff]  ;;  %v1079_v36 = vld [vmem:[#allocation5 + $0x9c0] sm:$0xff] }
 0x1e0   : > { %5057 = vmatpush1.bf16.msra.mxu0 %v5056_v3  ;;  %2174 = vmatprep.mubr.f32.mxu1 %v574_v6  ;;  %v5072_v3 = vpack.c.bf16 %v1389_v57, %v1387_v56  ;;  %v674_v6 = vld [vmem:[%s6381_s28 + $0x998] sm:$0xff]  ;;  %v1081_v37 = vld [vmem:[#allocation5 + $0x9d0] sm:$0xff]  ;;  %v1399_v40 = vld [vmem:[#allocation5 + $0x13c0] sm:$0xff] }
 0x1e1   : > { %2979 = vmatprep.mubr.f32.mxu0 %v584_v10  ;;  %4739 = vmatprep.subr.bf16.mxu1 %v4738_v7  ;;  %v4754_v7 = vpack.c.bf16 %v1074_v61, %v1072_v60  ;;  %v684_v10 = vld [vmem:[%s6381_s28 + $0x9e8] sm:$0xff]  ;;  %v1401_v41 = vld [vmem:[#allocation5 + $0x13d0] sm:$0xff]  ;;  %v1086_v45 = vld [vmem:[#allocation5 + $0x9f8] sm:$0xff] }
 0x1e2   : > { %2175 = vmatmul.mubr.f32.gmra.mrb[16].mxu1 %v573_v14  ;;  %5059 = vmatprep.subr.bf16.mxu0 %v5058_v11  ;;  %v5074_v11 = vpack.c.bf16 %v1394_v1, %v1392_v0  ;;  %v673_v14 = vld [vmem:[%s6381_s28 + $0x990] sm:$0xff]  ;;  %v1084_v44 = vld [vmem:[#allocation5 + $0x9e8] sm:$0xff]  ;;  %v1406_v49 = vld [vmem:[#allocation5 + $0x13f8] sm:$0xff] }
 0x1e3   : > { %2980 = vmatmul.mubr.f32.gmra.mrb[16].mxu0 %v583_v18  ;;  %4741 = vmatpush1.bf16.msra.mxu1 %v4740_v15  ;;  %v4756_v15 = vpack.c.bf16 %v1073_v5, %v1071_v4  ;;  %v683_v18 = vld [vmem:[%s6381_s28 + $0x9e0] sm:$0xff]  ;;  %v1404_v48 = vld [vmem:[#allocation5 + $0x13e8] sm:$0xff]  ;;  %v1085_v53 = vld [vmem:[#allocation5 + $0x9f0] sm:$0xff] }
 0x1e4   : > { %5061 = vmatpush1.bf16.msra.mxu0 %v5060_v19  ;;  %2180 = vmatprep.mubr.f32.mxu1 %v599_v22  ;;  %v5076_v19 = vpack.c.bf16 %v1393_v9, %v1391_v8  ;;  %v699_v22 = vld [vmem:[%s6381_s28 + $0xa60] sm:$0xff]  ;;  %v1405_v57 = vld [vmem:[#allocation5 + $0x13f0] sm:$0xff]  ;;  %v1408_v60 = vld [vmem:[#allocation5 + $0x1408] sm:$0xff] }
 0x1e5   : > { %2985 = vmatprep.mubr.f32.mxu0 %v609_v26  ;;  %4743 = vmatprep.subr.bf16.mxu1 %v4742_v23  ;;  %v4758_v23 = vpack.c.bf16 %v1078_v13, %v1076_v12  ;;  %v709_v26 = vld [vmem:[%s6381_s28 + $0xab0] sm:$0xff]  ;;  %v1083_v52 = vld [vmem:[#allocation5 + $0x9e0] sm:$0xff]  ;;  %v1410_v61 = vld [vmem:[#allocation5 + $0x1418] sm:$0xff] }
 0x1e6   : > { %2181 = vmatmul.mubr.f32.gmra.mrb[18].mxu1 %v598_v30  ;;  %5063 = vmatprep.subr.bf16.mxu0 %v5062_v27  ;;  %v5078_v27 = vpack.c.bf16 %v1398_v17, %v1396_v16  ;;  %v698_v30 = vld [vmem:[%s6381_s28 + $0xa58] sm:$0xff]  ;;  %v1403_v56 = vld [vmem:[#allocation5 + $0x13e0] sm:$0xff]  ;;  %v1409_v5 = vld [vmem:[#allocation5 + $0x1410] sm:$0xff] }
 0x1e7   : > { %2986 = vmatmul.mubr.f32.gmra.mrb[18].mxu0 %v608_v34  ;;  %4745 = vmatpush1.bf16.msra.mxu1 %v4744_v31  ;;  %v4760_v31 = vpack.c.bf16 %v1077_v21, %v1075_v20  ;;  %v708_v34 = vld [vmem:[%s6381_s28 + $0xaa8] sm:$0xff]  ;;  %v758_v0 = vld [vmem:[%s6381_s28 + $0xc38] sm:$0xff]  ;;  %v5088_v1 = vpack.c.bf16 %v1405_v57, %v1403_v56  ;;  %v1407_v4 = vld [vmem:[#allocation5 + $0x1400] sm:$0xff] }
 0x1e8   : > { %5065 = vmatpush1.bf16.msra.mxu0 %v5064_v35  ;;  %2186 = vmatprep.mubr.f32.mxu1 %v624_v38  ;;  %v5080_v35 = vpack.c.bf16 %v1397_v25, %v1395_v24  ;;  %v724_v38 = vld [vmem:[%s6381_s28 + $0xb28] sm:$0xff]  ;;  %v1414_v8 = vld [vmem:[#allocation5 + $0x1438] sm:$0xff]  ;;  %v375_v9 = vld [vmem:[%s6381_s28 + $0x40] sm:$0xff] }
 0x1e9   : > { %2991 = vmatprep.mubr.f32.mxu0 %v634_v42  ;;  %4747 = vmatprep.subr.bf16.mxu1 %v4746_v39  ;;  %v4762_v39 = vpack.c.bf16 %v1082_v29, %v1080_v28  ;;  %v734_v42 = vld [vmem:[%s6381_s28 + $0xb78] sm:$0xff]  ;;  %v401_v12 = vld [vmem:[%s6381_s28 + $0x110] sm:$0xff]  ;;  %v411_v13 = vld [vmem:[%s6381_s28 + $0x160] sm:$0xff] }
 0x1ea   : > { %2187 = vmatmul.mubr.f32.gmra.mrb[20].mxu1 %v623_v46  ;;  %5067 = vmatprep.subr.bf16.mxu0 %v5066_v43  ;;  %v5082_v43 = vpack.c.bf16 %v1402_v33, %v1400_v32  ;;  %v723_v46 = vld [vmem:[%s6381_s28 + $0xb20] sm:$0xff]  ;;  %v1413_v16 = vld [vmem:[#allocation5 + $0x1430] sm:$0xff]  ;;  %v1416_v17 = vld [vmem:[#allocation5 + $0x1448] sm:$0xff] }
 0x1eb   : > { %2992 = vmatmul.mubr.f32.gmra.mrb[20].mxu0 %v633_v50  ;;  %4749 = vmatpush1.bf16.msra.mxu1 %v4748_v47  ;;  %v4764_v47 = vpack.c.bf16 %v1081_v37, %v1079_v36  ;;  %v733_v50 = vld [vmem:[%s6381_s28 + $0xb70] sm:$0xff]  ;;  %v410_v20 = vld [vmem:[%s6381_s28 + $0x158] sm:$0xff]  ;;  %v1415_v25 = vld [vmem:[#allocation5 + $0x1440] sm:$0xff] }
 0x1ec   : > { %5069 = vmatpush1.bf16.msra.mxu0 %v5068_v51  ;;  %2192 = vmatprep.mubr.f32.mxu1 %v649_v54  ;;  %v5084_v51 = vpack.c.bf16 %v1401_v41, %v1399_v40  ;;  %v749_v54 = vld [vmem:[%s6381_s28 + $0xbf0] sm:$0xff]  ;;  %v1422_v28 = vld [vmem:[#allocation5 + $0x1478] sm:$0xff]  ;;  %v451_v32 = vld [vmem:[%s6381_s28 + $0x2a0] sm:$0xff] }
 0x1ed   : > { %2997 = vmatprep.mubr.f32.mxu0 %v659_v58  ;;  %4751 = vmatprep.subr.bf16.mxu1 %v4750_v55  ;;  %v4766_v55 = vpack.c.bf16 %v1086_v45, %v1084_v44  ;;  %v759_v58 = vld [vmem:[%s6381_s28 + $0xc40] sm:$0xff]  ;;  %v425_v29 = vld [vmem:[%s6381_s28 + $0x1d0] sm:$0xff]  ;;  %v1424_v37 = vld [vmem:[#allocation5 + $0x1488] sm:$0xff] }
 0x1ee   : > { %2193 = vmatmul.mubr.f32.gmra.mrb[22].mxu1 %v648_v62  ;;  %5071 = vmatprep.subr.bf16.mxu0 %v5070_v59  ;;  %v5086_v59 = vpack.c.bf16 %v1406_v49, %v1404_v48  ;;  %v748_v62 = vld [vmem:[%s6381_s28 + $0xbe8] sm:$0xff]  ;;  %v461_v33 = vld [vmem:[%s6381_s28 + $0x2f0] sm:$0xff]  ;;  %v1423_v45 = vld [vmem:[#allocation5 + $0x1480] sm:$0xff] }
 0x1ef   : > { %2998 = vmatmul.mubr.f32.gmra.mrb[22].mxu0 %v658_v2  ;;  %4753 = vmatpush1.bf16.msra.mxu1 %v4752_v63  ;;  %v4768_v63 = vpack.c.bf16 %v1085_v53, %v1083_v52  ;;  %v376_v2 = vld [vmem:[%s6381_s28 + $0x48] sm:$0xff]  ;;  %v1421_v36 = vld [vmem:[#allocation5 + $0x1470] sm:$0xff]  ;;  %v1430_v48 = vld [vmem:[#allocation5 + $0x14b8] sm:$0xff] }
 0x1f0   : > { %5073 = vmatpush1.bf16.msra.mxu0 %v5072_v3  ;;  %2198 = vmatprep.mubr.f32.mxu1 %v674_v6  ;;  %v5090_v3 = vpack.c.bf16 %v1410_v61, %v1408_v60  ;;  %v386_v6 = vld [vmem:[%s6381_s28 + $0x98] sm:$0xff]  ;;  %v460_v40 = vld [vmem:[%s6381_s28 + $0x2e8] sm:$0xff]  ;;  %v475_v49 = vld [vmem:[%s6381_s28 + $0x360] sm:$0xff] }
 0x1f1   : > { %3003 = vmatprep.mubr.f32.mxu0 %v684_v10  ;;  %4755 = vmatprep.subr.bf16.mxu1 %v4754_v7  ;;  %v1412_v7 = vld [vmem:[#allocation5 + $0x1428] sm:$0xff]  ;;  %v385_v10 = vld [vmem:[%s6381_s28 + $0x90] sm:$0xff]  ;;  %v511_v53 = vld [vmem:[%s6381_s28 + $0x480] sm:$0xff] }
 0x1f2   : > { %2199 = vmatmul.mubr.f32.gmra.mrb[24].mxu1 %v673_v14  ;;  %5075 = vmatprep.subr.bf16.mxu0 %v5074_v11  ;;  %v5092_v11 = vpack.c.bf16 %v1409_v5, %v1407_v4  ;;  %v5094_v14 = vpack.c.bf16 %v1414_v8, %v1412_v7  ;;  %v501_v52 = vld [vmem:[%s6381_s28 + $0x430] sm:$0xff]  ;;  %v1432_v57 = vld [vmem:[#allocation5 + $0x14c8] sm:$0xff]  ;;  %v510_v60 = vld [vmem:[%s6381_s28 + $0x478] sm:$0xff] }
 0x1f3   : > { %3004 = vmatmul.mubr.f32.gmra.mrb[24].mxu0 %v683_v18  ;;  %4757 = vmatpush1.bf16.msra.mxu1 %v4756_v15  ;;  %v1411_v15 = vld [vmem:[#allocation5 + $0x1420] sm:$0xff]  ;;  %v1418_v18 = vld [vmem:[#allocation5 + $0x1458] sm:$0xff]  ;;  %v1429_v56 = vld [vmem:[#allocation5 + $0x14b0] sm:$0xff] }
 0x1f4   : > { %5077 = vmatpush1.bf16.msra.mxu0 %v5076_v19  ;;  %2204 = vmatprep.mubr.f32.mxu1 %v699_v22  ;;  %v400_v19 = vld [vmem:[%s6381_s28 + $0x108] sm:$0xff]  ;;  %v5096_v21 = vpack.c.bf16 %v1413_v16, %v1411_v15  ;;  %v426_v22 = vld [vmem:[%s6381_s28 + $0x1d8] sm:$0xff]  ;;  %v5098_v24 = vpack.c.bf16 %v1418_v18, %v1416_v17  ;;  %v525_v5 = vld [vmem:[%s6381_s28 + $0x4f0] sm:$0xff] }
 0x1f5   : > { %3009 = vmatprep.mubr.f32.mxu0 %v709_v26  ;;  %4759 = vmatprep.subr.bf16.mxu1 %v4758_v23  ;;  %v436_v23 = vld [vmem:[%s6381_s28 + $0x228] sm:$0xff]  ;;  %v1417_v26 = vld [vmem:[#allocation5 + $0x1450] sm:$0xff]  ;;  %v1438_v4 = vld [vmem:[#allocation5 + $0x14f8] sm:$0xff] }
 0x1f6   : > { %2205 = vmatmul.mubr.f32.gmra.mrb[26].mxu1 %v698_v30  ;;  %5079 = vmatprep.subr.bf16.mxu0 %v5078_v27  ;;  %v1420_v27 = vld [vmem:[#allocation5 + $0x1468] sm:$0xff]  ;;  %v435_v30 = vld [vmem:[%s6381_s28 + $0x220] sm:$0xff]  ;;  %v550_v15 = vld [vmem:[%s6381_s28 + $0x5b8] sm:$0xff] }
 0x1f7   : > { %3010 = vmatmul.mubr.f32.gmra.mrb[26].mxu0 %v708_v34  ;;  %4761 = vmatpush1.bf16.msra.mxu1 %v4760_v31  ;;  %v5100_v31 = vpack.c.bf16 %v1417_v26, %v1415_v25  ;;  %v5102_v34 = vpack.c.bf16 %v1422_v28, %v1420_v27  ;;  %v551_v8 = vld [vmem:[%s6381_s28 + $0x5c0] sm:$0xff]  ;;  %v560_v16 = vld [vmem:[%s6381_s28 + $0x608] sm:$0xff]  ;;  %v585_v26 = vld [vmem:[%s6381_s28 + $0x6d0] sm:$0xff] }
 0x1f8   : > { %5081 = vmatpush1.bf16.msra.mxu0 %v5080_v35  ;;  %2210 = vmatprep.mubr.f32.mxu1 %v724_v38  ;;  %v1419_v35 = vld [vmem:[#allocation5 + $0x1460] sm:$0xff]  ;;  %v1426_v38 = vld [vmem:[#allocation5 + $0x1498] sm:$0xff]  ;;  %v576_v18 = vld [vmem:[%s6381_s28 + $0x688] sm:$0xff] }
 0x1f9   : > { %3015 = vmatprep.mubr.f32.mxu0 %v734_v42  ;;  %4763 = vmatprep.subr.bf16.mxu1 %v4762_v39  ;;  %v450_v39 = vld [vmem:[%s6381_s28 + $0x298] sm:$0xff]  ;;  %v5104_v41 = vpack.c.bf16 %v1421_v36, %v1419_v35  ;;  %v476_v42 = vld [vmem:[%s6381_s28 + $0x368] sm:$0xff]  ;;  %v5106_v44 = vpack.c.bf16 %v1426_v38, %v1424_v37  ;;  %v575_v25 = vld [vmem:[%s6381_s28 + $0x680] sm:$0xff] }
 0x1fa   : > { %2211 = vmatmul.mubr.f32.gmra.mrb[28].mxu1 %v723_v46  ;;  %5083 = vmatprep.subr.bf16.mxu0 %v5082_v43  ;;  %v486_v43 = vld [vmem:[%s6381_s28 + $0x3b8] sm:$0xff]  ;;  %v1425_v46 = vld [vmem:[#allocation5 + $0x1490] sm:$0xff]  ;;  %v600_v35 = vld [vmem:[%s6381_s28 + $0x748] sm:$0xff] }
 0x1fb   : > { %3016 = vmatmul.mubr.f32.gmra.mrb[28].mxu0 %v733_v50  ;;  %4765 = vmatpush1.bf16.msra.mxu1 %v4764_v47  ;;  %v1428_v47 = vld [vmem:[#allocation5 + $0x14a8] sm:$0xff]  ;;  %v485_v50 = vld [vmem:[%s6381_s28 + $0x3b0] sm:$0xff]  ;;  %v610_v36 = vld [vmem:[%s6381_s28 + $0x798] sm:$0xff] }
 0x1fc   : > { %5085 = vmatpush1.bf16.msra.mxu0 %v5084_v51  ;;  %2216 = vmatprep.mubr.f32.mxu1 %v749_v54  ;;  %v5108_v51 = vpack.c.bf16 %v1425_v46, %v1423_v45  ;;  %v5110_v54 = vpack.c.bf16 %v1430_v48, %v1428_v47  ;;  %v601_v28 = vld [vmem:[%s6381_s28 + $0x750] sm:$0xff]  ;;  %v626_v38 = vld [vmem:[%s6381_s28 + $0x818] sm:$0xff]  ;;  %v635_v46 = vld [vmem:[%s6381_s28 + $0x860] sm:$0xff] }
 0x1fd   : > { %3021 = vmatprep.mubr.f32.mxu0 %v759_v58  ;;  %4767 = vmatprep.subr.bf16.mxu1 %v4766_v55  ;;  %v1427_v55 = vld [vmem:[#allocation5 + $0x14a0] sm:$0xff]  ;;  %v1434_v58 = vld [vmem:[#allocation5 + $0x14d8] sm:$0xff]  ;;  %v625_v45 = vld [vmem:[%s6381_s28 + $0x810] sm:$0xff] }
 0x1fe   : > { %2217 = vmatmul.mubr.f32.gmra.mrb[30].mxu1 %v748_v62  ;;  %5087 = vmatprep.subr.bf16.mxu0 %v5086_v59  ;;  %v500_v59 = vld [vmem:[%s6381_s28 + $0x428] sm:$0xff]  ;;  %v5112_v61 = vpack.c.bf16 %v1429_v56, %v1427_v55  ;;  %v526_v62 = vld [vmem:[%s6381_s28 + $0x4f8] sm:$0xff]  ;;  %v651_v48 = vld [vmem:[%s6381_s28 + $0x8e0] sm:$0xff] }
 0x1ff   : > { %3022 = vmatmul.mubr.f32.gmra.mrb[30].mxu0 %v758_v0  ;;  %4769 = vmatpush1.bf16.msra.mxu1 %v4768_v63  ;;  %v536_v63 = vld [vmem:[%s6381_s28 + $0x548] sm:$0xff]  ;;  %v5114_v0 = vpack.c.bf16 %v1434_v58, %v1432_v57  ;;  %v650_v55 = vld [vmem:[%s6381_s28 + $0x8d8] sm:$0xff] }
 0x200   : > { %5089 = vmatpush1.bf16.msra.mxu0 %v5088_v1  ;;  %2287 = vmatprep.mubr.f32.mxu1 %v376_v2  ;;  %v1431_v1 = vld [vmem:[#allocation5 + $0x14c0] sm:$0xff]  ;;  %v1433_v2 = vld [vmem:[#allocation5 + $0x14d0] sm:$0xff]  ;;  %v660_v56 = vld [vmem:[%s6381_s28 + $0x928] sm:$0xff] }
 0x201   : > { %3092 = vmatprep.mubr.f32.mxu0 %v386_v6  ;;  %5091 = vmatprep.subr.bf16.mxu0 %v5090_v3  ;;  %v1436_v3 = vld [vmem:[#allocation5 + $0x14e8] sm:$0xff]  ;;  %v535_v6 = vld [vmem:[%s6381_s28 + $0x540] sm:$0xff]  ;;  %v5116_v7 = vpack.c.bf16 %v1433_v2, %v1431_v1  ;;  %v1462_v1 = vld [vmem:[#allocation5 + $0x15b8] sm:$0xff] }
 0x202   : > { %2288 = vmatmul.mubr.f32.vlgmr.msra.gmra.mrb[0].mxu1 %v375_v9  ;;  %v561_v9 = vld [vmem:[%s6381_s28 + $0x610] sm:$0xff]  ;;  %v676_v58 = vld [vmem:[%s6381_s28 + $0x9a8] sm:$0xff] }
 0x203   : > { %3093 = vmatmul.mubr.f32.vlgmr.msra.gmra.mrb[0].mxu0 %v385_v10  ;;  %2293 = vmatprep.mubr.f32.mxu1 %v401_v12  ;;  %v5118_v10 = vpack.c.bf16 %v1438_v4, %v1436_v3  ;;  %v1437_v12 = vld [vmem:[#allocation5 + $0x14f0] sm:$0xff]  ;;  %v1536_v2 = vld [vmem:[#allocation5 + $0x1808] sm:$0xff]  ;;  %v1538_v3 = vld [vmem:[#allocation5 + $0x1818] sm:$0xff] }
 0x204   : > { %5093 = vmatpush1.bf16.msra.mxu0 %v5092_v11  ;;  %3098 = vmatprep.mubr.f32.mxu0 %v411_v13  ;;  %v1435_v11 = vld [vmem:[#allocation5 + $0x14e0] sm:$0xff]  ;;  %v1440_v13 = vld [vmem:[#allocation5 + $0x1508] sm:$0xff]  ;;  %v685_v4 = vld [vmem:[%s6381_s28 + $0x9f0] sm:$0xff] }
 0x205   : > { %5095 = vmatprep.subr.bf16.mxu0 %v5094_v14  ;;  %v1442_v14 = vld [vmem:[#allocation5 + $0x1518] sm:$0xff]  ;;  %v5120_v17 = vpack.c.bf16 %v1437_v12, %v1435_v11  ;;  %v1459_v11 = vld [vmem:[#allocation5 + $0x15a0] sm:$0xff]  ;;  %v700_v12 = vld [vmem:[%s6381_s28 + $0xa68] sm:$0xff] }
 0x206   : > { %2294 = vmatmul.mubr.f32.gmra.mrb[2].mxu1 %v400_v19  ;;  %v586_v19 = vld [vmem:[%s6381_s28 + $0x6d8] sm:$0xff] }
 0x207   : > { %3099 = vmatmul.mubr.f32.gmra.mrb[2].mxu0 %v410_v20  ;;  %2299 = vmatprep.mubr.f32.mxu1 %v426_v22  ;;  %v5122_v20 = vpack.c.bf16 %v1442_v14, %v1440_v13  ;;  %v1441_v22 = vld [vmem:[#allocation5 + $0x1510] sm:$0xff] }
 0x208   : > { %5097 = vmatpush1.bf16.msra.mxu0 %v5096_v21  ;;  %3104 = vmatprep.mubr.f32.mxu0 %v436_v23  ;;  %v1439_v21 = vld [vmem:[#allocation5 + $0x1500] sm:$0xff]  ;;  %v1444_v23 = vld [vmem:[#allocation5 + $0x1528] sm:$0xff]  ;;  %v1461_v14 = vld [vmem:[#allocation5 + $0x15b0] sm:$0xff] }
 0x209   : > { %5099 = vmatprep.subr.bf16.mxu0 %v5098_v24  ;;  %v1446_v24 = vld [vmem:[#allocation5 + $0x1538] sm:$0xff]  ;;  %v5124_v27 = vpack.c.bf16 %v1441_v22, %v1439_v21 }
 0x20a   : > { %2300 = vmatmul.mubr.f32.gmra.mrb[4].mxu1 %v425_v29  ;;  %v611_v29 = vld [vmem:[%s6381_s28 + $0x7a0] sm:$0xff]  ;;  %v710_v21 = vld [vmem:[%s6381_s28 + $0xab8] sm:$0xff] }
 0x20b   : > { %3105 = vmatmul.mubr.f32.gmra.mrb[4].mxu0 %v435_v30  ;;  %2305 = vmatprep.mubr.f32.mxu1 %v451_v32  ;;  %v5126_v30 = vpack.c.bf16 %v1446_v24, %v1444_v23  ;;  %v1445_v32 = vld [vmem:[#allocation5 + $0x1530] sm:$0xff]  ;;  %v726_v22 = vld [vmem:[%s6381_s28 + $0xb38] sm:$0xff] }
 0x20c   : > { %5101 = vmatpush1.bf16.msra.mxu0 %v5100_v31  ;;  %3110 = vmatprep.mubr.f32.mxu0 %v461_v33  ;;  %v1443_v31 = vld [vmem:[#allocation5 + $0x1520] sm:$0xff]  ;;  %v1448_v33 = vld [vmem:[#allocation5 + $0x1548] sm:$0xff]  ;;  %v1541_v24 = vld [vmem:[#allocation5 + $0x1830] sm:$0xff] }
 0x20d   : > { %5103 = vmatprep.subr.bf16.mxu0 %v5102_v34  ;;  %v1450_v34 = vld [vmem:[#allocation5 + $0x1558] sm:$0xff]  ;;  %v5128_v37 = vpack.c.bf16 %v1445_v32, %v1443_v31  ;;  %v1544_v32 = vld [vmem:[#allocation5 + $0x1848] sm:$0xff] }
 0x20e   : > { %2306 = vmatmul.mubr.f32.gmra.mrb[6].mxu1 %v450_v39  ;;  %v636_v39 = vld [vmem:[%s6381_s28 + $0x868] sm:$0xff] }
 0x20f   : > { %3111 = vmatmul.mubr.f32.gmra.mrb[6].mxu0 %v460_v40  ;;  %2311 = vmatprep.mubr.f32.mxu1 %v476_v42  ;;  %v5130_v40 = vpack.c.bf16 %v1450_v34, %v1448_v33  ;;  %v1449_v42 = vld [vmem:[#allocation5 + $0x1550] sm:$0xff]  ;;  %v1546_v33 = vld [vmem:[#allocation5 + $0x1858] sm:$0xff] }
 0x210   : > { %5105 = vmatpush1.bf16.msra.mxu0 %v5104_v41  ;;  %3116 = vmatprep.mubr.f32.mxu0 %v486_v43  ;;  %v1447_v41 = vld [vmem:[#allocation5 + $0x1540] sm:$0xff]  ;;  %v1452_v43 = vld [vmem:[#allocation5 + $0x1568] sm:$0xff]  ;;  %v1470_v34 = vld [vmem:[#allocation5 + $0x15f8] sm:$0xff] }
 0x211   : > { %5107 = vmatprep.subr.bf16.mxu0 %v5106_v44  ;;  %v1454_v44 = vld [vmem:[#allocation5 + $0x1578] sm:$0xff]  ;;  %v5132_v47 = vpack.c.bf16 %v1449_v42, %v1447_v41  ;;  %v761_v42 = vld [vmem:[%s6381_s28 + $0xc50] sm:$0xff] }
 0x212   : > { %2312 = vmatmul.mubr.f32.gmra.mrb[8].mxu1 %v475_v49  ;;  %v661_v49 = vld [vmem:[%s6381_s28 + $0x930] sm:$0xff] }
 0x213   : > { %3117 = vmatmul.mubr.f32.gmra.mrb[8].mxu0 %v485_v50  ;;  %2317 = vmatprep.mubr.f32.mxu1 %v501_v52  ;;  %v5134_v50 = vpack.c.bf16 %v1454_v44, %v1452_v43  ;;  %v1453_v52 = vld [vmem:[#allocation5 + $0x1570] sm:$0xff]  ;;  %v1548_v43 = vld [vmem:[#allocation5 + $0x1868] sm:$0xff]  ;;  %v1550_v44 = vld [vmem:[#allocation5 + $0x1878] sm:$0xff] }
 0x214   : > { %5109 = vmatpush1.bf16.msra.mxu0 %v5108_v51  ;;  %3122 = vmatprep.mubr.f32.mxu0 %v511_v53  ;;  %v1451_v51 = vld [vmem:[#allocation5 + $0x1560] sm:$0xff]  ;;  %v1456_v53 = vld [vmem:[#allocation5 + $0x1588] sm:$0xff] }
 0x215   : > { %5111 = vmatprep.subr.bf16.mxu0 %v5110_v54  ;;  %v1458_v54 = vld [vmem:[#allocation5 + $0x1598] sm:$0xff]  ;;  %v5136_v57 = vpack.c.bf16 %v1453_v52, %v1451_v51  ;;  %v6734_v51 = vpack.c.bf16 %v1550_v44, %v1548_v43  ;;  %v1547_v52 = vld [vmem:[#allocation5 + $0x1860] sm:$0xff] }
 0x216   : > { %2318 = vmatmul.mubr.f32.gmra.mrb[10].mxu1 %v500_v59  ;;  %v686_v59 = vld [vmem:[%s6381_s28 + $0x9f8] sm:$0xff]  ;;  %v463_v43 = vld [vmem:[%s6381_s28 + $0x300] sm:$0xff] }
 0x217   : > { %3123 = vmatmul.mubr.f32.gmra.mrb[10].mxu0 %v510_v60  ;;  %2323 = vmatprep.mubr.f32.mxu1 %v526_v62  ;;  %v675_v60 = vld [vmem:[%s6381_s28 + $0x9a0] sm:$0xff] }
 0x218   : > { %5113 = vmatpush1.bf16.msra.mxu0 %v5112_v61  ;;  %3128 = vmatprep.mubr.f32.mxu0 %v536_v63  ;;  %v5138_v61 = vpack.c.bf16 %v1458_v54, %v1456_v53  ;;  %v1455_v62 = vld [vmem:[#allocation5 + $0x1580] sm:$0xff]  ;;  %v1457_v63 = vld [vmem:[#allocation5 + $0x1590] sm:$0xff]  ;;  %v750_v54 = vld [vmem:[%s6381_s28 + $0xbf8] sm:$0xff] }
 0x219   : > { %5115 = vmatprep.subr.bf16.mxu0 %v5114_v0  ;;  %v1460_v0 = vld [vmem:[#allocation5 + $0x15a8] sm:$0xff]  ;;  %v1549_v53 = vld [vmem:[#allocation5 + $0x1870] sm:$0xff] }
 0x21a   : > { %2324 = vmatmul.mubr.f32.gmra.mrb[12].mxu1 %v525_v5  ;;  %v6707_v5 = vpack.c.bf16 %v1538_v3, %v1536_v2  ;;  %v5142_v13 = vpack.c.bf16 %v1462_v1, %v1460_v0  ;;  %v6740_v0 = vpack.c.bf16 %v1549_v53, %v1547_v52  ;;  %v1478_v1 = vld [vmem:[#allocation5 + $0x1638] sm:$0xff]  ;;  %v1551_v3 = vld [vmem:[#allocation5 + $0x1880] sm:$0xff] }
 0x21b   : > { %3129 = vmatmul.mubr.f32.gmra.mrb[12].mxu0 %v535_v6  ;;  %2329 = vmatprep.mubr.f32.mxu1 %v551_v8  ;;  %v1535_v6 = vld [vmem:[#allocation5 + $0x1800] sm:$0xff]  ;;  %v5140_v8 = vpack.c.bf16 %v1457_v63, %v1455_v62  ;;  %v1473_v62 = vld [vmem:[#allocation5 + $0x1610] sm:$0xff]  ;;  %v1476_v63 = vld [vmem:[#allocation5 + $0x1628] sm:$0xff] }
 0x21c   : > { %5117 = vmatpush1.bf16.msra.mxu0 %v5116_v7  ;;  %3134 = vmatprep.mubr.f32.mxu0 %v561_v9  ;;  %v1537_v7 = vld [vmem:[#allocation5 + $0x1810] sm:$0xff]  ;;  %v1563_v53 = vld [vmem:[#allocation5 + $0x18e0] sm:$0xff] }
 0x21d   : > { %5119 = vmatprep.subr.bf16.mxu0 %v5118_v10  ;;  %v701_v9 = vld [vmem:[%s6381_s28 + $0xa70] sm:$0xff]  ;;  %v711_v10 = vld [vmem:[%s6381_s28 + $0xac0] sm:$0xff]  ;;  %5298 = vmatprep.subr.bf16.mxu1 %v6707_v5 }
 0x21e   : > { %2330 = vmatmul.mubr.f32.gmra.mrb[14].mxu1 %v550_v15  ;;  %v1464_v15 = vld [vmem:[#allocation5 + $0x15c8] sm:$0xff] }
 0x21f   : > { %3135 = vmatmul.mubr.f32.gmra.mrb[14].mxu0 %v560_v16  ;;  %2335 = vmatprep.mubr.f32.mxu1 %v576_v18  ;;  %v6713_v16 = vpack.c.bf16 %v1537_v7, %v1535_v6  ;;  %v1466_v18 = vld [vmem:[#allocation5 + $0x15d8] sm:$0xff]  ;;  %v1556_v6 = vld [vmem:[#allocation5 + $0x18a8] sm:$0xff] }
 0x220   : > { %5121 = vmatpush1.bf16.msra.mxu0 %v5120_v17  ;;  %3140 = vmatprep.mubr.f32.mxu0 %v586_v19  ;;  %v1540_v17 = vld [vmem:[#allocation5 + $0x1828] sm:$0xff]  ;;  %v1542_v19 = vld [vmem:[#allocation5 + $0x1838] sm:$0xff] }
 0x221   : > { %5123 = vmatprep.subr.bf16.mxu0 %v5122_v20  ;;  %v1539_v20 = vld [vmem:[#allocation5 + $0x1820] sm:$0xff]  ;;  %v6717_v23 = vpack.c.bf16 %v1542_v19, %v1540_v17  ;;  %5306 = vmatpush1.bf16.msra.mxu1 %v6713_v16  ;;  %v1558_v7 = vld [vmem:[#allocation5 + $0x18b8] sm:$0xff] }
 0x222   : > { %2336 = vmatmul.mubr.f32.gmra.mrb[16].mxu1 %v575_v25  ;;  %v5144_v25 = vpack.c.bf16 %v1461_v14, %v1459_v11  ;;  %v6721_v31 = vpack.c.bf16 %v1541_v24, %v1539_v20  ;;  %v413_v11 = vld [vmem:[%s6381_s28 + $0x170] sm:$0xff]  ;;  %v6752_v19 = vpack.c.bf16 %v1558_v7, %v1556_v6  ;;  %v1555_v20 = vld [vmem:[#allocation5 + $0x18a0] sm:$0xff]  ;;  %v1562_v24 = vld [vmem:[#allocation5 + $0x18d8] sm:$0xff] }
 0x223   : > { %3141 = vmatmul.mubr.f32.gmra.mrb[16].mxu0 %v585_v26  ;;  %2341 = vmatprep.mubr.f32.mxu1 %v601_v28  ;;  %v736_v26 = vld [vmem:[%s6381_s28 + $0xb88] sm:$0xff]  ;;  %v1465_v28 = vld [vmem:[#allocation5 + $0x15d0] sm:$0xff]  ;;  %v1491_v7 = vld [vmem:[#allocation5 + $0x16a0] sm:$0xff] }
 0x224   : > { %5125 = vmatpush1.bf16.msra.mxu0 %v5124_v27  ;;  %3146 = vmatprep.mubr.f32.mxu0 %v611_v29  ;;  %v1463_v27 = vld [vmem:[#allocation5 + $0x15c0] sm:$0xff]  ;;  %v5146_v29 = vpack.c.bf16 %v1466_v18, %v1464_v15  ;;  %v1477_v14 = vld [vmem:[#allocation5 + $0x1630] sm:$0xff]  ;;  %v1480_v15 = vld [vmem:[#allocation5 + $0x1648] sm:$0xff] }
 0x225   : > { %5127 = vmatprep.subr.bf16.mxu0 %v5126_v30  ;;  %v1468_v30 = vld [vmem:[#allocation5 + $0x15e8] sm:$0xff]  ;;  %5299 = vmatprep.subr.bf16.mxu1 %v6717_v23  ;;  %v5148_v41 = vpack.c.bf16 %v1465_v28, %v1463_v27  ;;  %v1482_v18 = vld [vmem:[#allocation5 + $0x1658] sm:$0xff] }
 0x226   : > { %2342 = vmatmul.mubr.f32.gmra.mrb[18].mxu1 %v600_v35  ;;  %v6724_v35 = vpack.c.bf16 %v1546_v33, %v1544_v32  ;;  %v438_v27 = vld [vmem:[%s6381_s28 + $0x238] sm:$0xff]  ;;  %v5162_v28 = vpack.c.bf16 %v1482_v18, %v1480_v15  ;;  %v1484_v32 = vld [vmem:[#allocation5 + $0x1668] sm:$0xff] }
 0x227   : > { %3147 = vmatmul.mubr.f32.gmra.mrb[18].mxu0 %v610_v36  ;;  %2347 = vmatprep.mubr.f32.mxu1 %v626_v38  ;;  %v1543_v36 = vld [vmem:[#allocation5 + $0x1840] sm:$0xff]  ;;  %v725_v38 = vld [vmem:[%s6381_s28 + $0xb30] sm:$0xff]  ;;  %v538_v15 = vld [vmem:[%s6381_s28 + $0x558] sm:$0xff] }
 0x228   : > { %5129 = vmatpush1.bf16.msra.mxu0 %v5128_v37  ;;  %3152 = vmatprep.mubr.f32.mxu0 %v636_v39  ;;  %v1545_v37 = vld [vmem:[#allocation5 + $0x1850] sm:$0xff]  ;;  %v735_v39 = vld [vmem:[%s6381_s28 + $0xb80] sm:$0xff] }
 0x229   : > { %5131 = vmatprep.subr.bf16.mxu0 %v5130_v40  ;;  %v751_v40 = vld [vmem:[%s6381_s28 + $0xc00] sm:$0xff]  ;;  %5307 = vmatpush1.bf16.msra.mxu1 %v6721_v31 }
 0x22a   : > { %2348 = vmatmul.mubr.f32.gmra.mrb[20].mxu1 %v625_v45  ;;  %v5150_v45 = vpack.c.bf16 %v1470_v34, %v1468_v30  ;;  %5300 = vmatprep.subr.bf16.mxu1 %v6724_v35  ;;  %v1481_v30 = vld [vmem:[#allocation5 + $0x1650] sm:$0xff]  ;;  %v1486_v34 = vld [vmem:[#allocation5 + $0x1678] sm:$0xff] }
 0x22b   : > { %3153 = vmatmul.mubr.f32.gmra.mrb[20].mxu0 %v635_v46  ;;  %2353 = vmatprep.mubr.f32.mxu1 %v651_v48  ;;  %v1467_v46 = vld [vmem:[#allocation5 + $0x15e0] sm:$0xff]  ;;  %v1472_v48 = vld [vmem:[#allocation5 + $0x1608] sm:$0xff]  ;;  %v5166_v44 = vpack.c.bf16 %v1486_v34, %v1484_v32  ;;  %v1501_v32 = vld [vmem:[#allocation5 + $0x16f0] sm:$0xff] }
 0x22c   : > { %5133 = vmatpush1.bf16.msra.mxu0 %v5132_v47  ;;  %3158 = vmatprep.mubr.f32.mxu0 %v661_v49  ;;  %v1469_v47 = vld [vmem:[#allocation5 + $0x15f0] sm:$0xff]  ;;  %v6731_v49 = vpack.c.bf16 %v1545_v37, %v1543_v36  ;;  %v1559_v37 = vld [vmem:[#allocation5 + $0x18c0] sm:$0xff]  ;;  %v1504_v34 = vld [vmem:[#allocation5 + $0x1708] sm:$0xff] }
 0x22d   : > { %5135 = vmatprep.subr.bf16.mxu0 %v5134_v50  ;;  %v1474_v50 = vld [vmem:[#allocation5 + $0x1618] sm:$0xff] }
 0x22e   : > { %2354 = vmatmul.mubr.f32.gmra.mrb[22].mxu1 %v650_v55  ;;  %v1552_v55 = vld [vmem:[#allocation5 + $0x1888] sm:$0xff] }
 0x22f   : > { %3159 = vmatmul.mubr.f32.gmra.mrb[22].mxu0 %v660_v56  ;;  %2359 = vmatprep.mubr.f32.mxu1 %v676_v58  ;;  %v1554_v56 = vld [vmem:[#allocation5 + $0x1898] sm:$0xff]  ;;  %v5152_v58 = vpack.c.bf16 %v1469_v47, %v1467_v46  ;;  %v1485_v46 = vld [vmem:[#allocation5 + $0x1670] sm:$0xff]  ;;  %v1488_v47 = vld [vmem:[#allocation5 + $0x1688] sm:$0xff] }
 0x230   : > { %5137 = vmatpush1.bf16.msra.mxu0 %v5136_v57  ;;  %3164 = vmatprep.mubr.f32.mxu0 %v686_v59  ;;  %v760_v57 = vld [vmem:[%s6381_s28 + $0xc48] sm:$0xff]  ;;  %v6743_v2 = vpack.c.bf16 %v1554_v56, %v1552_v55  ;;  %v462_v55 = vld [vmem:[%s6381_s28 + $0x2f8] sm:$0xff] }
 0x231   : > { %5139 = vmatprep.subr.bf16.mxu0 %v5138_v61  ;;  %v388_v59 = vld [vmem:[%s6381_s28 + $0xa8] sm:$0xff]  ;;  %v1471_v61 = vld [vmem:[#allocation5 + $0x1600] sm:$0xff]  ;;  %5308 = vmatpush1.bf16.msra.mxu1 %v6731_v49 }
 0x232   : > { %2360 = vmatmul.mubr.f32.gmra.mrb[24].mxu1 %v675_v60  ;;  %v5154_v60 = vpack.c.bf16 %v1474_v50, %v1472_v48  ;;  %5301 = vmatprep.subr.bf16.mxu1 %v6734_v51  ;;  %v1490_v50 = vld [vmem:[#allocation5 + $0x1698] sm:$0xff] }
 0x233   : > { %3165 = vmatmul.mubr.f32.gmra.mrb[24].mxu0 %v685_v4  ;;  %2365 = vmatprep.mubr.f32.mxu1 %v701_v9  ;;  %v1553_v4 = vld [vmem:[#allocation5 + $0x1890] sm:$0xff]  ;;  %v387_v9 = vld [vmem:[%s6381_s28 + $0xa0] sm:$0xff] }
 0x234   : > { %5141 = vmatpush1.bf16.msra.mxu0 %v5140_v8  ;;  %3170 = vmatprep.mubr.f32.mxu0 %v711_v10  ;;  %v6101_v8 = vmov 0.0   ;;  %v5156_v10 = vpack.c.bf16 %v1473_v62, %v1471_v61  ;;  %v6749_v17 = vpack.c.bf16 %v1553_v4, %v1551_v3  ;;  %v1492_v62 = vld [vmem:[#allocation5 + $0x16a8] sm:$0xff]  ;;  %v513_v4 = vld [vmem:[%s6381_s28 + $0x490] sm:$0xff] }
 0x235   : > { %5143 = vmatprep.subr.bf16.mxu0 %v5142_v13  ;;  %v1475_v13 = vld [vmem:[#allocation5 + $0x1620] sm:$0xff]  ;;  %5309 = vmatpush1.bf16.msra.mxu1 %v6740_v0 }
 0x236   : > { %2366 = vmatmul.mubr.f32.gmra.mrb[26].mxu1 %v700_v12  ;;  %v5158_v12 = vpack.c.bf16 %v1478_v1, %v1476_v63  ;;  %5302 = vmatprep.subr.bf16.mxu1 %v6743_v2  ;;  %v1494_v63 = vld [vmem:[#allocation5 + $0x16b8] sm:$0xff]  ;;  %v487_v1 = vld [vmem:[%s6381_s28 + $0x3c0] sm:$0xff] }
 0x237   : > { %3171 = vmatmul.mubr.f32.gmra.mrb[26].mxu0 %v710_v21  ;;  %2371 = vmatprep.mubr.f32.mxu1 %v726_v22  ;;  %v1557_v21 = vld [vmem:[#allocation5 + $0x18b0] sm:$0xff]  ;;  %v1560_v22 = vld [vmem:[#allocation5 + $0x18c8] sm:$0xff]  ;;  %v5174_v6 = vpack.c.bf16 %v1494_v63, %v1492_v62 }
 0x238   : > { %5145 = vmatpush1.bf16.msra.mxu0 %v5144_v25  ;;  %3176 = vmatprep.mubr.f32.mxu0 %v736_v26  ;;  %v412_v25 = vld [vmem:[%s6381_s28 + $0x168] sm:$0xff]  ;;  %v5160_v26 = vpack.c.bf16 %v1477_v14, %v1475_v13  ;;  %v6757_v33 = vpack.c.bf16 %v1557_v21, %v1555_v20  ;;  %v6760_v36 = vpack.c.bf16 %v1562_v24, %v1560_v22  ;;  %v1495_v20 = vld [vmem:[#allocation5 + $0x16c0] sm:$0xff]  ;;  %v1497_v21 = vld [vmem:[#allocation5 + $0x16d0] sm:$0xff] }
 0x239   : > { %5147 = vmatprep.subr.bf16.mxu0 %v5146_v29  ;;  %v1479_v29 = vld [vmem:[#allocation5 + $0x1640] sm:$0xff]  ;;  %5310 = vmatpush1.bf16.msra.mxu1 %v6749_v17  ;;  %v512_v13 = vld [vmem:[%s6381_s28 + $0x488] sm:$0xff]  ;;  %v1502_v24 = vld [vmem:[#allocation5 + $0x16f8] sm:$0xff] }
 0x23a   : > { %2372 = vmatmul.mubr.f32.gmra.mrb[28].mxu1 %v725_v38  ;;  %5303 = vmatprep.subr.bf16.mxu1 %v6752_v19  ;;  %v1561_v38 = vld [vmem:[#allocation5 + $0x18d0] sm:$0xff]  ;;  %v1500_v22 = vld [vmem:[#allocation5 + $0x16e8] sm:$0xff] }
 0x23b   : > { %3177 = vmatmul.mubr.f32.gmra.mrb[28].mxu0 %v735_v39  ;;  %2377 = vmatprep.mubr.f32.mxu1 %v751_v40  ;;  %v1564_v39 = vld [vmem:[#allocation5 + $0x18e8] sm:$0xff]  ;;  %v1566_v40 = vld [vmem:[#allocation5 + $0x18f8] sm:$0xff]  ;;  %v6765_v48 = vpack.c.bf16 %v1561_v38, %v1559_v37  ;;  %v541_v38 = vld [vmem:[%s6381_s28 + $0x570] sm:$0xff] }
 0x23c   : > { %5149 = vmatpush1.bf16.msra.mxu0 %v5148_v41  ;;  %3182 = vmatprep.mubr.f32.mxu0 %v761_v42  ;;  %v437_v41 = vld [vmem:[%s6381_s28 + $0x230] sm:$0xff]  ;;  %v5164_v42 = vpack.c.bf16 %v1481_v30, %v1479_v29  ;;  %v6768_v52 = vpack.c.bf16 %v1566_v40, %v1564_v39  ;;  %v5182_v29 = vpack.c.bf16 %v1502_v24, %v1500_v22  ;;  %v1499_v30 = vld [vmem:[#allocation5 + $0x16e0] sm:$0xff]  ;;  %v1506_v37 = vld [vmem:[#allocation5 + $0x1718] sm:$0xff] }
 0x23d   : > { %5151 = vmatprep.subr.bf16.mxu0 %v5150_v45  ;;  %v1483_v45 = vld [vmem:[#allocation5 + $0x1660] sm:$0xff]  ;;  %5311 = vmatpush1.bf16.msra.mxu1 %v6757_v33  ;;  %v562_v39 = vld [vmem:[%s6381_s28 + $0x618] sm:$0xff]  ;;  %v5184_v40 = vpack.c.bf16 %v1501_v32, %v1499_v30  ;;  %v612_v62 = vld [vmem:[%s6381_s28 + $0x7a8] sm:$0xff] }
 0x23e   : > { %2378 = vmatmul.mubr.f32.gmra.mrb[30].mxu1 %v750_v54  ;;  %5304 = vmatprep.subr.bf16.mxu1 %v6760_v36  ;;  %v1565_v54 = vld [vmem:[#allocation5 + $0x18f0] sm:$0xff]  ;;  %v5168_v56 = vpack.c.bf16 %v1485_v46, %v1483_v45  ;;  %v1508_v45 = vld [vmem:[#allocation5 + $0x1728] sm:$0xff]  ;;  %v1510_v46 = vld [vmem:[#allocation5 + $0x1738] sm:$0xff] }
 0x23f   : > { %3183 = vmatmul.mubr.f32.gmra.mrb[30].mxu0 %v760_v57  ;;  %3599 = vmatprep.mubr.f32.mxu1 %v6101_v8  ;;  %v488_v57 = vld [vmem:[%s6381_s28 + $0x3c8] sm:$0xff]  ;;  %v6773_v61 = vpack.c.bf16 %v1565_v54, %v1563_v53  ;;  %v613_v54 = vld [vmem:[%s6381_s28 + $0x7b0] sm:$0xff]  ;;  %v662_v24 = vld [vmem:[%s6381_s28 + $0x938] sm:$0xff] }
 0x240   : > { %5153 = vmatpush1.bf16.msra.mxu0 %v5152_v58  ;;  %3253 = vmatprep.mubr.f32.mxu0 %v388_v59  ;;  %v5170_v58 = vpack.c.bf16 %v1490_v50, %v1488_v47  ;;  %v1487_v59 = vld [vmem:[#allocation5 + $0x1680] sm:$0xff]  ;;  %v566_v47 = vld [vmem:[%s6381_s28 + $0x638] sm:$0xff]  ;;  %v641_v22 = vld [vmem:[%s6381_s28 + $0x890] sm:$0xff] }
 0x241   : > { %5155 = vmatprep.subr.bf16.mxu0 %v5154_v60  ;;  %v1489_v60 = vld [vmem:[#allocation5 + $0x1690] sm:$0xff]  ;;  %5312 = vmatpush1.bf16.msra.mxu1 %v6765_v48  ;;  %v587_v50 = vld [vmem:[%s6381_s28 + $0x6e0] sm:$0xff]  ;;  %v1524_v30 = vld [vmem:[#allocation5 + $0x17a8] sm:$0xff] }
 0x242   : > { %5305 = vmatprep.subr.bf16.mxu1 %v6768_v52  ;;  %v5172_v3 = vpack.c.bf16 %v1489_v60, %v1487_v59  ;;  %v1514_v59 = vld [vmem:[#allocation5 + $0x1758] sm:$0xff]  ;;  %v591_v60 = vld [vmem:[%s6381_s28 + $0x700] sm:$0xff] }
 0x243   : > { %3254 = vmatmul.mubr.f32.vlgmr.msra.gmra.mrb[0].mxu0 %v387_v9  ;;  %v1493_v9 = vld [vmem:[#allocation5 + $0x16b0] sm:$0xff]  ;;  %v1526_v32 = vld [vmem:[#allocation5 + $0x17b8] sm:$0xff] }
 0x244   : > { %5157 = vmatpush1.bf16.msra.mxu0 %v5156_v10  ;;  %3259 = vmatprep.mubr.f32.mxu0 %v413_v11  ;;  %v1496_v10 = vld [vmem:[#allocation5 + $0x16c8] sm:$0xff]  ;;  %v1498_v11 = vld [vmem:[#allocation5 + $0x16d8] sm:$0xff]  ;;  %v5176_v14 = vpack.c.bf16 %v1493_v9, %v1491_v7 }
 0x245   : > { %5159 = vmatprep.subr.bf16.mxu0 %v5158_v12  ;;  %5313 = vmatpush1.bf16.msra.mxu1 %v6773_v61  ;;  %v491_v12 = vld [vmem:[%s6381_s28 + $0x3e0] sm:$0xff]  ;;  %v5178_v18 = vpack.c.bf16 %v1498_v11, %v1496_v10  ;;  %v1516_v7 = vld [vmem:[#allocation5 + $0x1768] sm:$0xff]  ;;  %v1518_v9 = vld [vmem:[#allocation5 + $0x1778] sm:$0xff] }
 0x246   : > { %v616_v10 = vld [vmem:[%s6381_s28 + $0x7c8] sm:$0xff]  ;;  %v637_v11 = vld [vmem:[%s6381_s28 + $0x870] sm:$0xff] }
 0x247   : > { %3260 = vmatmul.mubr.f32.gmra.mrb[2].mxu0 %v412_v25  ;;  %v516_v25 = vld [vmem:[%s6381_s28 + $0x4a8] sm:$0xff] }
 0x248   : > { %5161 = vmatpush1.bf16.msra.mxu0 %v5160_v26  ;;  %3265 = vmatprep.mubr.f32.mxu0 %v438_v27  ;;  %v537_v26 = vld [vmem:[%s6381_s28 + $0x550] sm:$0xff]  ;;  %v5180_v27 = vpack.c.bf16 %v1497_v21, %v1495_v20  ;;  %v1520_v20 = vld [vmem:[#allocation5 + $0x1788] sm:$0xff]  ;;  %v1522_v21 = vld [vmem:[#allocation5 + $0x1798] sm:$0xff] }
 0x249   : > { %5163 = vmatprep.subr.bf16.mxu0 %v5162_v28  ;;  %3600 = vmatmul.mubr.f32.vlgmr.msra.gmra.mrb[32].mxu1 %v491_v12  ;;  %v563_v28 = vld [vmem:[%s6381_s28 + $0x620] sm:$0xff] }
 0x24a   : > { %3605 = vmatprep.mubr.f32.mxu1 %v6101_v8 }
 0x24b   : > { %3266 = vmatmul.mubr.f32.gmra.mrb[4].mxu0 %v437_v41  ;;  %v588_v41 = vld [vmem:[%s6381_s28 + $0x6e8] sm:$0xff] }
 0x24c   : > { %5165 = vmatpush1.bf16.msra.mxu0 %v5164_v42  ;;  %3271 = vmatprep.mubr.f32.mxu0 %v463_v43  ;;  %v5186_v42 = vpack.c.bf16 %v1506_v37, %v1504_v34  ;;  %v1503_v43 = vld [vmem:[#allocation5 + $0x1700] sm:$0xff]  ;;  %v666_v34 = vld [vmem:[%s6381_s28 + $0x958] sm:$0xff] }
 0x24d   : > { %5167 = vmatprep.subr.bf16.mxu0 %v5166_v44  ;;  %3606 = vmatmul.mubr.f32.gmra.mrb[34].mxu1 %v516_v25  ;;  %v1505_v44 = vld [vmem:[#allocation5 + $0x1710] sm:$0xff]  ;;  %v687_v37 = vld [vmem:[%s6381_s28 + $0xa00] sm:$0xff] }
 0x24e   : > { %3611 = vmatprep.mubr.f32.mxu1 %v6101_v8  ;;  %v5188_v53 = vpack.c.bf16 %v1505_v44, %v1503_v43  ;;  %v1528_v43 = vld [vmem:[#allocation5 + $0x17c8] sm:$0xff]  ;;  %v1530_v44 = vld [vmem:[#allocation5 + $0x17d8] sm:$0xff] }
 0x24f   : > { %3272 = vmatmul.mubr.f32.gmra.mrb[6].mxu0 %v462_v55  ;;  %v5190_v55 = vpack.c.bf16 %v1510_v46, %v1508_v45  ;;  %v691_v45 = vld [vmem:[%s6381_s28 + $0xa20] sm:$0xff]  ;;  %v712_v46 = vld [vmem:[%s6381_s28 + $0xac8] sm:$0xff] }
 0x250   : > { %5169 = vmatpush1.bf16.msra.mxu0 %v5168_v56  ;;  %3277 = vmatprep.mubr.f32.mxu0 %v488_v57  ;;  %v1507_v56 = vld [vmem:[#allocation5 + $0x1720] sm:$0xff]  ;;  %v1509_v57 = vld [vmem:[#allocation5 + $0x1730] sm:$0xff] }
 0x251   : > { %5171 = vmatprep.subr.bf16.mxu0 %v5170_v58  ;;  %3612 = vmatmul.mubr.f32.gmra.mrb[36].mxu1 %v541_v38  ;;  %v1512_v58 = vld [vmem:[#allocation5 + $0x1748] sm:$0xff]  ;;  %v5192_v63 = vpack.c.bf16 %v1509_v57, %v1507_v56  ;;  %v1534_v57 = vld [vmem:[#allocation5 + $0x17f8] sm:$0xff] }
 0x252   : > { %3617 = vmatprep.mubr.f32.mxu1 %v6101_v8  ;;  %v1532_v56 = vld [vmem:[#allocation5 + $0x17e8] sm:$0xff] }
 0x253   : > { %3278 = vmatmul.mubr.f32.gmra.mrb[8].mxu0 %v487_v1  ;;  %v638_v1 = vld [vmem:[%s6381_s28 + $0x878] sm:$0xff] }
 0x254   : > { %5173 = vmatpush1.bf16.msra.mxu0 %v5172_v3  ;;  %3283 = vmatprep.mubr.f32.mxu0 %v513_v4  ;;  %v5194_v3 = vpack.c.bf16 %v1514_v59, %v1512_v58  ;;  %v1511_v4 = vld [vmem:[#allocation5 + $0x1740] sm:$0xff]  ;;  %v716_v58 = vld [vmem:[%s6381_s28 + $0xae8] sm:$0xff]  ;;  %v737_v59 = vld [vmem:[%s6381_s28 + $0xb90] sm:$0xff] }
 0x255   : > { %5175 = vmatprep.subr.bf16.mxu0 %v5174_v6  ;;  %3618 = vmatmul.mubr.f32.gmra.mrb[38].mxu1 %v566_v47  ;;  %v1513_v6 = vld [vmem:[#allocation5 + $0x1750] sm:$0xff] }
 0x256   : > { %3623 = vmatprep.mubr.f32.mxu1 %v6101_v8  ;;  %v5196_v12 = vpack.c.bf16 %v1513_v6, %v1511_v4  ;;  %v741_v4 = vld [vmem:[%s6381_s28 + $0xbb0] sm:$0xff]  ;;  %v762_v6 = vld [vmem:[%s6381_s28 + $0xc58] sm:$0xff] }
 0x257   : > { %3284 = vmatmul.mubr.f32.gmra.mrb[10].mxu0 %v512_v13  ;;  %v663_v13 = vld [vmem:[%s6381_s28 + $0x940] sm:$0xff] }
 0x258   : > { %5177 = vmatpush1.bf16.msra.mxu0 %v5176_v14  ;;  %3289 = vmatprep.mubr.f32.mxu0 %v538_v15  ;;  %v5198_v14 = vpack.c.bf16 %v1518_v9, %v1516_v7  ;;  %v1515_v15 = vld [vmem:[#allocation5 + $0x1760] sm:$0xff]  ;;  %v390_v9 = vld [vmem:[%s6381_s28 + $0xb8] sm:$0xff] }
 0x259   : > { %5179 = vmatprep.subr.bf16.mxu0 %v5178_v18  ;;  %3624 = vmatmul.mubr.f32.gmra.mrb[40].mxu1 %v591_v60  ;;  %v1517_v18 = vld [vmem:[#allocation5 + $0x1770] sm:$0xff] }
 0x25a   : > { %3629 = vmatprep.mubr.f32.mxu1 %v6101_v8  ;;  %v5200_v25 = vpack.c.bf16 %v1517_v18, %v1515_v15  ;;  %v439_v15 = vld [vmem:[%s6381_s28 + $0x240] sm:$0xff]  ;;  %v490_v18 = vld [vmem:[%s6381_s28 + $0x3d8] sm:$0xff] }
 0x25b   : > { %3290 = vmatmul.mubr.f32.gmra.mrb[12].mxu0 %v537_v26  ;;  %v688_v26 = vld [vmem:[%s6381_s28 + $0xa08] sm:$0xff] }
 0x25c   : > { %5181 = vmatpush1.bf16.msra.mxu0 %v5180_v27  ;;  %3295 = vmatprep.mubr.f32.mxu0 %v563_v28  ;;  %v5202_v27 = vpack.c.bf16 %v1522_v21, %v1520_v20  ;;  %v1519_v28 = vld [vmem:[#allocation5 + $0x1780] sm:$0xff]  ;;  %v640_v20 = vld [vmem:[%s6381_s28 + $0x888] sm:$0xff] }
 0x25d   : > { %5183 = vmatprep.subr.bf16.mxu0 %v5182_v29  ;;  %3630 = vmatmul.mubr.f32.gmra.mrb[42].mxu1 %v616_v10  ;;  %v1521_v29 = vld [vmem:[#allocation5 + $0x1790] sm:$0xff]  ;;  %v766_v10 = vld [vmem:[%s6381_s28 + $0xc78] sm:$0xff]  ;;  %v664_v21 = vld [vmem:[%s6381_s28 + $0x948] sm:$0xff] }
 0x25e   : > { %3635 = vmatprep.mubr.f32.mxu1 %v6101_v8  ;;  %v5204_v38 = vpack.c.bf16 %v1521_v29, %v1519_v28  ;;  %v765_v28 = vld [vmem:[%s6381_s28 + $0xc70] sm:$0xff]  ;;  %v764_v29 = vld [vmem:[%s6381_s28 + $0xc68] sm:$0xff] }
 0x25f   : > { %3296 = vmatmul.mubr.f32.gmra.mrb[14].mxu0 %v562_v39  ;;  %v713_v39 = vld [vmem:[%s6381_s28 + $0xad0] sm:$0xff] }
 0x260   : > { %5185 = vmatpush1.bf16.msra.mxu0 %v5184_v40  ;;  %3301 = vmatprep.mubr.f32.mxu0 %v588_v41  ;;  %v5206_v40 = vpack.c.bf16 %v1526_v32, %v1524_v30  ;;  %v1523_v41 = vld [vmem:[#allocation5 + $0x17a0] sm:$0xff]  ;;  %v416_v32 = vld [vmem:[%s6381_s28 + $0x188] sm:$0xff] }
 0x261   : > { %5187 = vmatprep.subr.bf16.mxu0 %v5186_v42  ;;  %3636 = vmatmul.mubr.f32.gmra.mrb[44].mxu1 %v641_v22  ;;  %v1525_v42 = vld [vmem:[#allocation5 + $0x17b0] sm:$0xff]  ;;  %v391_v30 = vld [vmem:[%s6381_s28 + $0xc0] sm:$0xff] }
 0x262   : > { %3641 = vmatprep.mubr.f32.mxu1 %v6101_v8  ;;  %v5208_v47 = vpack.c.bf16 %v1525_v42, %v1523_v41  ;;  %v689_v22 = vld [vmem:[%s6381_s28 + $0xa10] sm:$0xff] }
 0x263   : > { %3302 = vmatmul.mubr.f32.gmra.mrb[16].mxu0 %v587_v50  ;;  %v738_v50 = vld [vmem:[%s6381_s28 + $0xb98] sm:$0xff] }
 0x264   : > { %5189 = vmatpush1.bf16.msra.mxu0 %v5188_v53  ;;  %3307 = vmatprep.mubr.f32.mxu0 %v613_v54  ;;  %v5210_v53 = vpack.c.bf16 %v1530_v44, %v1528_v43  ;;  %v1527_v54 = vld [vmem:[#allocation5 + $0x17c0] sm:$0xff] }
 0x265   : > { %5191 = vmatprep.subr.bf16.mxu0 %v5190_v55  ;;  %3642 = vmatmul.mubr.f32.gmra.mrb[46].mxu1 %v666_v34  ;;  %v1529_v55 = vld [vmem:[#allocation5 + $0x17d0] sm:$0xff] }
 0x266   : > { %3647 = vmatprep.mubr.f32.mxu1 %v6101_v8  ;;  %v5212_v60 = vpack.c.bf16 %v1529_v55, %v1527_v54  ;;  %v441_v34 = vld [vmem:[%s6381_s28 + $0x250] sm:$0xff]  ;;  %v3720_v55 = vld [vmem:[%s7362_s3 + $0x80] sm:$0xff] }
 0x267   : > { %3308 = vmatmul.mubr.f32.gmra.mrb[18].mxu0 %v612_v62  ;;  %v763_v62 = vld [vmem:[%s6381_s28 + $0xc60] sm:$0xff] }
 0x268   : > { %5193 = vmatpush1.bf16.msra.mxu0 %v5192_v63  ;;  %3313 = vmatprep.mubr.f32.mxu0 %v638_v1  ;;  %v5214_v63 = vpack.c.bf16 %v1534_v57, %v1532_v56  ;;  %v1531_v1 = vld [vmem:[#allocation5 + $0x17e0] sm:$0xff]  ;;  %v3721_v56 = vld [vmem:[%s7362_s3 + $0x88] sm:$0xff] }
 0x269   : > { %5195 = vmatprep.subr.bf16.mxu0 %v5194_v3  ;;  %3648 = vmatmul.mubr.f32.gmra.mrb[48].mxu1 %v691_v45  ;;  %v1533_v3 = vld [vmem:[#allocation5 + $0x17f0] sm:$0xff]  ;;  %v3704_v57 = vld [vmem:[%s7362_s3] sm:$0xff] }
 0x26a   : > { %3653 = vmatprep.mubr.f32.mxu1 %v6101_v8  ;;  %v5216_v7 = vpack.c.bf16 %v1533_v3, %v1531_v1  ;;  %v3722_v1 = vld [vmem:[%s7362_s3 + $0x90] sm:$0xff]  ;;  %v3723_v3 = vld [vmem:[%s7362_s3 + $0x98] sm:$0xff] }
 0x26b   : > { %3314 = vmatmul.mubr.f32.gmra.mrb[20].mxu0 %v637_v11  ;;  %v389_v11 = vld [vmem:[%s6381_s28 + $0xb0] sm:$0xff] }
 0x26c   : > { %5197 = vmatpush1.bf16.msra.mxu0 %v5196_v12  ;;  %3319 = vmatprep.mubr.f32.mxu0 %v663_v13  ;;  %v415_v12 = vld [vmem:[%s6381_s28 + $0x180] sm:$0xff]  ;;  %v414_v13 = vld [vmem:[%s6381_s28 + $0x178] sm:$0xff] }
 0x26d   : > { %5199 = vmatprep.subr.bf16.mxu0 %v5198_v14  ;;  %3654 = vmatmul.mubr.f32.gmra.mrb[50].mxu1 %v716_v58  ;;  %v440_v14 = vld [vmem:[%s6381_s28 + $0x248] sm:$0xff] }
 0x26e   : > { %3659 = vmatprep.mubr.f32.mxu1 %v6101_v8 }
 0x26f   : > { %3320 = vmatmul.mubr.f32.gmra.mrb[22].mxu0 %v662_v24  ;;  %v715_v24 = vld [vmem:[%s6381_s28 + $0xae0] sm:$0xff] }
 0x270   : > { %5201 = vmatpush1.bf16.msra.mxu0 %v5200_v25  ;;  %3325 = vmatprep.mubr.f32.mxu0 %v688_v26  ;;  %v714_v25 = vld [vmem:[%s6381_s28 + $0xad8] sm:$0xff]  ;;  %v740_v26 = vld [vmem:[%s6381_s28 + $0xba8] sm:$0xff] }
 0x271   : > { %5203 = vmatprep.subr.bf16.mxu0 %v5202_v27  ;;  %3660 = vmatmul.mubr.f32.gmra.mrb[52].mxu1 %v741_v4  ;;  %v739_v27 = vld [vmem:[%s6381_s28 + $0xba0] sm:$0xff] }
 0x272   : > { %3665 = vmatprep.mubr.f32.mxu1 %v6101_v8 }
 0x273   : > { %3326 = vmatmul.mubr.f32.gmra.mrb[24].mxu0 %v687_v37  ;;  %v466_v37 = vld [vmem:[%s6381_s28 + $0x318] sm:$0xff] }
 0x274   : > { %5205 = vmatpush1.bf16.msra.mxu0 %v5204_v38  ;;  %3331 = vmatprep.mubr.f32.mxu0 %v713_v39 }
 0x275   : > { %5207 = vmatprep.subr.bf16.mxu0 %v5206_v40  ;;  %3666 = vmatmul.mubr.f32.gmra.mrb[54].mxu1 %v766_v10  ;;  %v3707_v10 = vld [vmem:[%s7362_s3 + $0x18] sm:$0xff] }
 0x277   : > { %3332 = vmatmul.mubr.f32.gmra.mrb[26].mxu0 %v712_v46 }
 0x278   : > { %5209 = vmatpush1.bf16.msra.mxu0 %v5208_v47  ;;  %3337 = vmatprep.mubr.f32.mxu0 %v738_v50 }
 0x279   : > { %5211 = vmatprep.subr.bf16.mxu0 %v5210_v53 }
 0x27b   : > { %3338 = vmatmul.mubr.f32.gmra.mrb[28].mxu0 %v737_v59  ;;  %v5250_v59 = vpack.c.bf16 %v3721_v56, %v3720_v55  ;;  %v3715_v55 = vld [vmem:[%s7362_s3 + $0x58] sm:$0xff] }
 0x27c   : > { %5213 = vmatpush1.bf16.msra.mxu0 %v5212_v60  ;;  %3343 = vmatprep.mubr.f32.mxu0 %v763_v62  ;;  %v3705_v60 = vld [vmem:[%s7362_s3 + $0x8] sm:$0xff] }
 0x27d   : > { %5215 = vmatprep.subr.bf16.mxu0 %v5214_v63  ;;  %v5252_v63 = vpack.c.bf16 %v3705_v60, %v3704_v57  ;;  %5251 = vmatprep.subr.bf16.mxu1 %v5250_v59  ;;  %v3732_v60 = vld [vmem:[%s7362_s3 + $0xe0] sm:$0xff] }
 0x27f   : > { %3344 = vmatmul.mubr.f32.gmra.mrb[30].mxu0 %v762_v6  ;;  %5253 = vmatpush3.bf16.msra.mxu1 %v5252_v63  ;;  %v5254_v6 = vpack.c.bf16 %v3723_v3, %v3722_v1  ;;  %v3733_v63 = vld [vmem:[%s7362_s3 + $0xe8] sm:$0xff]  ;;  %v3716_v3 = vld [vmem:[%s7362_s3 + $0x60] sm:$0xff] }
 0x280   : > { %5217 = vmatpush1.bf16.msra.mxu0 %v5216_v7  ;;  %3414 = vmatprep.mubr.f32.mxu0 %v390_v9  ;;  %v3706_v9 = vld [vmem:[%s7362_s3 + $0x10] sm:$0xff]  ;;  %v5274_v1 = vpack.c.bf16 %v3733_v63, %v3732_v60 }
 0x281   : > { %5219 = vmatprep.subr.bf16.mxu0 %v6707_v5  ;;  %v465_v5 = vld [vmem:[%s6381_s28 + $0x310] sm:$0xff]  ;;  %5255 = vmatprep.subr.bf16.mxu1 %v5254_v6  ;;  %v3717_v6 = vld [vmem:[%s7362_s3 + $0x68] sm:$0xff] }
 0x283   : > { %3415 = vmatmul.mubr.f32.vlgmr.msra.gmra.mrb[0].mxu0 %v389_v11  ;;  %v5256_v11 = vpack.c.bf16 %v3707_v10, %v3706_v9  ;;  %v5276_v9 = vpack.c.bf16 %v3717_v6, %v3716_v3  ;;  %v3734_v10 = vld [vmem:[%s7362_s3 + $0xf0] sm:$0xff]  ;;  %v1569_v6 = vlaneseq }
 0x284   : > { %5221 = vmatpush1.bf16.msra.mxu0 %v6713_v16  ;;  %3420 = vmatprep.mubr.f32.mxu0 %v415_v12  ;;  %v464_v16 = vld [vmem:[%s6381_s28 + $0x308] sm:$0xff] }
 0x285   : > { %5223 = vmatprep.subr.bf16.mxu0 %v6717_v23  ;;  %v489_v23 = vld [vmem:[%s6381_s28 + $0x3d0] sm:$0xff]  ;;  %5257 = vmatpush3.bf16.msra.mxu1 %v5256_v11  ;;  %v3735_v11 = vld [vmem:[%s7362_s3 + $0xf8] sm:$0xff] }
 0x287   : > { %3421 = vmatmul.mubr.f32.gmra.mrb[2].mxu0 %v414_v13 }
 0x288   : > { %3426 = vmatprep.mubr.f32.mxu0 %v440_v14  ;;  %5225 = vmatpush1.bf16.msra.mxu0 %v6721_v31  ;;  %v515_v31 = vld [vmem:[%s6381_s28 + $0x4a0] sm:$0xff] }
 0x289   : > { %5227 = vmatprep.subr.bf16.mxu0 %v6724_v35  ;;  %v514_v35 = vld [vmem:[%s6381_s28 + $0x498] sm:$0xff]  ;;  %v3724_v14 = vld [vmem:[%s7362_s3 + $0xa0] sm:$0xff] }
 0x28b   : > { %3427 = vmatmul.mubr.f32.gmra.mrb[4].mxu0 %v439_v15  ;;  %v3725_v15 = vld [vmem:[%s7362_s3 + $0xa8] sm:$0xff] }
 0x28c   : > { %3432 = vmatprep.mubr.f32.mxu0 %v465_v5  ;;  %5229 = vmatpush1.bf16.msra.mxu0 %v6731_v49  ;;  %v540_v49 = vld [vmem:[%s6381_s28 + $0x568] sm:$0xff]  ;;  %v3708_v5 = vld [vmem:[%s7362_s3 + $0x20] sm:$0xff] }
 0x28d   : > { %5231 = vmatprep.subr.bf16.mxu0 %v6734_v51  ;;  %v539_v51 = vld [vmem:[%s6381_s28 + $0x560] sm:$0xff] }
 0x28f   : > { %3433 = vmatmul.mubr.f32.gmra.mrb[6].mxu0 %v464_v16 }
 0x290   : > { %3438 = vmatprep.mubr.f32.mxu0 %v490_v18  ;;  %5233 = vmatpush1.bf16.msra.mxu0 %v6740_v0  ;;  %v565_v0 = vld [vmem:[%s6381_s28 + $0x630] sm:$0xff]  ;;  %v5258_v18 = vpack.c.bf16 %v3725_v15, %v3724_v14  ;;  %v5278_v14 = vpack.c.bf16 %v3735_v11, %v3734_v10 }
 0x291   : > { %5235 = vmatprep.subr.bf16.mxu0 %v6743_v2  ;;  %v564_v2 = vld [vmem:[%s6381_s28 + $0x628] sm:$0xff]  ;;  %v3718_v15 = vld [vmem:[%s7362_s3 + $0x70] sm:$0xff] }
 0x292   : > { %5259 = vmatprep.subr.bf16.mxu1 %v5258_v18  ;;  %v3905_v10 = vld [vmem:[#allocation10 + $0x8] sm:$0xff] }
 0x293   : > { %3439 = vmatmul.mubr.f32.gmra.mrb[8].mxu0 %v489_v23  ;;  %v3709_v23 = vld [vmem:[%s7362_s3 + $0x28] sm:$0xff] }
 0x294   : > { %3444 = vmatprep.mubr.f32.mxu0 %v515_v31  ;;  %5237 = vmatpush1.bf16.msra.mxu0 %v6749_v17  ;;  %v590_v17 = vld [vmem:[%s6381_s28 + $0x6f8] sm:$0xff] }
 0x295   : > { %5239 = vmatprep.subr.bf16.mxu0 %v6752_v19  ;;  %v589_v19 = vld [vmem:[%s6381_s28 + $0x6f0] sm:$0xff] }
 0x297   : > { %3445 = vmatmul.mubr.f32.gmra.mrb[10].mxu0 %v514_v35  ;;  %v5260_v35 = vpack.c.bf16 %v3709_v23, %v3708_v5  ;;  %v3719_v5 = vld [vmem:[%s7362_s3 + $0x78] sm:$0xff] }
 0x298   : > { %3450 = vmatprep.mubr.f32.mxu0 %v540_v49  ;;  %5241 = vmatpush1.bf16.msra.mxu0 %v6757_v33  ;;  %v615_v33 = vld [vmem:[%s6381_s28 + $0x7c0] sm:$0xff]  ;;  %v3726_v49 = vld [vmem:[%s7362_s3 + $0xb0] sm:$0xff]  ;;  %v5280_v18 = vpack.c.bf16 %v3719_v5, %v3718_v15 }
 0x299   : > { %5243 = vmatprep.subr.bf16.mxu0 %v6760_v36  ;;  %v614_v36 = vld [vmem:[%s6381_s28 + $0x7b8] sm:$0xff]  ;;  %5261 = vmatpush3.bf16.msra.mxu1 %v5260_v35  ;;  %v1567_v5 = vld [vmem:[#allocation7] sm:$0x3] }
 0x29b   : > { %3451 = vmatmul.mubr.f32.gmra.mrb[12].mxu0 %v539_v51  ;;  %v3727_v51 = vld [vmem:[%s7362_s3 + $0xb8] sm:$0xff] }
 0x29c   : > { %3456 = vmatprep.mubr.f32.mxu0 %v565_v0  ;;  %5245 = vmatpush1.bf16.msra.mxu0 %v6765_v48  ;;  %v639_v48 = vld [vmem:[%s6381_s28 + $0x880] sm:$0xff] }
 0x29d   : > { %5247 = vmatprep.subr.bf16.mxu0 %v6768_v52  ;;  %v665_v52 = vld [vmem:[%s6381_s28 + $0x950] sm:$0xff] }
 0x29f   : > { %3457 = vmatmul.mubr.f32.gmra.mrb[14].mxu0 %v564_v2  ;;  %v5262_v2 = vpack.c.bf16 %v3727_v51, %v3726_v49 }
 0x2a0   : > { %3462 = vmatprep.mubr.f32.mxu0 %v590_v17  ;;  %5249 = vmatpush1.bf16.msra.mxu0 %v6773_v61  ;;  %v690_v61 = vld [vmem:[%s6381_s28 + $0xa18] sm:$0xff] }
 0x2a1   : > { %5263 = vmatprep.subr.bf16.mxu1 %v5262_v2 }
 0x2a3   : > { %3463 = vmatmul.mubr.f32.gmra.mrb[16].mxu0 %v589_v19  ;;  %v3710_v19 = vld [vmem:[%s7362_s3 + $0x30] sm:$0xff] }
 0x2a4   : > { %3468 = vmatprep.mubr.f32.mxu0 %v615_v33  ;;  %v3711_v33 = vld [vmem:[%s7362_s3 + $0x38] sm:$0xff] }
 0x2a7   : > { %3469 = vmatmul.mubr.f32.gmra.mrb[18].mxu0 %v614_v36  ;;  %v5264_v36 = vpack.c.bf16 %v3711_v33, %v3710_v19 }
 0x2a8   : > { %3474 = vmatprep.mubr.f32.mxu0 %v640_v20 }
 0x2a9   : > { %5265 = vmatpush3.bf16.msra.mxu1 %v5264_v36 }
 0x2ab   : > { %3475 = vmatmul.mubr.f32.gmra.mrb[20].mxu0 %v639_v48 }
 0x2ac   : > { %3480 = vmatprep.mubr.f32.mxu0 %v665_v52  ;;  %v3728_v52 = vld [vmem:[%s7362_s3 + $0xc0] sm:$0xff] }
 0x2af   : > { %3481 = vmatmul.mubr.f32.gmra.mrb[22].mxu0 %v664_v21  ;;  %v3729_v21 = vld [vmem:[%s7362_s3 + $0xc8] sm:$0xff] }
 0x2b0   : > { %3486 = vmatprep.mubr.f32.mxu0 %v690_v61  ;;  %v3712_v61 = vld [vmem:[%s7362_s3 + $0x40] sm:$0xff] }
 0x2b3   : > { %3487 = vmatmul.mubr.f32.gmra.mrb[24].mxu0 %v689_v22 }
 0x2b4   : > { %3492 = vmatprep.mubr.f32.mxu0 %v715_v24  ;;  %v5266_v24 = vpack.c.bf16 %v3729_v21, %v3728_v52 }
 0x2b6   : > { %5267 = vmatprep.subr.bf16.mxu1 %v5266_v24 }
 0x2b7   : > { %3493 = vmatmul.mubr.f32.gmra.mrb[26].mxu0 %v714_v25  ;;  %v3713_v25 = vld [vmem:[%s7362_s3 + $0x48] sm:$0xff] }
 0x2b8   : > { %3498 = vmatprep.mubr.f32.mxu0 %v740_v26 }
 0x2bb   : > { %3499 = vmatmul.mubr.f32.gmra.mrb[28].mxu0 %v739_v27  ;;  %v5268_v27 = vpack.c.bf16 %v3713_v25, %v3712_v61 }
 0x2bc   : > { %3504 = vmatprep.mubr.f32.mxu0 %v765_v28  ;;  %v3730_v28 = vld [vmem:[%s7362_s3 + $0xd0] sm:$0xff] }
 0x2bd   : > { %5269 = vmatpush3.bf16.msra.mxu1 %v5268_v27 }
 0x2bf   : > { %3505 = vmatmul.mubr.f32.gmra.mrb[30].mxu0 %v764_v29  ;;  %v3731_v29 = vld [vmem:[%s7362_s3 + $0xd8] sm:$0xff] }
 0x2c0   : > { %3575 = vmatprep.mubr.f32.mxu0 %v6101_v8 }
 0x2c3   : > { %3576 = vmatmul.mubr.f32.vlgmr.msra.gmra.mrb[0].mxu0 %v391_v30 }
 0x2c4   : > { %3581 = vmatprep.mubr.f32.mxu0 %v6101_v8 }
 0x2c7   : > { %3582 = vmatmul.mubr.f32.gmra.mrb[2].mxu0 %v416_v32  ;;  %v5270_v32 = vpack.c.bf16 %v3731_v29, %v3730_v28 }
 0x2c8   : > { %3587 = vmatprep.mubr.f32.mxu0 %v6101_v8 }
 0x2c9   : > { %5271 = vmatprep.subr.bf16.mxu1 %v5270_v32 }
 0x2cb   : > { %3588 = vmatmul.mubr.f32.gmra.mrb[4].mxu0 %v441_v34 }
 0x2cc   : > { %3593 = vmatprep.mubr.f32.mxu0 %v6101_v8 }
 0x2cf   : > { %3594 = vmatmul.mubr.f32.gmra.mrb[6].mxu0 %v466_v37  ;;  %v3714_v37 = vld [vmem:[%s7362_s3 + $0x50] sm:$0xff] }
 0x2d0   : > { %v5272_v56 = vpack.c.bf16 %v3715_v55, %v3714_v37 }
 0x2d2   : > { %5273 = vmatpush3.bf16.msra.mxu1 %v5272_v56 }
 0x2d3   : > { %5275 = vmatprep.subr.bf16.mxu1 %v5274_v1 }
 0x2d5   : > { %v6879_v38 = vpop.f32.mrb[0].mxu1 }
 0x2d6   : > { %v6881_v39 = vpop.f32.mrb[1].mxu1  ;;  %5277 = vmatpush3.bf16.msra.mxu1 %v5276_v9  ;;  %v3904_v9 = vld [vmem:[#allocation10] sm:$0xff] }
 0x2d7   : > { %5279 = vmatprep.subr.bf16.mxu1 %v5278_v14  ;;  %v7071_v11 = vpack.c.bf16 %v3905_v10, %v3904_v9  ;;  %v1570_v14 = vshrl.u32 %v1569_v6, 7 }
 0x2d9   : > { %v6883_v40 = vpop.f32.mrb[2].mxu1  ;;  %7395 = vst [vmem:[#allocation26_spill] sm:$0xff] %v7071_v11  ;;  %v1571_v15 = vsub.s32 0, %v1570_v14 }
 0x2da   : > { %7388 = vst [vmem:[#allocation19_spill] sm:$0xff] %v6883_v40  ;;  %v6885_v41 = vpop.f32.mrb[3].mxu1  ;;  %5281 = vmatpush3.bf16.msra.mxu1 %v5280_v18  ;;  %v1575_v18 = vsub.s32 1, %v1570_v14 }
 0x2db   : > { %7389 = vst [vmem:[#allocation20_spill] sm:$0xff] %v6885_v41  ;;  %5283 = vmatprep.subr.bf16.mxu1 %v7071_v11 }
 0x2dd   : > { %v6887_v42 = vpop.f32.mrb[4].mxu1 }
 0x2de   : > { %7390 = vst [vmem:[#allocation21_spill] sm:$0xff] %v6887_v42  ;;  %v6889_v43 = vpop.f32.mrb[5].mxu1 }
 0x2df   : > { %7391 = vst [vmem:[#allocation22_spill] sm:$0xff] %v6889_v43 }
 0x2e1   : > { %v6891_v44 = vpop.f32.mrb[6].mxu1 }
 0x2e2   : > { %7392 = vst [vmem:[#allocation23_spill] sm:$0xff] %v6891_v44  ;;  %v6893_v45 = vpop.f32.mrb[7].mxu1  ;;  %v7076_v44 = vrot.slane %v1567_v5, %v1575_v18 }
 0x2e3   : > { %7393 = vst [vmem:[#allocation24_spill] sm:$0xff] %v6893_v45  ;;  %v7074_v45 = vrot.slane %v1567_v5, %v1571_v15 }
 0x2e5   : > { %v6895_v46 = vpop.f32.mrb[8].mxu1 }
 0x2e6   : > { %v6897_v8 = vpop.f32.mrb[9].mxu1  ;;  %v5330_v43 = vadd.f32 %v6895_v46, %v7074_v45 }
 0x2e7   : > { %v5333_v42 = vadd.f32 %v6897_v8, %v7076_v44 }
 0x2e9   : > { %v6899_v47 = vpop.f32.mrb[10].mxu1 }
 0x2ea   : > { %v6901_v50 = vpop.f32.mrb[11].mxu1  ;;  %v5336_v6 = vadd.f32 %v6899_v47, %v7074_v45 }
 0x2eb   : > { %v5339_v14 = vadd.f32 %v6901_v50, %v7076_v44 }
 0x2ed   : > { %v6903_v53 = vpop.f32.mrb[12].mxu1 }
 0x2ee   : > { %v6905_v54 = vpop.f32.mrb[13].mxu1  ;;  %v5342_v8 = vadd.f32 %v6903_v53, %v7074_v45 }
 0x2f1   : > { %v6916_v58 = vpop.f32.mrb[14].mxu1 }
 0x2f2   : > { %v6921_v62 = vpop.f32.mrb[15].mxu1 }
 0x2f5   : > { %v6929_v4 = vpop.f32.mrb[16].mxu1 }
 0x2f6   : > { %v6931_v7 = vpop.f32.mrb[17].mxu1 }
 0x2f9   : > { %v6939_v12 = vpop.f32.mrb[18].mxu1 }
 0x2fa   : > { %v6941_v13 = vpop.f32.mrb[19].mxu1 }
 0x2fd   : > { %v6952_v16 = vpop.f32.mrb[20].mxu1 }
 0x2fe   : > { %v6957_v31 = vpop.f32.mrb[21].mxu1 }
 0x301   : > { %v6965_v0 = vpop.f32.mrb[22].mxu1 }
 0x302   : > { %v6967_v17 = vpop.f32.mrb[23].mxu1 }
 0x305   : > { %v6975_v20 = vpop.f32.mrb[24].mxu1 }
 0x306   : > { %v6977_v48 = vpop.f32.mrb[25].mxu1 }
 0x309   : > { %v6988_v22 = vpop.f32.mrb[26].mxu1 }
 0x30a   : > { %v6993_v26 = vpop.f32.mrb[27].mxu1 }
 0x30d   : > { %v7001_v30 = vpop.f32.mrb[28].mxu1 }
 0x30e   : > { %v7003_v34 = vpop.f32.mrb[29].mxu1 }
 0x311   : > { %v7011_v57 = vpop.f32.mrb[30].mxu1 }
 0x312   : > { %v7013_v59 = vpop.f32.mrb[31].mxu1 }
 0x31c   : > { %v3601_v23 = vpop.f32.mrb[32].mxu1 }
 0x31d   : > { %v3603_v35 = vpop.f32.mrb[33].mxu1 }
 0x320   : > { %v3607_v49 = vpop.f32.mrb[34].mxu1 }
 0x321   : > { %v3609_v51 = vpop.f32.mrb[35].mxu1 }
 0x324   : > { %v3613_v2 = vpop.f32.mrb[36].mxu1 }
 0x325   : > { %v3615_v19 = vpop.f32.mrb[37].mxu1 }
 0x328   : > { %v3619_v33 = vpop.f32.mrb[38].mxu1 }
 0x329   : > { %v3621_v36 = vpop.f32.mrb[39].mxu1 }
 0x32c   : > { %v7039_v52 = vpop.f32.mrb[40].mxu1 }
 0x32d   : > { %v7041_v21 = vpop.f32.mrb[41].mxu1 }
 0x330   : > { %v7043_v61 = vpop.f32.mrb[42].mxu1 }
 0x331   : > { %v7045_v24 = vpop.f32.mrb[43].mxu1 }
 0x334   : > { %v7047_v25 = vpop.f32.mrb[44].mxu1 }
 0x335   : > { %v7049_v27 = vpop.f32.mrb[45].mxu1 }
 0x338   : > { %v7051_v28 = vpop.f32.mrb[46].mxu1 }
 0x339   : > { %v7053_v29 = vpop.f32.mrb[47].mxu1 }
 0x33c   : > { %v7055_v32 = vpop.f32.mrb[48].mxu1 }
 0x33d   : > { %v7057_v37 = vpop.f32.mrb[49].mxu1 }
 0x340   : > { %v7059_v55 = vpop.f32.mrb[50].mxu1 }
 0x341   : > { %v7061_v56 = vpop.f32.mrb[51].mxu1 }
 0x344   : > { %v7063_v60 = vpop.f32.mrb[52].mxu1 }
 0x345   : > { %v7065_v63 = vpop.f32.mrb[53].mxu1 }
 0x348   : > { %v7067_v1 = vpop.f32.mrb[54].mxu1 }
 0x349   : > { %v7069_v3 = vpop.f32.mrb[55].mxu1 }
 0x34a   : > { %7394 = vst [vmem:[#allocation25_spill] sm:$0xff] %v7069_v3 }
 0x366   : > { %v3440_v41 = vpop.f32.mrb[8].mxu0 }
 0x367   : > { %v5331_v40 = vadd.f32 %v5330_v43, %v3440_v41  ;;  %v3442_v9 = vpop.f32.mrb[9].mxu0 }
 0x368   : > { %v5334_v10 = vadd.f32 %v5333_v42, %v3442_v9  ;;  %v5345_v42 = vadd.f32 %v6905_v54, %v7076_v44 }
 0x369   : > { %v7084_v11 = vadd.f32 %v5331_v40, %v3601_v23 }
 0x36a   : > { %v7088_v15 = vadd.f32 %v5334_v10, %v3603_v35  ;;  %v3446_v5 = vpop.f32.mrb[10].mxu0  ;;  %v5348_v35 = vadd.f32 %v6916_v58, %v7074_v45  ;;  %v5351_v10 = vadd.f32 %v6921_v62, %v7076_v44 }
 0x36b   : > { %v5337_v18 = vadd.f32 %v5336_v6, %v3446_v5  ;;  %v3448_v46 = vpop.f32.mrb[11].mxu0  ;;  %v5357_v5 = vadd.f32 %v6931_v7, %v7076_v44 }
 0x36c   : > { %v5340_v3 = vadd.f32 %v5339_v14, %v3448_v46 }
 0x36d   : > { %v7092_v41 = vadd.f32 %v5337_v18, %v3607_v49 }
 0x36e   : > { %v7096_v43 = vadd.f32 %v5340_v3, %v3609_v51  ;;  %v3452_v40 = vpop.f32.mrb[12].mxu0  ;;  %v5354_v51 = vadd.f32 %v6929_v4, %v7074_v45  ;;  %v5363_v4 = vadd.f32 %v6941_v13, %v7076_v44 }
 0x36f   : > { %v5343_v47 = vadd.f32 %v5342_v8, %v3452_v40  ;;  %v3454_v23 = vpop.f32.mrb[13].mxu0 }
 0x370   : > { %v5346_v50 = vadd.f32 %v5345_v42, %v3454_v23 }
 0x371   : > { %v7100_v9 = vadd.f32 %v5343_v47, %v3613_v2  ;;  %v5366_v47 = vadd.f32 %v6952_v16, %v7074_v45  ;;  %v5375_v16 = vadd.f32 %v6967_v17, %v7076_v44 }
 0x372   : > { %v7104_v53 = vadd.f32 %v5346_v50, %v3615_v19  ;;  %v3458_v49 = vpop.f32.mrb[14].mxu0  ;;  %v5360_v19 = vadd.f32 %v6939_v12, %v7074_v45  ;;  %v5369_v12 = vadd.f32 %v6957_v31, %v7076_v44 }
 0x373   : > { %v5349_v6 = vadd.f32 %v5348_v35, %v3458_v49  ;;  %v3460_v14 = vpop.f32.mrb[15].mxu0 }
 0x374   : > { %v5352_v54 = vadd.f32 %v5351_v10, %v3460_v14  ;;  %v5372_v10 = vadd.f32 %v6965_v0, %v7074_v45  ;;  %v5381_v0 = vadd.f32 %v6977_v48, %v7076_v44 }
 0x375   : > { %v7108_v3 = vadd.f32 %v5349_v6, %v3619_v33 }
 0x376   : > { %v7112_v58 = vadd.f32 %v5352_v54, %v3621_v36  ;;  %v3464_v2 = vpop.f32.mrb[16].mxu0  ;;  %v5378_v54 = vadd.f32 %v6975_v20, %v7074_v45  ;;  %v5387_v20 = vadd.f32 %v6993_v26, %v7076_v44 }
 0x377   : > { %v5355_v18 = vadd.f32 %v5354_v51, %v3464_v2  ;;  %v3466_v46 = vpop.f32.mrb[17].mxu0 }
 0x378   : > { %v5358_v62 = vadd.f32 %v5357_v5, %v3466_v46 }
 0x379   : > { %v7117_v8 = vadd.f32 %v5355_v18, %v7039_v52  ;;  %v5384_v18 = vadd.f32 %v6988_v22, %v7074_v45  ;;  %v5393_v22 = vadd.f32 %v7003_v34, %v7076_v44 }
 0x37a   : > { %v7122_v33 = vadd.f32 %v5358_v62, %v7041_v21  ;;  %v3470_v42 = vpop.f32.mrb[18].mxu0 }
 0x37b   : > { %v5361_v7 = vadd.f32 %v5360_v19, %v3470_v42  ;;  %v3472_v36 = vpop.f32.mrb[19].mxu0 }
 0x37c   : > { %v5364_v40 = vadd.f32 %v5363_v4, %v3472_v36  ;;  %v5390_v4 = vadd.f32 %v7001_v30, %v7074_v45  ;;  %v5399_v30 = vadd.f32 %v7013_v59, %v7076_v44 }
 0x37d   : > { %v7127_v23 = vadd.f32 %v5361_v7, %v7043_v61 }
 0x37e   : > { %v7132_v52 = vadd.f32 %v5364_v40, %v7045_v24  ;;  %v3476_v13 = vpop.f32.mrb[20].mxu0  ;;  %v5396_v40 = vadd.f32 %v7011_v57, %v7074_v45  ;;  %v5316_v57 = vadd.f32 %v6881_v39, %v7076_v44 }
 0x37f   : > { %v5367_v50 = vadd.f32 %v5366_v47, %v3476_v13  ;;  %v3478_v21 = vpop.f32.mrb[21].mxu0 }
 0x380   : > { %v5370_v35 = vadd.f32 %v5369_v12, %v3478_v21 }
 0x381   : > { %v7137_v49 = vadd.f32 %v5367_v50, %v7047_v25  ;;  %v5314_v50 = vadd.f32 %v6879_v38, %v7074_v45  ;;  %v7398_v38 = vld [vmem:[#allocation20_spill] sm:$0xff] }
 0x382   : > { %v7142_v61 = vadd.f32 %v5370_v35, %v7049_v27  ;;  %v3482_v31 = vpop.f32.mrb[22].mxu0 }
 0x383   : > { %v5373_v6 = vadd.f32 %v5372_v10, %v3482_v31  ;;  %v3484_v24 = vpop.f32.mrb[23].mxu0  ;;  %v3906_v31 = vld [vmem:[#allocation10 + $0x10] sm:$0xff] }
 0x384   : > { %v5376_v14 = vadd.f32 %v5375_v16, %v3484_v24  ;;  %v7397_v24 = vld [vmem:[#allocation19_spill] sm:$0xff] }
 0x385   : > { %v7147_v51 = vadd.f32 %v5373_v6, %v7051_v28  ;;  %v3907_v6 = vld [vmem:[#allocation10 + $0x18] sm:$0xff] }
 0x386   : > { %v7152_v25 = vadd.f32 %v5376_v14, %v7053_v29  ;;  %v3488_v17 = vpop.f32.mrb[24].mxu0  ;;  %v5318_v14 = vadd.f32 %v7397_v24, %v7074_v45  ;;  %v3909_v24 = vld [vmem:[#allocation10 + $0x28] sm:$0xff] }
 0x387   : > { %v5379_v5 = vadd.f32 %v5378_v54, %v3488_v17  ;;  %v3490_v27 = vpop.f32.mrb[25].mxu0  ;;  %v5320_v54 = vadd.f32 %v7398_v38, %v7076_v44 }
 0x388   : > { %v5382_v2 = vadd.f32 %v5381_v0, %v3490_v27  ;;  %v5286_v27 = vpack.c.bf16 %v3907_v6, %v3906_v31  ;;  %v3685_v31 = vmul.f32 %v7104_v53, %v7104_v53  ;;  %v3687_v6 = vmul.f32 %v7112_v58, %v7112_v58 }
 0x389   : > { %v7157_v46 = vadd.f32 %v5379_v5, %v7055_v32  ;;  %v3691_v53 = vmul.f32 %v7132_v52, %v7132_v52  ;;  %v3693_v58 = vmul.f32 %v7142_v61, %v7142_v61 }
 0x38a   : > { %v7162_v28 = vadd.f32 %v5382_v2, %v7057_v37  ;;  %v3494_v48 = vpop.f32.mrb[26].mxu0 }
 0x38b   : > { %v5385_v62 = vadd.f32 %v5384_v18, %v3494_v48  ;;  %v3496_v29 = vpop.f32.mrb[27].mxu0  ;;  %v7399_v18 = vld [vmem:[#allocation21_spill] sm:$0xff]  ;;  %v7400_v48 = vld [vmem:[#allocation22_spill] sm:$0xff] }
 0x38c   : > { %v5388_v19 = vadd.f32 %v5387_v20, %v3496_v29  ;;  %v5322_v20 = vadd.f32 %v7399_v18, %v7074_v45  ;;  %v3697_v52 = vmul.f32 %v7162_v28, %v7162_v28 }
 0x38d   : > { %v7167_v42 = vadd.f32 %v5385_v62, %v7059_v55  ;;  %v5324_v62 = vadd.f32 %v7400_v48, %v7076_v44 }
 0x38e   : > { %v7172_v32 = vadd.f32 %v5388_v19, %v7061_v56  ;;  %v3500_v26 = vpop.f32.mrb[28].mxu0 }
 0x38f   : > { %v5391_v7 = vadd.f32 %v5390_v4, %v3500_v26  ;;  %v3502_v37 = vpop.f32.mrb[29].mxu0  ;;  %v7401_v4 = vld [vmem:[#allocation26_spill] sm:$0xff] }
 0x390   : > { %v5394_v36 = vadd.f32 %v5393_v22, %v3502_v37  ;;  %v3699_v61 = vmul.f32 %v7172_v32, %v7172_v32  ;;  %v3908_v32 = vld [vmem:[#allocation10 + $0x20] sm:$0xff] }
 0x391   : > { %v7177_v47 = vadd.f32 %v5391_v7, %v7063_v60  ;;  %v7396_v60 = vld [vmem:[#allocation25_spill] sm:$0xff] }
 0x392   : > { %v7182_v55 = vadd.f32 %v5394_v36, %v7065_v63  ;;  %v3506_v34 = vpop.f32.mrb[30].mxu0  ;;  %v7402_v36 = vld [vmem:[#allocation23_spill] sm:$0xff] }
 0x393   : > { %v5397_v12 = vadd.f32 %v5396_v40, %v3506_v34  ;;  %v3508_v56 = vpop.f32.mrb[31].mxu0  ;;  %v5326_v40 = vadd.f32 %v7402_v36, %v7074_v45  ;;  %v3683_v45 = vmul.f32 %v7096_v43, %v7096_v43  ;;  %v3689_v43 = vmul.f32 %v7122_v33, %v7122_v33 }
 0x394   : > { %v5400_v13 = vadd.f32 %v5399_v30, %v3508_v56  ;;  %v7403_v30 = vld [vmem:[#allocation24_spill] sm:$0xff]  ;;  %v3695_v33 = vmul.f32 %v7152_v25, %v7152_v25  ;;  %v3701_v25 = vmul.f32 %v7182_v55, %v7182_v55 }
 0x395   : > { %v7187_v21 = vadd.f32 %v5397_v12, %v7067_v1  ;;  %v5328_v34 = vadd.f32 %v7403_v30, %v7076_v44  ;;  %v3680_v44 = vmul.f32 %v7084_v11, %v7084_v11  ;;  %v3686_v11 = vmul.f32 %v7108_v3, %v7108_v3  ;;  %v3910_v55 = vld [vmem:[#allocation10 + $0x30] sm:$0xff] }
 0x396   : > { %v7192_v35 = vadd.f32 %v5400_v13, %v7396_v60  ;;  %v3577_v59 = vpop.f32.mrb[0].mxu0  ;;  %v3692_v3 = vmul.f32 %v7137_v49, %v7137_v49  ;;  %v3698_v49 = vmul.f32 %v7167_v42, %v7167_v42  ;;  %v5290_v42 = vpack.c.bf16 %v3909_v24, %v3908_v32 }
 0x397   : > { %v5315_v10 = vadd.f32 %v5314_v50, %v3577_v59  ;;  %v3579_v63 = vpop.f32.mrb[1].mxu0 }
 0x398   : > { %v5317_v16 = vadd.f32 %v5316_v57, %v3579_v63  ;;  %v3681_v63 = vmul.f32 %v7088_v15, %v7088_v15  ;;  %v3684_v15 = vmul.f32 %v7100_v9, %v7100_v9  ;;  %v3690_v9 = vmul.f32 %v7127_v23, %v7127_v23 }
 0x399   : > { %v3672_v17 = vmul.f32 %v5315_v10, %v5315_v10  ;;  %v3696_v23 = vmul.f32 %v7157_v46, %v7157_v46  ;;  %v3703_v28 = vmul.f32 %v7192_v35, %v7192_v35  ;;  %v3702_v46 = vmul.f32 %v7187_v21, %v7187_v21 }
 0x39a   : > { %v3673_v1 = vmul.f32 %v5317_v16, %v5317_v16  ;;  %v3583_v0 = vpop.f32.mrb[2].mxu0  ;;  %v3682_v16 = vmul.f32 %v7092_v41, %v7092_v41  ;;  %v3688_v41 = vmul.f32 %v7117_v8, %v7117_v8  ;;  %v3694_v8 = vmul.f32 %v7147_v51, %v7147_v51 }
 0x39b   : > { %v5319_v5 = vadd.f32 %v5318_v14, %v3583_v0  ;;  %v3585_v39 = vpop.f32.mrb[3].mxu0  ;;  %v3700_v51 = vmul.f32 %v7177_v47, %v7177_v47  ;;  %v3911_v14 = vld [vmem:[#allocation10 + $0x38] sm:$0xff] }
 0x39c   : > { %v5321_v2 = vadd.f32 %v5320_v54, %v3585_v39  ;;  %3807 = vmatprep.mubr.f32.mxu1 %v3673_v1  ;;  %v5294_v38 = vpack.c.bf16 %v3911_v14, %v3910_v55  ;;  %v7255_v54 = vld [vmem:[#allocation8] ss:$0 sm:$0xff] }
 0x39d   : > { %3808 = vmatmul.mubr.f32.vlgmr.msra.gmra.mrb[56].mxu1 %v3672_v17  ;;  %v3674_v22 = vmul.f32 %v5319_v5, %v5319_v5 }
 0x39e   : > { %v3675_v29 = vmul.f32 %v5321_v2, %v5321_v2  ;;  %v3589_v19 = vpop.f32.mrb[4].mxu0  ;;  %5285 = vmatpush3.bf16.msra.mxu1 %v7401_v4 }
 0x39f   : > { %v5323_v26 = vadd.f32 %v5322_v20, %v3589_v19  ;;  %v3591_v7 = vpop.f32.mrb[5].mxu0  ;;  %5287 = vmatprep.subr.bf16.mxu1 %v5286_v27 }
 0x3a0   : > { %v5325_v37 = vadd.f32 %v5324_v62, %v3591_v7  ;;  %3812 = vmatprep.mubr.f32.mxu1 %v3675_v29 }
 0x3a1   : > { %3813 = vmatmul.mubr.f32.gmra.mrb[58].mxu1 %v3674_v22  ;;  %v3676_v13 = vmul.f32 %v5323_v26, %v5323_v26 }
 0x3a2   : > { %v3677_v12 = vmul.f32 %v5325_v37, %v5325_v37  ;;  %v3595_v56 = vpop.f32.mrb[6].mxu0  ;;  %5289 = vmatpush3.bf16.msra.mxu1 %v5286_v27 }
 0x3a3   : > { %v5327_v50 = vadd.f32 %v5326_v40, %v3595_v56  ;;  %v3597_v57 = vpop.f32.mrb[7].mxu0  ;;  %5291 = vmatprep.subr.bf16.mxu1 %v5290_v42 }
 0x3a4   : > { %v5329_v60 = vadd.f32 %v5328_v34, %v3597_v57  ;;  %3817 = vmatprep.mubr.f32.mxu1 %v3677_v12 }
 0x3a5   : > { %3818 = vmatmul.mubr.f32.gmra.mrb[60].mxu1 %v3676_v13  ;;  %v3678_v10 = vmul.f32 %v5327_v50, %v5327_v50 }
 0x3a6   : > { %v3679_v59 = vmul.f32 %v5329_v60, %v5329_v60  ;;  %5293 = vmatpush3.bf16.msra.mxu1 %v5290_v42 }
 0x3a7   : > { %5295 = vmatprep.subr.bf16.mxu1 %v5294_v38 }
 0x3a8   : > { %3822 = vmatprep.mubr.f32.mxu1 %v3679_v59 }
 0x3a9   : > { %3823 = vmatmul.mubr.f32.gmra.mrb[62].mxu1 %v3678_v10 }
 0x3aa   : > { %3827 = vmatprep.mubr.f32.mxu1 %v3681_v63  ;;  %5297 = vmatpush3.bf16.msra.mxu1 %v5294_v38 }
 0x3ad   : > { %3828 = vmatmul.mubr.f32.gmra.mrb[64].mxu1 %v3680_v44 }
 0x3ae   : > { %3832 = vmatprep.mubr.f32.mxu1 %v3683_v45 }
 0x3b1   : > { %3833 = vmatmul.mubr.f32.gmra.mrb[66].mxu1 %v3682_v16 }
 0x3b2   : > { %3837 = vmatprep.mubr.f32.mxu1 %v3685_v31 }
 0x3b5   : > { %3838 = vmatmul.mubr.f32.gmra.mrb[68].mxu1 %v3684_v15 }
 0x3b6   : > { %3842 = vmatprep.mubr.f32.mxu1 %v3687_v6 }
 0x3b9   : > { %3843 = vmatmul.mubr.f32.gmra.mrb[70].mxu1 %v3686_v11 }
 0x3ba   : > { %3847 = vmatprep.mubr.f32.mxu1 %v3689_v43 }
 0x3bd   : > { %3848 = vmatmul.mubr.f32.gmra.mrb[72].mxu1 %v3688_v41 }
 0x3be   : > { %3852 = vmatprep.mubr.f32.mxu1 %v3691_v53 }
 0x3c1   : > { %3853 = vmatmul.mubr.f32.gmra.mrb[74].mxu1 %v3690_v9 }
 0x3c2   : > { %3857 = vmatprep.mubr.f32.mxu1 %v3693_v58 }
 0x3c5   : > { %3858 = vmatmul.mubr.f32.gmra.mrb[76].mxu1 %v3692_v3 }
 0x3c6   : > { %3862 = vmatprep.mubr.f32.mxu1 %v3695_v33 }
 0x3c9   : > { %3863 = vmatmul.mubr.f32.gmra.mrb[78].mxu1 %v3694_v8 }
 0x3ca   : > { %3867 = vmatprep.mubr.f32.mxu1 %v3697_v52 }
 0x3cd   : > { %3868 = vmatmul.mubr.f32.gmra.mrb[80].mxu1 %v3696_v23 }
 0x3ce   : > { %3872 = vmatprep.mubr.f32.mxu1 %v3699_v61 }
 0x3d1   : > { %3873 = vmatmul.mubr.f32.gmra.mrb[82].mxu1 %v3698_v49 }
 0x3d2   : > { %3877 = vmatprep.mubr.f32.mxu1 %v3701_v25 }
 0x3d5   : > { %3878 = vmatmul.mubr.f32.gmra.mrb[84].mxu1 %v3700_v51 }
 0x3d6   : > { %3882 = vmatprep.mubr.f32.mxu1 %v3703_v28 }
 0x3d9   : > { %3883 = vmatmul.mubr.f32.gmra.mrb[86].mxu1 %v3702_v46 }
 0x470   : > { %v4338_v47 = vpop.f32.mrb[56].mxu1 }
 0x471   : > { %v4339_v35 = vpop.f32.mrb[57].mxu1 }
 0x472   : > { %v4340_v1 = vadd.f32 %v4339_v35, %v4338_v47 }
 0x474   : > { %v3810_v0 = vadd.f32 %v4340_v1, %v7255_v54  ;;  %v4341_v17 = vpop.f32.mrb[58].mxu1 }
 0x475   : > { %v4342_v21 = vpop.f32.mrb[59].mxu1 }
 0x476   : > { %v3888_v5 = vmul.f32 %v3810_v0, %v3810_v0  ;;  %v4343_v39 = vadd.f32 %v4342_v21, %v4341_v17 }
 0x478   : > { %v3815_v27 = vadd.f32 %v4343_v39, %v7255_v54  ;;  %v4344_v2 = vpop.f32.mrb[60].mxu1  ;;  %4426 = vmatprep.mubr.msk.f32.mxu1 %vm3919_vm0, %v3888_v5 }
 0x479   : > { %v4345_v18 = vpop.f32.mrb[61].mxu1 }
 0x47a   : > { %v3889_v20 = vmul.f32 %v3815_v27, %v3815_v27  ;;  %v4346_v48 = vadd.f32 %v4345_v18, %v4344_v2 }
 0x47c   : > { %v3820_v62 = vadd.f32 %v4346_v48, %v7255_v54  ;;  %v4347_v29 = vpop.f32.mrb[62].mxu1  ;;  %4427 = vmatmul.mubr.msk.f32.vlgmr.msra.gmra.mrb[88].mxu1 %vm3919_vm0, %v3889_v20 }
 0x47d   : > { %v4348_v19 = vpop.f32.mrb[63].mxu1 }
 0x47e   : > { %v3890_v4 = vmul.f32 %v3820_v62, %v3820_v62  ;;  %v4349_v22 = vadd.f32 %v4348_v19, %v4347_v29 }
 0x480   : > { %v3825_v26 = vadd.f32 %v4349_v22, %v7255_v54  ;;  %v4350_v7 = vpop.f32.mrb[64].mxu1  ;;  %4429 = vmatprep.mubr.msk.f32.mxu1 %vm3919_vm0, %v3890_v4  ;;  %v4283_v22 = vld [vmem:[#allocation11] ss:$0 sm:$0xff] }
 0x481   : > { %v4351_v37 = vpop.f32.mrb[65].mxu1 }
 0x482   : > { %v3891_v36 = vmul.f32 %v3825_v26, %v3825_v26  ;;  %v4352_v40 = vadd.f32 %v4351_v37, %v4350_v7 }
 0x484   : > { %v3830_v30 = vadd.f32 %v4352_v40, %v7255_v54  ;;  %v4353_v34 = vpop.f32.mrb[66].mxu1  ;;  %4430 = vmatmul.mubr.msk.f32.gmra.mrb[90].mxu1 %vm3919_vm0, %v3891_v36 }
 0x485   : > { %v4354_v12 = vpop.f32.mrb[67].mxu1 }
 0x486   : > { %v3892_v56 = vmul.f32 %v3830_v30, %v3830_v30  ;;  %v4355_v13 = vadd.f32 %v4354_v12, %v4353_v34 }
 0x488   : > { %v3835_v50 = vadd.f32 %v4355_v13, %v7255_v54  ;;  %v4356_v57 = vpop.f32.mrb[68].mxu1  ;;  %4432 = vmatprep.mubr.msk.f32.mxu1 %vm3919_vm0, %v3892_v56 }
 0x489   : > { %v4357_v60 = vpop.f32.mrb[69].mxu1 }
 0x48a   : > { %v3893_v59 = vmul.f32 %v3835_v50, %v3835_v50  ;;  %v4358_v10 = vadd.f32 %v4357_v60, %v4356_v57 }
 0x48c   : > { %v3840_v63 = vadd.f32 %v4358_v10, %v7255_v54  ;;  %v4359_v44 = vpop.f32.mrb[70].mxu1  ;;  %4433 = vmatmul.mubr.msk.f32.gmra.mrb[92].mxu1 %vm3919_vm0, %v3893_v59 }
 0x48d   : > { %v4360_v45 = vpop.f32.mrb[71].mxu1 }
 0x48e   : > { %v3894_v16 = vmul.f32 %v3840_v63, %v3840_v63  ;;  %v4361_v31 = vadd.f32 %v4360_v45, %v4359_v44 }
 0x490   : > { %v3845_v15 = vadd.f32 %v4361_v31, %v7255_v54  ;;  %v4362_v6 = vpop.f32.mrb[72].mxu1  ;;  %4435 = vmatprep.mubr.msk.f32.mxu1 %vm3919_vm0, %v3894_v16 }
 0x491   : > { %v4363_v11 = vpop.f32.mrb[73].mxu1 }
 0x492   : > { %v3895_v43 = vmul.f32 %v3845_v15, %v3845_v15  ;;  %v4364_v41 = vadd.f32 %v4363_v11, %v4362_v6 }
 0x494   : > { %v3850_v53 = vadd.f32 %v4364_v41, %v7255_v54  ;;  %v4365_v9 = vpop.f32.mrb[74].mxu1  ;;  %4436 = vmatmul.mubr.msk.f32.gmra.mrb[94].mxu1 %vm3919_vm0, %v3895_v43 }
 0x495   : > { %v4366_v58 = vpop.f32.mrb[75].mxu1 }
 0x496   : > { %v3896_v3 = vmul.f32 %v3850_v53, %v3850_v53  ;;  %v4367_v33 = vadd.f32 %v4366_v58, %v4365_v9 }
 0x498   : > { %v3855_v8 = vadd.f32 %v4367_v33, %v7255_v54  ;;  %v4368_v52 = vpop.f32.mrb[76].mxu1  ;;  %4438 = vmatprep.mubr.msk.f32.mxu1 %vm3919_vm0, %v3896_v3 }
 0x499   : > { %v4369_v23 = vpop.f32.mrb[77].mxu1 }
 0x49a   : > { %v3897_v61 = vmul.f32 %v3855_v8, %v3855_v8  ;;  %v4370_v49 = vadd.f32 %v4369_v23, %v4368_v52 }
 0x49c   : > { %v3860_v25 = vadd.f32 %v4370_v49, %v7255_v54  ;;  %v4371_v51 = vpop.f32.mrb[78].mxu1  ;;  %4439 = vmatmul.mubr.msk.f32.gmra.mrb[96].mxu1 %vm3919_vm0, %v3897_v61 }
 0x49d   : > { %v4372_v28 = vpop.f32.mrb[79].mxu1 }
 0x49e   : > { %v3898_v46 = vmul.f32 %v3860_v25, %v3860_v25  ;;  %v4373_v32 = vadd.f32 %v4372_v28, %v4371_v51 }
 0x4a0   : > { %v3865_v24 = vadd.f32 %v4373_v32, %v7255_v54  ;;  %v4374_v42 = vpop.f32.mrb[80].mxu1  ;;  %4441 = vmatprep.mubr.msk.f32.mxu1 %vm3919_vm0, %v3898_v46 }
 0x4a1   : > { %v4375_v55 = vpop.f32.mrb[81].mxu1 }
 0x4a2   : > { %v3899_v14 = vmul.f32 %v3865_v24, %v3865_v24  ;;  %v4376_v38 = vadd.f32 %v4375_v55, %v4374_v42 }
 0x4a4   : > { %v3870_v47 = vadd.f32 %v4376_v38, %v7255_v54  ;;  %v4377_v35 = vpop.f32.mrb[82].mxu1  ;;  %4442 = vmatmul.mubr.msk.f32.gmra.mrb[98].mxu1 %vm3919_vm0, %v3899_v14 }
 0x4a5   : > { %v4378_v1 = vpop.f32.mrb[83].mxu1 }
 0x4a6   : > { %v3900_v0 = vmul.f32 %v3870_v47, %v3870_v47  ;;  %v4379_v17 = vadd.f32 %v4378_v1, %v4377_v35 }
 0x4a8   : > { %v3875_v21 = vadd.f32 %v4379_v17, %v7255_v54  ;;  %v4380_v5 = vpop.f32.mrb[84].mxu1  ;;  %4444 = vmatprep.mubr.msk.f32.mxu1 %vm3919_vm0, %v3900_v0 }
 0x4a9   : > { %v4381_v39 = vpop.f32.mrb[85].mxu1 }
 0x4aa   : > { %v3901_v27 = vmul.f32 %v3875_v21, %v3875_v21  ;;  %v4382_v2 = vadd.f32 %v4381_v39, %v4380_v5 }
 0x4ac   : > { %v3880_v18 = vadd.f32 %v4382_v2, %v7255_v54  ;;  %v4383_v20 = vpop.f32.mrb[86].mxu1  ;;  %4445 = vmatmul.mubr.msk.f32.gmra.mrb[100].mxu1 %vm3919_vm0, %v3901_v27 }
 0x4ad   : > { %v4384_v48 = vpop.f32.mrb[87].mxu1 }
 0x4ae   : > { %v3902_v62 = vmul.f32 %v3880_v18, %v3880_v18  ;;  %v4385_v29 = vadd.f32 %v4384_v48, %v4383_v20 }
 0x4b0   : > { %v3885_v19 = vadd.f32 %v4385_v29, %v7255_v54  ;;  %4447 = vmatprep.mubr.msk.f32.mxu1 %vm3919_vm0, %v3902_v62 }
 0x4b2   : > { %v3903_v4 = vmul.f32 %v3885_v19, %v3885_v19 }
 0x4b4   : > { %4448 = vmatmul.mubr.msk.f32.gmra.mrb[102].mxu1 %vm3919_vm0, %v3903_v4 }
 0x54f   : > { %v4428_v26 = vpop.f32.mrb[88].mxu1 }
 0x550   : > { %v4040_v7 = vadd.f32 %v4428_v26, %v4283_v22  ;;  %v4034_v37 = vpop.f32.mrb[89].mxu1 }
 0x551   : > { %v4035_v36 = vadd.f32 %v4283_v22, %v4034_v37 }
 0x552   : > { %4114 = vst [vmem:[%s7290_s10 + $0x8] sm:$0xff] %v4040_v7 }
 0x553   : > { %4113 = vst [vmem:[%s7290_s10] sm:$0xff] %v4035_v36 }
 0x557   : > { %v4431_v54 = vpop.f32.mrb[90].mxu1 }
 0x558   : > { %v4050_v40 = vadd.f32 %v4431_v54, %v4283_v22  ;;  %v4044_v30 = vpop.f32.mrb[91].mxu1 }
 0x559   : > { %v4045_v34 = vadd.f32 %v4283_v22, %v4044_v30 }
 0x55a   : > { %4116 = vst [vmem:[%s7290_s10 + $0x18] sm:$0xff] %v4050_v40 }
 0x55b   : > { %4115 = vst [vmem:[%s7290_s10 + $0x10] sm:$0xff] %v4045_v34 }
 0x55f   : > { %v4434_v12 = vpop.f32.mrb[92].mxu1 }
 0x560   : > { %v4060_v56 = vadd.f32 %v4434_v12, %v4283_v22  ;;  %v4054_v13 = vpop.f32.mrb[93].mxu1 }
 0x561   : > { %v4055_v50 = vadd.f32 %v4283_v22, %v4054_v13 }
 0x562   : > { %4118 = vst [vmem:[%s7290_s10 + $0x28] sm:$0xff] %v4060_v56 }
 0x563   : > { %4117 = vst [vmem:[%s7290_s10 + $0x20] sm:$0xff] %v4055_v50 }
 0x567   : > { %v4437_v57 = vpop.f32.mrb[94].mxu1 }
 0x568   : > { %v4070_v60 = vadd.f32 %v4437_v57, %v4283_v22  ;;  %v4064_v59 = vpop.f32.mrb[95].mxu1 }
 0x569   : > { %v4065_v10 = vadd.f32 %v4283_v22, %v4064_v59 }
 0x56a   : > { %4120 = vst [vmem:[%s7290_s10 + $0x38] sm:$0xff] %v4070_v60 }
 0x56b   : > { %4119 = vst [vmem:[%s7290_s10 + $0x30] sm:$0xff] %v4065_v10 }
 0x56f   : > { %v4440_v63 = vpop.f32.mrb[96].mxu1 }
 0x570   : > { %v4080_v44 = vadd.f32 %v4440_v63, %v4283_v22  ;;  %v4074_v45 = vpop.f32.mrb[97].mxu1 }
 0x571   : > { %v4075_v16 = vadd.f32 %v4283_v22, %v4074_v45 }
 0x572   : > { %4122 = vst [vmem:[%s7290_s10 + $0x48] sm:$0xff] %v4080_v44 }
 0x573   : > { %4121 = vst [vmem:[%s7290_s10 + $0x40] sm:$0xff] %v4075_v16 }
 0x577   : > { %v4443_v31 = vpop.f32.mrb[98].mxu1 }
 0x578   : > { %v4090_v15 = vadd.f32 %v4443_v31, %v4283_v22  ;;  %v4084_v6 = vpop.f32.mrb[99].mxu1 }
 0x579   : > { %v4085_v11 = vadd.f32 %v4283_v22, %v4084_v6 }
 0x57a   : > { %4124 = vst [vmem:[%s7290_s10 + $0x58] sm:$0xff] %v4090_v15 }
 0x57b   : > { %4123 = vst [vmem:[%s7290_s10 + $0x50] sm:$0xff] %v4085_v11 }
 0x57f   : > { %v4446_v43 = vpop.f32.mrb[100].mxu1 }
 0x580   : > { %v4100_v41 = vadd.f32 %v4446_v43, %v4283_v22  ;;  %v4094_v53 = vpop.f32.mrb[101].mxu1 }
 0x581   : > { %v4095_v9 = vadd.f32 %v4283_v22, %v4094_v53 }
 0x582   : > { %4126 = vst [vmem:[%s7290_s10 + $0x68] sm:$0xff] %v4100_v41 }
 0x583   : > { %4125 = vst [vmem:[%s7290_s10 + $0x60] sm:$0xff] %v4095_v9 }
 0x587   : > { %v4449_v58 = vpop.f32.mrb[102].mxu1 }
 0x588   : > { %v4110_v3 = vadd.f32 %v4449_v58, %v4283_v22  ;;  %v4104_v33 = vpop.f32.mrb[103].mxu1 }
 0x589   : > { %v4105_v8 = vadd.f32 %v4283_v22, %v4104_v33 }
 0x58a   : > { %4128 = vst [vmem:[%s7290_s10 + $0x78] sm:$0xff] %v4110_v3 }
 0x58b   : > { %4127 = vst [vmem:[%s7290_s10 + $0x70] sm:$0xff] %v4105_v8 }
 0x58c   : > { %6022 = shalt.err (!%p6019_p8)
}
 0x58d   : > { %s6023_s19 = scalar_lea.hbm %s7311_s8, 2048  ;;  %s6027_s1 = scalar_lea.hbm %s7366_s7, 4096 }
 0x58e   : > { %p6024_p6 = scmp.ne.s32.totalorder %s7311_s8, %s6023_s19  ;;  %p6028_p3 = scmp.lt.u32.totalorder %s7311_s8, %s7366_s7 }
 0x58f   : > { %p6029_p5 = scmp.lt.u32.totalorder %s6027_s1, %s6023_s19  ;;  %p6031_p7 = scmp.lt.u32.totalorder %s6023_s19, %s7311_s8 }
 0x590   : > { %p6025_p10 = pnand %p6024_p6, %p7404_p4 }
 0x591   : > { %p6030_p9 = por %p6029_p5, %p6028_p3 }
 0x592   : > { %p6026_p11 = pneg %p6025_p10 }
 0x593   : > { %p6032_p12 = por %p6031_p7, %p6030_p9 }
 0x595   : > { %p6033_p1 = pnand %p6032_p12, %p6026_p11 }
 0x597   : > { %6036 = shalt.err (!%p6033_p1)
}
 0x598   : > { %s6103_s22 = smov 128   ;;  %s6104_s28 = smov 8  }
 0x599   : > { %5755 = dma.vmem_to_hbm [thread:$0]  (%p7404_p4), %s7313_s16, 2048, %s7311_s8, %s4130_s23, %s6103_s22, %s6103_s22, %s6104_s28  }
 0x59a PF: > { %s4158_s14 = sand.u32 1, %s6075_s24   ;;  %p7405_p13 = scmp.ne.s32.totalorder %s7379_s9, 0 }
 0x59b   : > { %p7406_p0 = scmp.ge.s32.totalorder %s6087_s27, 2  ;;  %s4159_s30 = scalar_lea.sflag [#allocation4], %s4158_s14 }
 0x59d   : > { %p5778_p2 = pnand %p7406_p0, %p7405_p13 }
 0x59f   : > { %6070 = dma.done.wait (!%p5778_p2), %s4159_s30, 2048  }
 0x5a0   : > { %6072 = vsyncadd (!%p5778_p2), %s4159_s30, 4294965248  ;;  %p23_p8 = scmp.ge.s32.totalorder %s6304_s11, 4   ;;  %s7407_s24 = smov %s6079_s25 }
 0x5a1   : > { %s7408_s25 = smov %s6083_s26  ;;  %s7409_s26 = smov %s6316_s21 }
 0x5a2   : > { %s7410_s27 = smov %s6304_s11  ;;  %25 = sbr.rel (!%p23_p8) target bundleno = 10 (0xa), region = 113 }
 0x5a9   :  { %4164 = vsyncpa [#allocation3], 1 }
 0x5aa   :  { %4166 = vsyncpa [#allocation3 + $0x1], 1 }
 0x5ab   :  { %4167 = vsyncpa [#allocation6], 1 }
 0x5ac   :  { %4168 = vsyncpa [#allocation9], 1 }
 0x5ad   :  { %4169 = vsyncpa [#allocation12], 1 }
 0x5ae   :  { %4170 = vsyncpa [#allocation4], 1 }
 0x5af   :  { %4172 = vsyncpa [#allocation4 + $0x1], 1 }

</bundles_post_ra>
